<compile_context>
chip_gen: v5e
topology: v5e:2x2
jax: 0.10.0
libtpu: 0.0.40
codegen_flags: <defaults>
</compile_context>

<pallas_src>
import functools

import jax
import jax.numpy as jnp
from jax.experimental import pallas as pl
from jax.experimental.pallas import tpu as pltpu

# Accurate f32 contraction path for both the kernel trace and the reference.
jax.config.update("jax_default_matmul_precision", "highest")

EPS = 1e-5


def _round_up(n, m):
    return (n + m - 1) // m * m


# ----------------------------------------------------------------------------
# Parameter packing (wrapper side)
# ----------------------------------------------------------------------------
def _pack_weight_slab(mats, dtype, row_align=8):
    """Stack matrices row-wise into one slab; each segment individually
    padded to a multiple of `row_align` rows (f32 sublane tile)."""
    lane = max(m.shape[1] for m in mats)
    blocks, meta, off = [], [], 0
    for m in mats:
        r, c = m.shape
        rp = _round_up(r, row_align)
        blk = jnp.zeros((rp, lane), dtype).at[:r, :c].set(m.astype(dtype))
        blocks.append(blk)
        meta.append((off, r, c))
        off += rp
    return jnp.concatenate(blocks, axis=0), tuple(meta)


def _pack_vector_slab(vecs, dtype):
    """Stack (1, C) vectors row-wise into one (num_vecs, lane) slab."""
    lane = max(v.shape[-1] for v in vecs)
    rows = [jnp.zeros((1, lane), dtype).at[:, :v.shape[-1]].set(
        v.reshape(1, -1).astype(dtype)) for v in vecs]
    return jnp.concatenate(rows, axis=0)


# ----------------------------------------------------------------------------
# Kernel
# ----------------------------------------------------------------------------
def _gnn_kernel(x_ref, adj_ref, w_ref, v_ref, out_ref, *,
                B, N, IN_C, IN_AUG, HID_C, OUT_C, PAD_OUT, wmeta):
    f32 = jnp.float32
    BN_rows = B * N
    inv_cnt = 1.0 / float(BN_rows)

    adj = adj_ref[...].astype(f32)       # bf16 storage (exact 0/1) -> f32, once
    x_aug = x_ref[...]                   # (B, N, IN_AUG) f32; column IN_C == 1
    vslab = v_ref[...]                   # (10, PAD_OUT) f32 bias/gamma/beta rows

    def wseg(i):
        off, r, c = wmeta[i]
        return w_ref[off:off + r, :c]    # static, 8-row-aligned slab slice

    def vrow(i, c):
        return vslab[i:i + 1, :c]        # (1, c)

    def bn_relu(h, c_out, v_base):
        """bias -> relu -> BatchNorm1d (training batch stats, biased var)."""
        h = jnp.maximum(h + vrow(v_base + 0, c_out), 0.0)
        # one-pass statistics over the flat (B*N, C) slab
        mean = jnp.sum(h, axis=0, keepdims=True) * inv_cnt
        meansq = jnp.sum(h * h, axis=0, keepdims=True) * inv_cnt
        var = jnp.maximum(meansq - mean * mean, 0.0)
        hn = (h - mean) * jax.lax.rsqrt(var + EPS)
        return hn * vrow(v_base + 1, c_out) + vrow(v_base + 2, c_out)

    # ---- layer 1: aggregation also produces the degree via its ones column --
    agg1_full = jnp.einsum('bij,bjc->bic', adj, x_aug,
                           preferred_element_type=f32)        # (B, N, IN_AUG)
    deg = jnp.maximum(agg1_full[..., IN_C:IN_C + 1], 1.0)      # exact row sums
    inv_deg = 1.0 / deg                                        # reused 3x, exact

    # deg / zero-pad columns are neutralized by zero rows in w1r/w1o segments
    agg1 = (agg1_full * inv_deg).reshape(BN_rows, IN_AUG)
    x0 = x_aug.reshape(BN_rows, IN_AUG)
    h1 = (jnp.dot(agg1, wseg(0), preferred_element_type=f32)
          + jnp.dot(x0, wseg(1), preferred_element_type=f32))
    x1 = bn_relu(h1, HID_C, 0)                                 # (BN, HID)
    out = jnp.dot(x1, wseg(6), preferred_element_type=f32)     # final-Linear part

    # ---- layer 2 ------------------------------------------------------------
    agg2 = jnp.einsum('bij,bjc->bic', adj, x1.reshape(B, N, HID_C),
                      preferred_element_type=f32) * inv_deg
    h2 = (jnp.dot(agg2.reshape(BN_rows, HID_C), wseg(2), preferred_element_type=f32)
          + jnp.dot(x1, wseg(3), preferred_element_type=f32))
    x2 = bn_relu(h2, HID_C, 3)
    out = out + jnp.dot(x2, wseg(7), preferred_element_type=f32)

    # ---- layer 3 ------------------------------------------------------------
    agg3 = jnp.einsum('bij,bjc->bic', adj, x2.reshape(B, N, HID_C),
                      preferred_element_type=f32) * inv_deg
    h3 = (jnp.dot(agg3.reshape(BN_rows, HID_C), wseg(4), preferred_element_type=f32)
          + jnp.dot(x2, wseg(5), preferred_element_type=f32))
    x3 = bn_relu(h3, OUT_C, 6)
    out = out + jnp.dot(x3, wseg(8), preferred_element_type=f32)

    # ---- relu(Linear), lane-dense (PAD_OUT lanes) write-back ---------------
    out_ref[...] = jnp.maximum(out + vrow(9, PAD_OUT), 0.0)


# ----------------------------------------------------------------------------
# Wrapper
# ----------------------------------------------------------------------------
def gnn_forward(x, adj, p):
    B, N, IN_C = x.shape
    HID_C = p['w1r'].shape[1]
    OUT_C = p['w3r'].shape[1]
    PAD_OUT = _round_up(max(OUT_C, 128), 128)   # lane-dense output
    IN_AUG = _round_up(IN_C + 1, 8)             # +1 ones column, 8-lane aligned
    f32 = jnp.float32

    # augment x with a ones column (degree comes from the MXU) + zero lane pad
    ones = jnp.ones((B, N, 1), f32)
    lane_pad = jnp.zeros((B, N, IN_AUG - IN_C - 1), f32)
    x_aug = jnp.concatenate([x.astype(f32), ones, lane_pad], axis=-1)

    def pad_rows(w, rows):
        return jnp.zeros((rows, w.shape[1]), f32).at[:w.shape[0]].set(w.astype(f32))

    def pad_cols(w, cols):
        return jnp.zeros((w.shape[0], cols), f32).at[:, :w.shape[1]].set(w.astype(f32))

    # layer-1 weights get zero rows for the ones / pad columns of x_aug
    w1r = pad_rows(p['w1r'], IN_AUG)
    w1o = pad_rows(p['w1o'], IN_AUG)
    # final Linear split into three zero-column-padded sub-blocks (no concat)
    wl = p['wl']
    wl_a = pad_cols(wl[:HID_C], PAD_OUT)
    wl_b = pad_cols(wl[HID_C:2 * HID_C], PAD_OUT)
    wl_c = pad_cols(wl[2 * HID_C:2 * HID_C + OUT_C], PAD_OUT)
    bl = pad_cols(p['bl'], PAD_OUT)

    wslab, wmeta = _pack_weight_slab(
        [w1r, w1o, p['w2r'], p['w2o'], p['w3r'], p['w3o'], wl_a, wl_b, wl_c],
        jnp.float32, row_align=8)
    vslab = _pack_vector_slab(
        [p['b1'], p['g1'], p['be1'],
         p['b2'], p['g2'], p['be2'],
         p['b3'], p['g3'], p['be3'],
         bl], jnp.float32)

    kernel = functools.partial(_gnn_kernel, B=B, N=N, IN_C=IN_C, IN_AUG=IN_AUG,
                               HID_C=HID_C, OUT_C=OUT_C, PAD_OUT=PAD_OUT,
                               wmeta=wmeta)

    flops = int(2 * B * N * N * (IN_AUG + 2 * HID_C)
                + 2 * B * N * (2 * IN_AUG * HID_C + 2 * HID_C * HID_C
                               + 2 * HID_C * OUT_C
                               + (2 * HID_C + OUT_C) * PAD_OUT))
    bytes_accessed = int(x_aug.size * 4 + B * N * N * 2 + wslab.size * 4
                         + vslab.size * 4 + B * N * PAD_OUT * 4)

    vmem = pl.BlockSpec(memory_space=pltpu.MemorySpace.VMEM)
    out_flat = pl.pallas_call(
        kernel,
        out_shape=jax.ShapeDtypeStruct((B * N, PAD_OUT), jnp.float32),
        in_specs=[vmem, vmem, vmem, vmem],
        out_specs=vmem,
        cost_estimate=pl.CostEstimate(flops=flops,
                                      transcendentals=2 * HID_C + OUT_C,
                                      bytes_accessed=bytes_accessed),
    )(x_aug, adj.astype(jnp.bfloat16), wslab, vslab)
    return out_flat[:, :OUT_C].reshape(B, N, OUT_C)


# ----------------------------------------------------------------------------
# Pure-JAX reference (f32, identical math to the PyTorch module)
# ----------------------------------------------------------------------------
def _reference(x, adj, p):
    deg = jnp.maximum(jnp.sum(adj, axis=-1, keepdims=True), 1.0)

    def sage(xin, w_rel, w_root, bias):
        agg = jnp.einsum('bij,bjc->bic', adj, xin) / deg
        return agg @ w_rel + xin @ w_root + bias[0]

    def bn(h, gamma, beta):
        B, N, C = h.shape
        f = h.reshape(B * N, C)
        m = jnp.mean(f, axis=0, keepdims=True)
        v = jnp.mean((f - m) ** 2, axis=0, keepdims=True)
        return (((f - m) * jax.lax.rsqrt(v + EPS)) * gamma[0] + beta[0]).reshape(B, N, C)

    x1 = bn(jnp.maximum(sage(x,  p['w1r'], p['w1o'], p['b1']), 0.0), p['g1'], p['be1'])
    x2 = bn(jnp.maximum(sage(x1, p['w2r'], p['w2o'], p['b2']), 0.0), p['g2'], p['be2'])
    x3 = bn(jnp.maximum(sage(x2, p['w3r'], p['w3o'], p['b3']), 0.0), p['g3'], p['be3'])
    cat = jnp.concatenate([x1, x2, x3], axis=-1)
    return jnp.maximum(cat @ p['wl'] + p['bl'][0], 0.0)


def _make_params(key, in_c, hid_c, out_c):
    ks = jax.random.split(key, 16)
    f32 = jnp.float32

    def w(k, i, o):
        return (0.1 * jax.random.normal(k, (i, o))).astype(f32)

    return {
        # conv1: lin_rel (no bias) + lin_root (bias)
        'w1r': w(ks[0], in_c, hid_c), 'w1o': w(ks[1], in_c, hid_c),
        'b1': (0.05 * jax.random.normal(ks[2], (1, hid_c))).astype(f32),
        'g1': jnp.ones((1, hid_c), f32), 'be1': jnp.zeros((1, hid_c), f32),
        # conv2
        'w2r': w(ks[3], hid_c, hid_c), 'w2o': w(ks[4], hid_c, hid_c),
        'b2': (0.05 * jax.random.normal(ks[5], (1, hid_c))).astype(f32),
        'g2': jnp.ones((1, hid_c), f32), 'be2': jnp.zeros((1, hid_c), f32),
        # conv3
        'w3r': w(ks[6], hid_c, out_c), 'w3o': w(ks[7], hid_c, out_c),
        'b3': (0.05 * jax.random.normal(ks[8], (1, out_c))).astype(f32),
        'g3': jnp.ones((1, out_c), f32), 'be3': jnp.zeros((1, out_c), f32),
        # final linear: (2*hid + out) -> out
        'wl': w(ks[9], 2 * hid_c + out_c, out_c),
        'bl': (0.05 * jax.random.normal(ks[10], (1, out_c))).astype(f32),
    }


if __name__ == "__main__":
    B, N = 2, 16           # batch, num_nodes
    IN_C, HID_C, OUT_C = 4, 32, 32

    key = jax.random.PRNGKey(0)
    kx, kadj, kp = jax.random.split(key, 3)

    x = jax.random.normal(kx, (B, N, IN_C), dtype=jnp.float32)
    # dense 0/1 adjacency with self-loops, symmetric (exact in bf16)
    a = (jax.random.uniform(kadj, (B, N, N)) > 0.5).astype(jnp.float32)
    adj = jnp.maximum(a, jnp.transpose(a, (0, 2, 1)))
    adj = jnp.maximum(adj, jnp.eye(N, dtype=jnp.float32)[None])

    params = _make_params(kp, IN_C, HID_C, OUT_C)

    out = gnn_forward(x, adj, params)
    out = jax.block_until_ready(out)

    ref = _reference(x, adj, params)
    assert out.shape == (B, N, OUT_C)
    # both sides run f32 math with the "highest" matmul precision; expected
    # difference is ~1e-5, tolerance kept comfortably wider.
    assert jnp.allclose(out, ref, rtol=1e-2, atol=1e-2), "mismatch vs reference"

    print("KERNEL_OK")
</pallas_src>

<mosaic_0001>
module attributes {stable_mosaic.version = 11 : i64} {
  func.func @_gnn_kernel(%arg0: memref<2x16x8xf32, #tpu.memory_space<vmem>>, %arg1: memref<2x16x16xbf16, #tpu.memory_space<vmem>>, %arg2: memref<240x128xf32, #tpu.memory_space<vmem>>, %arg3: memref<10x128xf32, #tpu.memory_space<vmem>>, %arg4: memref<32x128xf32, #tpu.memory_space<vmem>>) attributes {dimension_semantics = [], scalar_prefetch = 0 : i64, scratch_operands = 0 : i64, tpu.core_type = #tpu.core_type<tc>} {
    %c0 = arith.constant 0 : index
    %c0_0 = arith.constant 0 : index
    %c0_1 = arith.constant 0 : index
    %0 = vector.load %arg1[%c0, %c0_0, %c0_1] : memref<2x16x16xbf16, #tpu.memory_space<vmem>>, vector<2x16x16xbf16>
    %1 = arith.extf %0 : vector<2x16x16xbf16> to vector<2x16x16xf32>
    %c0_2 = arith.constant 0 : index
    %c0_3 = arith.constant 0 : index
    %c0_4 = arith.constant 0 : index
    %2 = vector.load %arg0[%c0_2, %c0_3, %c0_4] : memref<2x16x8xf32, #tpu.memory_space<vmem>>, vector<2x16x8xf32>
    %c0_5 = arith.constant 0 : index
    %c0_6 = arith.constant 0 : index
    %3 = vector.load %arg3[%c0_5, %c0_6] : memref<10x128xf32, #tpu.memory_space<vmem>>, vector<10x128xf32>
    "tpu.trace_start"() <{level = 10 : i32, message = "bij,bjc->bic"}> : () -> ()
    %cst = arith.constant dense<0.000000e+00> : vector<2x16x8xf32>
    %4 = tpu.matmul %1, %2, %cst {dimension_numbers = #tpu.dot_dimension_numbers<[2], [1], [1], [2], [0, 0, 0, 1, 1, 2], [0], [0]>, precision = #tpu.contract_precision<fp32>} : vector<2x16x16xf32>, vector<2x16x8xf32>, vector<2x16x8xf32> -> vector<2x16x8xf32>
    "tpu.trace_stop"() : () -> ()
    %5 = vector.extract_strided_slice %4 {offsets = [0, 0, 4], sizes = [2, 16, 1], strides = [1, 1, 1]} : vector<2x16x8xf32> to vector<2x16x1xf32>
    %cst_7 = arith.constant 1.000000e+00 : f32
    %6 = vector.broadcast %cst_7 : f32 to vector<2x16x1xf32>
    %7 = arith.maximumf %5, %6 : vector<2x16x1xf32>
    %cst_8 = arith.constant 1.000000e+00 : f32
    %8 = vector.broadcast %cst_8 : f32 to vector<2x16x1xf32>
    %9 = arith.divf %8, %7 : vector<2x16x1xf32>
    %10 = vector.broadcast %9 : vector<2x16x1xf32> to vector<2x16x8xf32>
    %11 = arith.mulf %4, %10 : vector<2x16x8xf32>
    %12 = vector.shape_cast %11 : vector<2x16x8xf32> to vector<32x8xf32>
    %13 = vector.shape_cast %2 : vector<2x16x8xf32> to vector<32x8xf32>
    %c0_9 = arith.constant 0 : index
    %c0_10 = arith.constant 0 : index
    %14 = vector.load %arg2[%c0_9, %c0_10] : memref<240x128xf32, #tpu.memory_space<vmem>>, vector<8x32xf32>
    %cst_11 = arith.constant dense<0.000000e+00> : vector<32x32xf32>
    %15 = tpu.matmul %12, %14, %cst_11 {dimension_numbers = #tpu.dot_dimension_numbers<[1], [0], [0], [1], [0, 0, 1, 1], [], []>, precision = #tpu.contract_precision<fp32>} : vector<32x8xf32>, vector<8x32xf32>, vector<32x32xf32> -> vector<32x32xf32>
    %c8 = arith.constant 8 : index
    %c0_12 = arith.constant 0 : index
    %16 = vector.load %arg2[%c8, %c0_12] : memref<240x128xf32, #tpu.memory_space<vmem>>, vector<8x32xf32>
    %cst_13 = arith.constant dense<0.000000e+00> : vector<32x32xf32>
    %17 = tpu.matmul %13, %16, %cst_13 {dimension_numbers = #tpu.dot_dimension_numbers<[1], [0], [0], [1], [0, 0, 1, 1], [], []>, precision = #tpu.contract_precision<fp32>} : vector<32x8xf32>, vector<8x32xf32>, vector<32x32xf32> -> vector<32x32xf32>
    %18 = arith.addf %15, %17 : vector<32x32xf32>
    %19 = vector.extract_strided_slice %3 {offsets = [0, 0], sizes = [1, 32], strides = [1, 1]} : vector<10x128xf32> to vector<1x32xf32>
    %20 = vector.broadcast %19 : vector<1x32xf32> to vector<32x32xf32>
    %21 = arith.addf %18, %20 : vector<32x32xf32>
    %cst_14 = arith.constant 0.000000e+00 : f32
    %22 = vector.broadcast %cst_14 : f32 to vector<32x32xf32>
    %23 = arith.maximumf %21, %22 : vector<32x32xf32>
    %cst_15 = arith.constant dense<0.000000e+00> : vector<32xf32>
    %24 = vector.multi_reduction <add>, %23, %cst_15 [0] : vector<32x32xf32> to vector<32xf32>
    %25 = vector.shape_cast %24 : vector<32xf32> to vector<1x32xf32>
    %cst_16 = arith.constant 3.125000e-02 : f32
    %26 = vector.broadcast %cst_16 : f32 to vector<1x32xf32>
    %27 = arith.mulf %25, %26 : vector<1x32xf32>
    %28 = arith.mulf %23, %23 : vector<32x32xf32>
    %cst_17 = arith.constant dense<0.000000e+00> : vector<32xf32>
    %29 = vector.multi_reduction <add>, %28, %cst_17 [0] : vector<32x32xf32> to vector<32xf32>
    %30 = vector.shape_cast %29 : vector<32xf32> to vector<1x32xf32>
    %cst_18 = arith.constant 3.125000e-02 : f32
    %31 = vector.broadcast %cst_18 : f32 to vector<1x32xf32>
    %32 = arith.mulf %30, %31 : vector<1x32xf32>
    %33 = arith.mulf %27, %27 : vector<1x32xf32>
    %34 = arith.subf %32, %33 : vector<1x32xf32>
    %cst_19 = arith.constant 0.000000e+00 : f32
    %35 = vector.broadcast %cst_19 : f32 to vector<1x32xf32>
    %36 = arith.maximumf %34, %35 : vector<1x32xf32>
    %37 = vector.broadcast %27 : vector<1x32xf32> to vector<32x32xf32>
    %38 = arith.subf %23, %37 : vector<32x32xf32>
    %cst_20 = arith.constant 9.99999974E-6 : f32
    %39 = vector.broadcast %cst_20 : f32 to vector<1x32xf32>
    %40 = arith.addf %36, %39 : vector<1x32xf32>
    %41 = math.rsqrt %40 : vector<1x32xf32>
    %42 = vector.broadcast %41 : vector<1x32xf32> to vector<32x32xf32>
    %43 = arith.mulf %38, %42 : vector<32x32xf32>
    %44 = vector.extract_strided_slice %3 {offsets = [1, 0], sizes = [1, 32], strides = [1, 1]} : vector<10x128xf32> to vector<1x32xf32>
    %45 = vector.broadcast %44 : vector<1x32xf32> to vector<32x32xf32>
    %46 = arith.mulf %43, %45 : vector<32x32xf32>
    %47 = vector.extract_strided_slice %3 {offsets = [2, 0], sizes = [1, 32], strides = [1, 1]} : vector<10x128xf32> to vector<1x32xf32>
    %48 = vector.broadcast %47 : vector<1x32xf32> to vector<32x32xf32>
    %49 = arith.addf %46, %48 : vector<32x32xf32>
    %c144 = arith.constant 144 : index
    %c0_21 = arith.constant 0 : index
    %50 = vector.load %arg2[%c144, %c0_21] : memref<240x128xf32, #tpu.memory_space<vmem>>, vector<32x128xf32>
    %cst_22 = arith.constant dense<0.000000e+00> : vector<32x128xf32>
    %51 = tpu.matmul %49, %50, %cst_22 {dimension_numbers = #tpu.dot_dimension_numbers<[1], [0], [0], [1], [0, 0, 1, 1], [], []>, precision = #tpu.contract_precision<fp32>} : vector<32x32xf32>, vector<32x128xf32>, vector<32x128xf32> -> vector<32x128xf32>
    %52 = vector.shape_cast %49 : vector<32x32xf32> to vector<2x16x32xf32>
    "tpu.trace_start"() <{level = 10 : i32, message = "bij,bjc->bic"}> : () -> ()
    %cst_23 = arith.constant dense<0.000000e+00> : vector<2x16x32xf32>
    %53 = tpu.matmul %1, %52, %cst_23 {dimension_numbers = #tpu.dot_dimension_numbers<[2], [1], [1], [2], [0, 0, 0, 1, 1, 2], [0], [0]>, precision = #tpu.contract_precision<fp32>} : vector<2x16x16xf32>, vector<2x16x32xf32>, vector<2x16x32xf32> -> vector<2x16x32xf32>
    "tpu.trace_stop"() : () -> ()
    %54 = vector.broadcast %9 : vector<2x16x1xf32> to vector<2x16x32xf32>
    %55 = arith.mulf %53, %54 : vector<2x16x32xf32>
    %56 = vector.shape_cast %55 : vector<2x16x32xf32> to vector<32x32xf32>
    %c16 = arith.constant 16 : index
    %c0_24 = arith.constant 0 : index
    %57 = vector.load %arg2[%c16, %c0_24] : memref<240x128xf32, #tpu.memory_space<vmem>>, vector<32x32xf32>
    %cst_25 = arith.constant dense<0.000000e+00> : vector<32x32xf32>
    %58 = tpu.matmul %56, %57, %cst_25 {dimension_numbers = #tpu.dot_dimension_numbers<[1], [0], [0], [1], [0, 0, 1, 1], [], []>, precision = #tpu.contract_precision<fp32>} : vector<32x32xf32>, vector<32x32xf32>, vector<32x32xf32> -> vector<32x32xf32>
    %c48 = arith.constant 48 : index
    %c0_26 = arith.constant 0 : index
    %59 = vector.load %arg2[%c48, %c0_26] : memref<240x128xf32, #tpu.memory_space<vmem>>, vector<32x32xf32>
    %cst_27 = arith.constant dense<0.000000e+00> : vector<32x32xf32>
    %60 = tpu.matmul %49, %59, %cst_27 {dimension_numbers = #tpu.dot_dimension_numbers<[1], [0], [0], [1], [0, 0, 1, 1], [], []>, precision = #tpu.contract_precision<fp32>} : vector<32x32xf32>, vector<32x32xf32>, vector<32x32xf32> -> vector<32x32xf32>
    %61 = arith.addf %58, %60 : vector<32x32xf32>
    %62 = vector.extract_strided_slice %3 {offsets = [3, 0], sizes = [1, 32], strides = [1, 1]} : vector<10x128xf32> to vector<1x32xf32>
    %63 = vector.broadcast %62 : vector<1x32xf32> to vector<32x32xf32>
    %64 = arith.addf %61, %63 : vector<32x32xf32>
    %cst_28 = arith.constant 0.000000e+00 : f32
    %65 = vector.broadcast %cst_28 : f32 to vector<32x32xf32>
    %66 = arith.maximumf %64, %65 : vector<32x32xf32>
    %cst_29 = arith.constant dense<0.000000e+00> : vector<32xf32>
    %67 = vector.multi_reduction <add>, %66, %cst_29 [0] : vector<32x32xf32> to vector<32xf32>
    %68 = vector.shape_cast %67 : vector<32xf32> to vector<1x32xf32>
    %cst_30 = arith.constant 3.125000e-02 : f32
    %69 = vector.broadcast %cst_30 : f32 to vector<1x32xf32>
    %70 = arith.mulf %68, %69 : vector<1x32xf32>
    %71 = arith.mulf %66, %66 : vector<32x32xf32>
    %cst_31 = arith.constant dense<0.000000e+00> : vector<32xf32>
    %72 = vector.multi_reduction <add>, %71, %cst_31 [0] : vector<32x32xf32> to vector<32xf32>
    %73 = vector.shape_cast %72 : vector<32xf32> to vector<1x32xf32>
    %cst_32 = arith.constant 3.125000e-02 : f32
    %74 = vector.broadcast %cst_32 : f32 to vector<1x32xf32>
    %75 = arith.mulf %73, %74 : vector<1x32xf32>
    %76 = arith.mulf %70, %70 : vector<1x32xf32>
    %77 = arith.subf %75, %76 : vector<1x32xf32>
    %cst_33 = arith.constant 0.000000e+00 : f32
    %78 = vector.broadcast %cst_33 : f32 to vector<1x32xf32>
    %79 = arith.maximumf %77, %78 : vector<1x32xf32>
    %80 = vector.broadcast %70 : vector<1x32xf32> to vector<32x32xf32>
    %81 = arith.subf %66, %80 : vector<32x32xf32>
    %cst_34 = arith.constant 9.99999974E-6 : f32
    %82 = vector.broadcast %cst_34 : f32 to vector<1x32xf32>
    %83 = arith.addf %79, %82 : vector<1x32xf32>
    %84 = math.rsqrt %83 : vector<1x32xf32>
    %85 = vector.broadcast %84 : vector<1x32xf32> to vector<32x32xf32>
    %86 = arith.mulf %81, %85 : vector<32x32xf32>
    %87 = vector.extract_strided_slice %3 {offsets = [4, 0], sizes = [1, 32], strides = [1, 1]} : vector<10x128xf32> to vector<1x32xf32>
    %88 = vector.broadcast %87 : vector<1x32xf32> to vector<32x32xf32>
    %89 = arith.mulf %86, %88 : vector<32x32xf32>
    %90 = vector.extract_strided_slice %3 {offsets = [5, 0], sizes = [1, 32], strides = [1, 1]} : vector<10x128xf32> to vector<1x32xf32>
    %91 = vector.broadcast %90 : vector<1x32xf32> to vector<32x32xf32>
    %92 = arith.addf %89, %91 : vector<32x32xf32>
    %c176 = arith.constant 176 : index
    %c0_35 = arith.constant 0 : index
    %93 = vector.load %arg2[%c176, %c0_35] : memref<240x128xf32, #tpu.memory_space<vmem>>, vector<32x128xf32>
    %cst_36 = arith.constant dense<0.000000e+00> : vector<32x128xf32>
    %94 = tpu.matmul %92, %93, %cst_36 {dimension_numbers = #tpu.dot_dimension_numbers<[1], [0], [0], [1], [0, 0, 1, 1], [], []>, precision = #tpu.contract_precision<fp32>} : vector<32x32xf32>, vector<32x128xf32>, vector<32x128xf32> -> vector<32x128xf32>
    %95 = arith.addf %51, %94 : vector<32x128xf32>
    %96 = vector.shape_cast %92 : vector<32x32xf32> to vector<2x16x32xf32>
    "tpu.trace_start"() <{level = 10 : i32, message = "bij,bjc->bic"}> : () -> ()
    %cst_37 = arith.constant dense<0.000000e+00> : vector<2x16x32xf32>
    %97 = tpu.matmul %1, %96, %cst_37 {dimension_numbers = #tpu.dot_dimension_numbers<[2], [1], [1], [2], [0, 0, 0, 1, 1, 2], [0], [0]>, precision = #tpu.contract_precision<fp32>} : vector<2x16x16xf32>, vector<2x16x32xf32>, vector<2x16x32xf32> -> vector<2x16x32xf32>
    "tpu.trace_stop"() : () -> ()
    %98 = vector.broadcast %9 : vector<2x16x1xf32> to vector<2x16x32xf32>
    %99 = arith.mulf %97, %98 : vector<2x16x32xf32>
    %100 = vector.shape_cast %99 : vector<2x16x32xf32> to vector<32x32xf32>
    %c80 = arith.constant 80 : index
    %c0_38 = arith.constant 0 : index
    %101 = vector.load %arg2[%c80, %c0_38] : memref<240x128xf32, #tpu.memory_space<vmem>>, vector<32x32xf32>
    %cst_39 = arith.constant dense<0.000000e+00> : vector<32x32xf32>
    %102 = tpu.matmul %100, %101, %cst_39 {dimension_numbers = #tpu.dot_dimension_numbers<[1], [0], [0], [1], [0, 0, 1, 1], [], []>, precision = #tpu.contract_precision<fp32>} : vector<32x32xf32>, vector<32x32xf32>, vector<32x32xf32> -> vector<32x32xf32>
    %c112 = arith.constant 112 : index
    %c0_40 = arith.constant 0 : index
    %103 = vector.load %arg2[%c112, %c0_40] : memref<240x128xf32, #tpu.memory_space<vmem>>, vector<32x32xf32>
    %cst_41 = arith.constant dense<0.000000e+00> : vector<32x32xf32>
    %104 = tpu.matmul %92, %103, %cst_41 {dimension_numbers = #tpu.dot_dimension_numbers<[1], [0], [0], [1], [0, 0, 1, 1], [], []>, precision = #tpu.contract_precision<fp32>} : vector<32x32xf32>, vector<32x32xf32>, vector<32x32xf32> -> vector<32x32xf32>
    %105 = arith.addf %102, %104 : vector<32x32xf32>
    %106 = vector.extract_strided_slice %3 {offsets = [6, 0], sizes = [1, 32], strides = [1, 1]} : vector<10x128xf32> to vector<1x32xf32>
    %107 = vector.broadcast %106 : vector<1x32xf32> to vector<32x32xf32>
    %108 = arith.addf %105, %107 : vector<32x32xf32>
    %cst_42 = arith.constant 0.000000e+00 : f32
    %109 = vector.broadcast %cst_42 : f32 to vector<32x32xf32>
    %110 = arith.maximumf %108, %109 : vector<32x32xf32>
    %cst_43 = arith.constant dense<0.000000e+00> : vector<32xf32>
    %111 = vector.multi_reduction <add>, %110, %cst_43 [0] : vector<32x32xf32> to vector<32xf32>
    %112 = vector.shape_cast %111 : vector<32xf32> to vector<1x32xf32>
    %cst_44 = arith.constant 3.125000e-02 : f32
    %113 = vector.broadcast %cst_44 : f32 to vector<1x32xf32>
    %114 = arith.mulf %112, %113 : vector<1x32xf32>
    %115 = arith.mulf %110, %110 : vector<32x32xf32>
    %cst_45 = arith.constant dense<0.000000e+00> : vector<32xf32>
    %116 = vector.multi_reduction <add>, %115, %cst_45 [0] : vector<32x32xf32> to vector<32xf32>
    %117 = vector.shape_cast %116 : vector<32xf32> to vector<1x32xf32>
    %cst_46 = arith.constant 3.125000e-02 : f32
    %118 = vector.broadcast %cst_46 : f32 to vector<1x32xf32>
    %119 = arith.mulf %117, %118 : vector<1x32xf32>
    %120 = arith.mulf %114, %114 : vector<1x32xf32>
    %121 = arith.subf %119, %120 : vector<1x32xf32>
    %cst_47 = arith.constant 0.000000e+00 : f32
    %122 = vector.broadcast %cst_47 : f32 to vector<1x32xf32>
    %123 = arith.maximumf %121, %122 : vector<1x32xf32>
    %124 = vector.broadcast %114 : vector<1x32xf32> to vector<32x32xf32>
    %125 = arith.subf %110, %124 : vector<32x32xf32>
    %cst_48 = arith.constant 9.99999974E-6 : f32
    %126 = vector.broadcast %cst_48 : f32 to vector<1x32xf32>
    %127 = arith.addf %123, %126 : vector<1x32xf32>
    %128 = math.rsqrt %127 : vector<1x32xf32>
    %129 = vector.broadcast %128 : vector<1x32xf32> to vector<32x32xf32>
    %130 = arith.mulf %125, %129 : vector<32x32xf32>
    %131 = vector.extract_strided_slice %3 {offsets = [7, 0], sizes = [1, 32], strides = [1, 1]} : vector<10x128xf32> to vector<1x32xf32>
    %132 = vector.broadcast %131 : vector<1x32xf32> to vector<32x32xf32>
    %133 = arith.mulf %130, %132 : vector<32x32xf32>
    %134 = vector.extract_strided_slice %3 {offsets = [8, 0], sizes = [1, 32], strides = [1, 1]} : vector<10x128xf32> to vector<1x32xf32>
    %135 = vector.broadcast %134 : vector<1x32xf32> to vector<32x32xf32>
    %136 = arith.addf %133, %135 : vector<32x32xf32>
    %c208 = arith.constant 208 : index
    %c0_49 = arith.constant 0 : index
    %137 = vector.load %arg2[%c208, %c0_49] : memref<240x128xf32, #tpu.memory_space<vmem>>, vector<32x128xf32>
    %cst_50 = arith.constant dense<0.000000e+00> : vector<32x128xf32>
    %138 = tpu.matmul %136, %137, %cst_50 {dimension_numbers = #tpu.dot_dimension_numbers<[1], [0], [0], [1], [0, 0, 1, 1], [], []>, precision = #tpu.contract_precision<fp32>} : vector<32x32xf32>, vector<32x128xf32>, vector<32x128xf32> -> vector<32x128xf32>
    %139 = arith.addf %95, %138 : vector<32x128xf32>
    %140 = vector.extract_strided_slice %3 {offsets = [9, 0], sizes = [1, 128], strides = [1, 1]} : vector<10x128xf32> to vector<1x128xf32>
    %141 = vector.broadcast %140 : vector<1x128xf32> to vector<32x128xf32>
    %142 = arith.addf %139, %141 : vector<32x128xf32>
    %cst_51 = arith.constant 0.000000e+00 : f32
    %143 = vector.broadcast %cst_51 : f32 to vector<32x128xf32>
    %144 = arith.maximumf %142, %143 : vector<32x128xf32>
    %c0_52 = arith.constant 0 : index
    %c0_53 = arith.constant 0 : index
    %145 = vector.load %arg4[%c0_52, %c0_53] : memref<32x128xf32, #tpu.memory_space<vmem>>, vector<32x128xf32>
    tpu.vector_store %arg4[%c0_52, %c0_53], %144 {strides = array<i32>} : memref<32x128xf32, #tpu.memory_space<vmem>>, vector<32x128xf32>,
    return
  }
}

</mosaic_0001>

<bundles_post_ra>
// kernel: tpu_custom_call.1
= control target key start
LH: loop header
LB: loop body
LE: loop exit
PB: predicated region body
PF: predicated region fallthrough
CT: control target
= control target key end

     0   :  { %9 = vsyncpa [#allocation3], 0  ;;  %s5077_s0 = inlined_call_operand.vmem [shape: f32[2,16,8], index: 0, kind: input, shape index: {}]   ;;  %s5078_s1 = inlined_call_operand.vmem [shape: bf16[2,16,16], index: 1, kind: input, shape index: {}]   ;;  %s5079_s2 = inlined_call_operand.hbm [shape: f32[240,128], index: 2, kind: input, shape index: {}]   ;;  %s5080_s3 = inlined_call_operand.vmem [shape: f32[10,128], index: 3, kind: input, shape index: {}]   ;;  %s5081_s4 = inlined_call_operand.hbm [shape: f32[32,128], index: 4, kind: output, shape index: {}]  }
   0x1   :  { %10 = vsyncpa [#allocation4], 0  ;;  %s19_s17 = sshll.u32 %s5079_s2, 4  ;;  %s4212_s18 = smov [#allocation2]   ;;  %s20_s17 = int_to_ptr.hbm [resolvable:$true] %s19_s17 }
   0x2   :  { %s21_s19 = sshll.u32 %s4212_s18, 4  ;;  %s4213_s20 = smov 128   ;;  %s22_s19 = int_to_ptr.vmem [resolvable:$true] %s21_s19 }
   0x3   :  { %s4214_s21 = smov 8  }
   0x4   :  { %27 = dma.hbm_to_vmem [thread:$0]  %s20_s17, 3840, %s22_s19, [#allocation3], %s4213_s20, %s4213_s20, %s4214_s21  }
   0x5   :  { %4208 = dma.done.wait [#allocation3], 3840  }
   0x6   :  { %4209 = vsyncadd [#allocation3], 4294963456  ;;  %v4251_v0 = vld [vmem:[%s5077_s0 + $0x8] sm:$0xff]  ;;  %v4256_v1 = vld [vmem:[%s5077_s0] sm:$0xff]  ;;  %vm48_vm0 = vcmask 130048   ;;  %v4215_v54 = vmov 4  }
   0x7   :  { %v4129_v2 = vld [vmem:[%s5078_s1] sm:$0xff]   ;;  %v69_v3 = vand.u32 4294901760, %v4251_v0  ;;  %v71_v4 = vand.u32 4294901760, %v4256_v1  ;;  %v4268_v6 = vld [vmem:[%s5077_s0 + $0x18] sm:$0xff]  ;;  %v4278_v9 = vld [vmem:[%s5077_s0 + $0x10] sm:$0xff]  ;;  %4142 = vset.pattern.permute.xlu0 %v4215_v54  ;;  %4143 = vset.pattern.permute.xlu1 %v4215_v54  ;;  %vm531_vm1 = vcmask 64512  }
   0x8   :  { %v4263_v5 = vunpack.c.l.bf16 %v4129_v2  ;;  %v4270_v7 = vunpack.c.h.bf16 %v4129_v2  ;;  %v4273_v8 = vand.u32 4294901760, %v4268_v6  ;;  %v4285_v13 = vand.u32 4294901760, %v4278_v9  ;;  %v4136_v22 = vld [vmem:[%s5078_s1 + $0x8] sm:$0xff]   ;;  %s4079_s16 = sshll.u32 %s5081_s4, 4  ;;  %s4080_s16 = int_to_ptr.hbm [resolvable:$true] %s4079_s16 }
   0x9   :  { %70 = vmatpush.msra.mxu2 %v69_v3  ;;  %v105_v10 = vsub.f32 %v4251_v0, %v69_v3  ;;  %v111_v12 = vsub.f32 %v4256_v1, %v71_v4  ;;  %233 = vmatpush.msra.mxu1 %v69_v3  ;;  %v4311_v31 = vunpack.c.l.bf16 %v4136_v22  ;;  %v4333_v41 = vunpack.c.h.bf16 %v4136_v22 }
   0xa   :  { %5110 = vst [vmem:[#allocation8_spill] sm:$0xff] %v4263_v5  ;;  %v50_v11 = vsel %vm48_vm0, %v4263_v5, 0  ;;  %v53_v15 = vsel %vm48_vm0, %v4270_v7, 0  ;;  %v301_v16 = vsub.f32 %v4268_v6, %v4273_v8  ;;  %v307_v23 = vsub.f32 %v4278_v9, %v4285_v13 }
   0xb   :  { %5111 = vst [vmem:[#allocation9_spill] sm:$0xff] %v4270_v7  ;;  %v4287_v14 = vsub.f32 %v50_v11, %v50_v11  ;;  %72 = vmatpush.msra.mxu2 %v71_v4  ;;  %v106_v17 = vand.u32 4294901760, %v105_v10  ;;  %v112_v18 = vand.u32 4294901760, %v111_v12  ;;  %v4293_v19 = vsub.f32 %v53_v15, %v53_v15  ;;  %235 = vmatpush.msra.mxu1 %v71_v4 }
   0xc   :  { %4096 = vmatmul.msk.f32.vlgmr.msra.gmra.mxu1 %vm48_vm0, %v4263_v5  ;;  %v302_v21 = vand.u32 4294901760, %v301_v16  ;;  %v308_v28 = vand.u32 4294901760, %v307_v23  ;;  %5116 = vst [vmem:[#allocation14_spill] sm:$0xff] %v4311_v31  ;;  %v246_v36 = vsel %vm48_vm0, %v4311_v31, 0  ;;  %v249_v43 = vsel %vm48_vm0, %v4333_v41, 0 }
   0xd   :  { %5112 = vst [vmem:[#allocation10_spill] sm:$0xff] %v4287_v14  ;;  %v4296_v20 = vand.u32 4294901760, %v4287_v14  ;;  %141 = vmatpush.msrb.mxu2 %v105_v10  ;;  %v107_v24 = vsub.f32 %v105_v10, %v106_v17  ;;  %v113_v25 = vsub.f32 %v111_v12, %v112_v18  ;;  %204 = vmatpush.msra.mxu0 %v106_v17  ;;  %v4309_v27 = vand.u32 4294901760, %v4293_v19 }
   0xe   :  { %5113 = vst [vmem:[#allocation11_spill] sm:$0xff] %v4293_v19  ;;  %367 = vmatpush.msrb.mxu1 %v4273_v8  ;;  %v303_v33 = vsub.f32 %v301_v16, %v302_v21  ;;  %v309_v35 = vsub.f32 %v307_v23, %v308_v28  ;;  %v4331_v39 = vsub.f32 %v246_v36, %v246_v36  ;;  %v533_v36 = vsel %vm531_vm1, %v4256_v1, 0 }
   0xf   :  { %5114 = vst [vmem:[#allocation12_spill] sm:$0xff] %v4296_v20  ;;  %v76_v26 = vsub.f32 %v4287_v14, %v4296_v20  ;;  %144 = vmatpush.msrb.mxu2 %v111_v12  ;;  %v108_v29 = vand.u32 4294901760, %v107_v24  ;;  %v114_v30 = vand.u32 4294901760, %v113_v25  ;;  %208 = vmatpush.msra.mxu0 %v112_v18  ;;  %v84_v34 = vsub.f32 %v4293_v19, %v4309_v27 }
  0x10   :  { %5115 = vst [vmem:[#allocation13_spill] sm:$0xff] %v4309_v27  ;;  %369 = vmatpush.msrb.mxu1 %v4285_v13  ;;  %4094 = vmatmul.msk.f32.vlgmr.msra.gmra.mxu0 %vm48_vm0, %v4263_v5  ;;  %v304_v37 = vand.u32 4294901760, %v303_v33  ;;  %v310_v40 = vand.u32 4294901760, %v309_v35  ;;  %v4339_v42 = vand.u32 4294901760, %v4331_v39  ;;  %v4346_v44 = vsub.f32 %v249_v43, %v249_v43 }
  0x11   :  { %v4314_v32 = vand.u32 4294901760, %v76_v26  ;;  %109 = vmatpush.msra.mxu3 %v108_v29  ;;  %337 = vmatpush.msrb.mxu0 %v301_v16  ;;  %v4329_v38 = vand.u32 4294901760, %v84_v34  ;;  %5119 = vst [vmem:[#allocation17_spill] sm:$0xff] %v4331_v39 }
  0x12   :  { %5120 = vst [vmem:[#allocation18_spill] sm:$0xff] %v4333_v41  ;;  %v4351_v45 = vand.u32 4294901760, %v4346_v44  ;;  %v272_v46 = vsub.f32 %v4331_v39, %v4339_v42 }
  0x13   :  { %5117 = vst [vmem:[#allocation15_spill] sm:$0xff] %v4314_v32  ;;  %78 = vmatmul.f32.vlgmr.msra.gmra.mxu2 %v4314_v32  ;;  %115 = vmatpush.msra.mxu3 %v114_v30 }
  0x14   :  { %266 = vmatpush.msra.mxu2 %v4273_v8  ;;  %4092 = vmatmul.msk.f32.vlgmr.msra.gmra.mxu3 %vm48_vm0, %v4263_v5  ;;  %5118 = vst [vmem:[#allocation16_spill] sm:$0xff] %v4329_v38  ;;  %v4362_v47 = vand.u32 4294901760, %v272_v46  ;;  %v280_v48 = vsub.f32 %v4346_v44, %v4351_v45 }
  0x15   :  { %4097 = vmatmul.msk.f32.gmra.mxu1 %vm48_vm0, %v4270_v7  ;;  %171 = vmatpush.msrb.mxu3 %v69_v3  ;;  %5121 = vst [vmem:[#allocation19_spill] sm:$0xff] %v4339_v42 }
  0x16   :  { %268 = vmatpush.msra.mxu2 %v4285_v13  ;;  %340 = vmatpush.msrb.mxu0 %v307_v23  ;;  %5122 = vst [vmem:[#allocation20_spill] sm:$0xff] %v4346_v44  ;;  %v4369_v49 = vand.u32 4294901760, %v280_v48 }
  0x17   :  { %173 = vmatpush.msrb.mxu3 %v71_v4  ;;  %5123 = vst [vmem:[#allocation21_spill] sm:$0xff] %v4351_v45 }
  0x18   :  { %4095 = vmatmul.msk.f32.gmra.mxu0 %vm48_vm0, %v4270_v7  ;;  %5124 = vst [vmem:[#allocation22_spill] sm:$0xff] %v4362_v47 }
  0x19   :  { %305 = vmatpush.msra.mxu3 %v304_v37  ;;  %5125 = vst [vmem:[#allocation23_spill] sm:$0xff] %v4369_v49 }
  0x1b   :  { %86 = vmatmul.f32.gmra.mxu2 %v4329_v38  ;;  %311 = vmatpush.msra.mxu3 %v310_v40 }
  0x1c   :  { %4093 = vmatmul.msk.f32.gmra.mxu3 %vm48_vm0, %v4270_v7 }
  0x1d   :  { %373 = vmatmul.f32.vlgmr.msrb.gmra.mxu1 %v4339_v42 }
  0x20   :  { %343 = vmatmul.f32.vlgmr.msrb.gmra.mxu0 %v4331_v39 }
  0x23   :  { %147 = vmatmul.f32.vlgmr.msrb.gmra.mxu2 %v4287_v14 }
  0x24   :  { %400 = vmatpush.msrb.mxu2 %v302_v21  ;;  %177 = vmatmul.f32.vlgmr.msrb.gmra.mxu3 %v4296_v20 }
  0x25   :  { %379 = vmatmul.f32.gmra.mxu1 %v4351_v45  ;;  %429 = vmatpush.msrb.mxu3 %v4273_v8 }
  0x26   :  { %404 = vmatpush.msrb.mxu2 %v308_v28 }
  0x27   :  { %431 = vmatpush.msrb.mxu3 %v4285_v13 }
  0x28   :  { %348 = vmatmul.f32.gmra.mxu0 %v4346_v44 }
  0x2b   :  { %152 = vmatmul.f32.gmra.mxu2 %v4293_v19 }
  0x2c   :  { %183 = vmatmul.f32.gmra.mxu3 %v4309_v27 }
  0x33   :  { %274 = vmatmul.f32.vlgmr.msra.gmra.mxu2 %v4362_v47 }
  0x34   :  { %4098 = vmatmul.msk.f32.vlgmr.msra.gmra.mxu3 %vm48_vm0, %v4311_v31 }
  0x3b   :  { %282 = vmatmul.f32.gmra.mxu2 %v4369_v49 }
  0x3c   :  { %4099 = vmatmul.msk.f32.gmra.mxu3 %vm48_vm0, %v4333_v41 }
  0x43   :  { %4100 = vmatmul.msk.f32.vlgmr.msrb.gmra.mxu2 %vm48_vm0, %v4311_v31 }
  0x44   :  { %4102 = vmatmul.msk.f32.vlgmr.msrb.gmra.mxu3 %vm48_vm0, %v4311_v31 }
  0x4b   :  { %4101 = vmatmul.msk.f32.gmra.mxu2 %vm48_vm0, %v4333_v41 }
  0x4c   :  { %4103 = vmatmul.msk.f32.gmra.mxu3 %vm48_vm0, %v4333_v41 }
  0x89   :  { %v238_v60 = vpop.f32.mrf.mxu1 }
  0x8d   :  { %v211_v57 = vpop.f32.mrf.mxu0 }
  0x92   :  { %v242_v13 = vpop.f32.mrf.mxu1 }
  0x95   :  { %v215_v11 = vpop.f32.mrf.mxu0 }
  0x96   :  { %v79_v50 = vpop.f32.mrf.mxu2 }
  0x97   :  { %v118_v51 = vpop.f32.mrf.mxu3 }
  0x98   :  { %v119_v55 = vadd.f32 %v118_v51, %v79_v50 }
  0x9a   :  { %v374_v40 = vpop.f32.mrf.mxu1 }
  0x9d   :  { %v344_v25 = vpop.f32.mrf.mxu0 }
  0x9e   :  { %v87_v52 = vpop.f32.mrf.mxu2 }
  0x9f   :  { %v122_v53 = vpop.f32.mrf.mxu3 }
  0xa0   :  { %v123_v63 = vadd.f32 %v122_v53, %v87_v52  ;;  %v4390_v52 = vand.u32 4294901760, %v533_v36 }
  0xa5   :  { %v349_v1 = vpop.f32.mrf.mxu0 }
  0xa6   :  { %v148_v56 = vpop.f32.mrf.mxu2 }
  0xa7   :  { %v149_v58 = vadd.f32 %v148_v56, %v119_v55  ;;  %v178_v59 = vpop.f32.mrf.mxu3 }
  0xa9   :  { %v179_v61 = vadd.f32 %v178_v59, %v149_v58 }
  0xab   :  { %v212_v62 = vadd.f32 %v211_v57, %v179_v61 }
  0xad   :  { %v4382_v2 = vadd.f32 %v238_v60, %v212_v62  ;;  %v530_v62 = vld [vmem:[#allocation2 + $0x8] sm:$0xff] }
  0xae   :  { %v153_v3 = vpop.f32.mrf.mxu2 }
  0xaf   :  { %v441_v4 = vmax.f32 %v4382_v2, 1.0  ;;  %v154_v8 = vadd.f32 %v153_v3, %v123_v63  ;;  %v184_v10 = vpop.f32.mrf.mxu3  ;;  %v562_v63 = vsub.f32 %v533_v36, %v4390_v52  ;;  %v536_v3 = vsel %vm531_vm1, %v4251_v0, 0 }
  0xb1   :  { %4144 = vrcp.f32 %v441_v4  ;;  %v185_v12 = vadd.f32 %v184_v10, %v154_v8  ;;  %v456_v26 = vand.u32 2147483648, %v441_v4  ;;  %v454_v29 = vand.u32 2147483647, %v441_v4 }
  0xb2   :  { %vm450_vm3 = vweird.f32 %v441_v4  ;;  %v559_v8 = vand.u32 4294901760, %v530_v62  ;;  %v4395_v10 = vand.u32 4294901760, %v536_v3 }
  0xb3   :  { %v216_v15 = vadd.f32 %v215_v11, %v185_v12  ;;  %v457_v37 = vor.u32 1.1754944e-38, %v456_v26  ;;  %vm455_vm5 = vcmp.eq.f32.partialorder %v454_v29, 8.507059e+37  ;;  %v539_v11 = vsel %vm531_vm1, %v4278_v9, 0 }
  0xb4   :  { %560 = vmatpush.msra.mxu0 %v559_v8  ;;  %v570_v0 = vsub.f32 %v536_v3, %v4395_v10  ;;  %687 = vmatpush.msra.mxu3 %v559_v8 }
  0xb5   :  { %v4385_v16 = vadd.f32 %v242_v13, %v216_v15 }
  0xb6   :  { %v275_v17 = vpop.f32.mrf.mxu2 }
  0xb7   :  { %v4145_v18 = vpop.eup %4144  ;;  %v442_v21 = vmax.f32 %v4385_v16, 1.0  ;;  %v314_v22 = vpop.f32.mrf.mxu3 }
  0xb8   :  { %v446_v23 = vmul.f32 %v4145_v18, %v441_v4  ;;  %vm451_vm2 = vweird.f32 %v4145_v18  ;;  %v315_v30 = vadd.f32 %v314_v22, %v275_v17  ;;  %v563_v17 = vand.u32 4294901760, %v562_v63 }
  0xb9   :  { %4146 = vrcp.f32 %v442_v21  ;;  %vm452_vm4 = vmor %vm450_vm3, %vm451_vm2  ;;  %v471_v54 = vand.u32 2147483648, %v442_v21  ;;  %v469_v57 = vand.u32 2147483647, %v442_v21  ;;  %vm465_vm7 = vweird.f32 %v442_v21 }
  0xba   :  { %v447_v24 = vsub.f32 1.0, %v446_v23  ;;  %v345_v50 = vadd.f32 %v344_v25, %v315_v30  ;;  %v610_v22 = vsub.f32 %v530_v62, %v559_v8  ;;  %v380_v23 = vpop.f32.mrf.mxu1  ;;  %v4402_v25 = vand.u32 4294901760, %v539_v11  ;;  %691 = vmatmul.f32.vlgmr.msra.gmra.mxu3 %v563_v17 }
  0xbb   :  { %v472_v61 = vor.u32 1.1754944e-38, %v471_v54  ;;  %vm470_vm9 = vcmp.eq.f32.partialorder %v469_v57, 8.507059e+37 }
  0xbc   :  { %v448_v28 = vmul.f32 %v4145_v18, %v447_v24  ;;  %v375_v58 = vadd.f32 %v374_v40, %v345_v50  ;;  %v564_v24 = vsub.f32 %v562_v63, %v563_v17  ;;  %v611_v26 = vand.u32 4294901760, %v610_v22  ;;  %649 = vmatpush.msra.mxu2 %v610_v22 }
  0xbd   :  { %652 = vmatmul.f32.vlgmr.msra.gmra.mxu2 %v562_v63  ;;  %v578_v36 = vsub.f32 %v539_v11, %v4402_v25  ;;  %v542_v40 = vsel %vm531_vm1, %v4268_v6, 0 }
  0xbe   :  { %v283_v33 = vpop.f32.mrf.mxu2  ;;  %v449_v34 = vadd.f32 %v4145_v18, %v448_v28  ;;  %v571_v28 = vand.u32 4294901760, %v570_v0  ;;  %v565_v29 = vand.u32 4294901760, %v564_v24  ;;  %731 = vmatpush.msrb.mxu0 %v611_v26 }
  0xbf   :  { %v4147_v35 = vpop.eup %4146  ;;  %v318_v43 = vpop.f32.mrf.mxu3 }
  0xc0   :  { %v453_v46 = vsel %vm452_vm4, %v4145_v18, %v449_v34  ;;  %v461_v48 = vmul.f32 %v4147_v35, %v442_v21  ;;  %v319_v55 = vadd.f32 %v318_v43, %v283_v33  ;;  %vm466_vm6 = vweird.f32 %v4147_v35  ;;  %566 = vmatmul.f32.vlgmr.msra.gmra.mxu0 %v565_v29 }
  0xc1   :  { %v458_v51 = vsel %vm455_vm5, %v457_v37, %v453_v46  ;;  %vm467_vm8 = vmor %vm465_vm7, %vm466_vm6  ;;  %v612_v34 = vsub.f32 %v610_v22, %v611_v26 }
  0xc2   :  { %507 = vperm.xlu0 %4142, %v458_v51   ;;  %v462_v53 = vsub.f32 1.0, %v461_v48  ;;  %v350_v12 = vadd.f32 %v349_v1, %v319_v55  ;;  %v579_v51 = vand.u32 4294901760, %v578_v36  ;;  %697 = vmatmul.f32.gmra.mxu3 %v571_v28 }
  0xc3   :  { %v613_v46 = vand.u32 4294901760, %v612_v34 }
  0xc4   :  { %v463_v56 = vmul.f32 %v4147_v35, %v462_v53  ;;  %v381_v30 = vadd.f32 %v380_v23, %v350_v12  ;;  %v585_v53 = vand.u32 4294901760, %v542_v40  ;;  %v580_v6 = vsub.f32 %v578_v36, %v579_v51 }
  0xc5   :  { %614 = vmatpush.msra.mxu1 %v613_v46  ;;  %657 = vmatmul.f32.gmra.mxu2 %v570_v0 }
  0xc6   :  { %v407_v59 = vpop.f32.mrf.mxu2  ;;  %v464_v60 = vadd.f32 %v4147_v35, %v463_v56  ;;  %616 = vmatmul.f32.vlgmr.msra.gmra.mxu1 %v4390_v52  ;;  %v581_v62 = vand.u32 4294901760, %v580_v6 }
  0xc7   :  { %v408_v4 = vadd.f32 %v407_v59, %v375_v58  ;;  %v434_v13 = vpop.f32.mrf.mxu3  ;;  %765 = vmatpush.msrb.mxu1 %v559_v8  ;;  %v586_v58 = vsub.f32 %v542_v40, %v585_v53 }
  0xc8   :  { %v468_v15 = vsel %vm467_vm8, %v4147_v35, %v464_v60  ;;  %v572_v35 = vsub.f32 %v570_v0, %v571_v28  ;;  %v529_v28 = vld [vmem:[#allocation2] sm:$0xff] }
  0xc9   :  { %v4399_v18 = vadd.f32 %v434_v13, %v408_v4  ;;  %v473_v21 = vsel %vm470_vm9, %v472_v61, %v468_v15  ;;  %v587_v63 = vand.u32 4294901760, %v586_v58  ;;  %v810_v29 = vand.u32 4294901760, %v529_v28 }
  0xca   :  { %512 = vperm.xlu0 %4142, %v473_v21   ;;  %v573_v50 = vand.u32 4294901760, %v572_v35  ;;  %703 = vmatmul.f32.gmra.mxu3 %v579_v51 }
  0xcb   :  { %v443_v9 = vmax.f32 %v4399_v18, 1.0  ;;  %v588_v15 = vsub.f32 %v586_v58, %v587_v63  ;;  %938 = vmatpush.msra.mxu1 %v810_v29  ;;  %811 = vmatpush.msrb.mxu2 %v810_v29 }
  0xcc   :  { %574 = vmatmul.f32.gmra.mxu0 %v573_v50 }
  0xcd   :  { %4148 = vrcp.f32 %v443_v9  ;;  %v486_v1 = vand.u32 2147483648, %v443_v9  ;;  %v484_v60 = vand.u32 2147483647, %v443_v9  ;;  %vm480_vm11 = vweird.f32 %v443_v9  ;;  %662 = vmatmul.f32.gmra.mxu2 %v578_v36 }
  0xce   :  { %v411_v33 = vpop.f32.mrf.mxu2  ;;  %620 = vmatmul.f32.gmra.mxu1 %v4395_v10  ;;  %v589_v23 = vand.u32 4294901760, %v588_v15 }
  0xcf   :  { %v412_v37 = vadd.f32 %v411_v33, %v381_v30  ;;  %v438_v43 = vpop.f32.mrf.mxu3  ;;  %v487_v4 = vor.u32 1.1754944e-38, %v486_v1  ;;  %vm485_vm13 = vcmp.eq.f32.partialorder %v484_v60, 8.507059e+37  ;;  %v861_v30 = vsub.f32 %v529_v28, %v810_v29 }
  0xd1   :  { %v4408_v48 = vadd.f32 %v438_v43, %v412_v37  ;;  %v862_v33 = vand.u32 4294901760, %v861_v30  ;;  %900 = vmatpush.msra.mxu0 %v861_v30 }
  0xd2   :  { %709 = vmatmul.f32.gmra.mxu3 %v587_v63 }
  0xd3   :  { %v4149_v54 = vpop.eup %4148  ;;  %v444_v55 = vmax.f32 %v4408_v48, 1.0  ;;  %v863_v34 = vsub.f32 %v861_v30, %v862_v33  ;;  %982 = vmatpush.msra.mxu2 %v862_v33 }
  0xd4   :  { %v476_v56 = vmul.f32 %v4149_v54, %v443_v9  ;;  %vm481_vm10 = vweird.f32 %v4149_v54  ;;  %582 = vmatmul.f32.gmra.mxu0 %v581_v62 }
  0xd5   :  { %4150 = vrcp.f32 %v444_v55  ;;  %vm482_vm12 = vmor %vm480_vm11, %vm481_vm10  ;;  %v501_v17 = vand.u32 2147483648, %v444_v55  ;;  %v499_v22 = vand.u32 2147483647, %v444_v55  ;;  %vm495_vm15 = vweird.f32 %v444_v55  ;;  %667 = vmatmul.f32.gmra.mxu2 %v586_v58 }
  0xd6   :  { %v477_v57 = vsub.f32 1.0, %v476_v56  ;;  %624 = vmatmul.f32.gmra.mxu1 %v4402_v25 }
  0xd7   :  { %v502_v24 = vor.u32 1.1754944e-38, %v501_v17  ;;  %vm500_vm3 = vcmp.eq.f32.partialorder %v499_v22, 8.507059e+37 }
  0xd8   :  { %v478_v59 = vmul.f32 %v4149_v54, %v477_v57 }
  0xda   :  { %v479_v61 = vadd.f32 %v4149_v54, %v478_v59 }
  0xdb   :  { %v4151_v3 = vpop.eup %4150 }
  0xdc   :  { %v483_v8 = vsel %vm482_vm12, %v4149_v54, %v479_v61  ;;  %v491_v11 = vmul.f32 %v4151_v3, %v444_v55  ;;  %vm496_vm14 = vweird.f32 %v4151_v3  ;;  %590 = vmatmul.f32.gmra.mxu0 %v589_v23 }
  0xdd   :  { %v488_v12 = vsel %vm485_vm13, %v487_v4, %v483_v8  ;;  %vm497_vm2 = vmor %vm495_vm15, %vm496_vm14 }
  0xde   :  { %517 = vperm.xlu1 %4143, %v488_v12   ;;  %v492_v13 = vsub.f32 1.0, %v491_v11  ;;  %628 = vmatmul.f32.gmra.mxu1 %v585_v53 }
  0xe0   :  { %v493_v21 = vmul.f32 %v4151_v3, %v492_v13 }
  0xe2   :  { %v494_v0 = vadd.f32 %v4151_v3, %v493_v21 }
  0xe4   :  { %v498_v9 = vsel %vm497_vm2, %v4151_v3, %v494_v0  ;;  %733 = vmatmul.f32.vlgmr.msrb.gmra.mxu0 %v4390_v52 }
  0xe5   :  { %v503_v26 = vsel %vm500_vm3, %v502_v24, %v498_v9 }
  0xe6   :  { %522 = vperm.xlu1 %4143, %v503_v26   ;;  %767 = vmatmul.f32.vlgmr.msrb.gmra.mxu1 %v4390_v52  ;;  %v864_v52 = vand.u32 4294901760, %v863_v34 }
  0xe8   :  { %865 = vmatpush.msrb.mxu3 %v864_v52 }
  0xea   :  { %1016 = vmatpush.msra.mxu3 %v810_v29 }
  0xec   :  { %737 = vmatmul.f32.gmra.mxu0 %v4395_v10 }
  0xee   :  { %771 = vmatmul.f32.gmra.mxu1 %v4395_v10 }
  0xf4   :  { %741 = vmatmul.f32.gmra.mxu0 %v4402_v25 }
  0xf6   :  { %775 = vmatmul.f32.gmra.mxu1 %v4402_v25 }
  0xfc   :  { %745 = vmatmul.f32.gmra.mxu0 %v585_v53 }
  0xfe   :  { %779 = vmatmul.f32.gmra.mxu1 %v585_v53 }
 0x134   :  { %v4420_v35 = vpop.permute.xlu0 %507 }
 0x135   :  { %5126 = vst [vmem:[#allocation24_spill] sm:$0xff] %v4420_v35  ;;  %v525_v10 = vmul.f32 %v4420_v35, %v4382_v2 }
 0x137   :  { %v784_v25 = vsel %vm531_vm1, %v525_v10, 0 }
 0x138   :  { %v812_v36 = vand.u32 4294901760, %v784_v25 }
 0x13a   :  { %v813_v37 = vsub.f32 %v784_v25, %v812_v36  ;;  %867 = vmatmul.f32.vlgmr.msrb.gmra.mxu3 %v812_v36 }
 0x13c   :  { %903 = vmatmul.f32.vlgmr.msra.gmra.mxu0 %v813_v37  ;;  %v4425_v40 = vpop.permute.xlu0 %512  ;;  %v814_v43 = vand.u32 4294901760, %v813_v37 }
 0x13d   :  { %5127 = vst [vmem:[#allocation25_spill] sm:$0xff] %v4425_v40  ;;  %v526_v46 = vmul.f32 %v4425_v40, %v4385_v16  ;;  %v692_v17 = vpop.f32.mrf.mxu3 }
 0x13e   :  { %942 = vmatmul.f32.vlgmr.msra.gmra.mxu1 %v814_v43  ;;  %v815_v50 = vsub.f32 %v813_v37, %v814_v43 }
 0x13f   :  { %v787_v51 = vsel %vm531_vm1, %v526_v46, 0 }
 0x140   :  { %v820_v53 = vand.u32 4294901760, %v787_v51  ;;  %v816_v54 = vand.u32 4294901760, %v815_v50  ;;  %v653_v0 = vpop.f32.mrf.mxu2 }
 0x142   :  { %817 = vmatmul.f32.vlgmr.msrb.gmra.mxu2 %v816_v54  ;;  %871 = vmatmul.f32.gmra.mxu3 %v820_v53  ;;  %v821_v2 = vsub.f32 %v787_v51, %v820_v53 }
 0x143   :  { %v617_v15 = vpop.f32.mrf.mxu1 }
 0x144   :  { %908 = vmatmul.f32.gmra.mxu0 %v821_v2  ;;  %v822_v55 = vand.u32 4294901760, %v821_v2 }
 0x145   :  { %v698_v23 = vpop.f32.mrf.mxu3 }
 0x146   :  { %948 = vmatmul.f32.gmra.mxu1 %v822_v55  ;;  %v823_v56 = vsub.f32 %v821_v2, %v822_v55 }
 0x148   :  { %v824_v57 = vand.u32 4294901760, %v823_v56  ;;  %v658_v26 = vpop.f32.mrf.mxu2 }
 0x14a   :  { %825 = vmatmul.f32.gmra.mxu2 %v824_v57 }
 0x14b   :  { %v621_v22 = vpop.f32.mrf.mxu1 }
 0x14d   :  { %v704_v28 = vpop.f32.mrf.mxu3 }
 0x150   :  { %v4430_v6 = vpop.permute.xlu1 %517  ;;  %v663_v33 = vpop.f32.mrf.mxu2 }
 0x151   :  { %5128 = vst [vmem:[#allocation26_spill] sm:$0xff] %v4430_v6  ;;  %v527_v16 = vmul.f32 %v4430_v6, %v4399_v18 }
 0x153   :  { %v790_v58 = vsel %vm531_vm1, %v527_v16, 0  ;;  %v625_v9 = vpop.f32.mrf.mxu1 }
 0x154   :  { %v828_v1 = vand.u32 4294901760, %v790_v58 }
 0x155   :  { %v710_v34 = vpop.f32.mrf.mxu3 }
 0x156   :  { %875 = vmatmul.f32.gmra.mxu3 %v828_v1  ;;  %v829_v59 = vsub.f32 %v790_v58, %v828_v1 }
 0x158   :  { %v4435_v60 = vpop.permute.xlu1 %522  ;;  %913 = vmatmul.f32.gmra.mxu0 %v829_v59  ;;  %v830_v61 = vand.u32 4294901760, %v829_v59  ;;  %v668_v25 = vpop.f32.mrf.mxu2 }
 0x159   :  { %5129 = vst [vmem:[#allocation27_spill] sm:$0xff] %v4435_v60  ;;  %v528_v62 = vmul.f32 %v4435_v60, %v4408_v48  ;;  %v567_v48 = vpop.f32.mrf.mxu0 }
 0x15a   :  { %954 = vmatmul.f32.gmra.mxu1 %v830_v61  ;;  %v831_v63 = vsub.f32 %v829_v59, %v830_v61  ;;  %v618_v56 = vadd.f32 %v617_v15, %v567_v48 }
 0x15b   :  { %v793_v3 = vsel %vm531_vm1, %v528_v62, 0  ;;  %v629_v30 = vpop.f32.mrf.mxu1  ;;  %vm1043_vm1 = vcmask 261120  }
 0x15c   :  { %v836_v4 = vand.u32 4294901760, %v793_v3  ;;  %v832_v8 = vand.u32 4294901760, %v831_v63  ;;  %v654_v58 = vadd.f32 %v653_v0, %v618_v56 }
 0x15e   :  { %833 = vmatmul.f32.gmra.mxu2 %v832_v8  ;;  %879 = vmatmul.f32.gmra.mxu3 %v836_v4  ;;  %v837_v18 = vsub.f32 %v793_v3, %v836_v4  ;;  %v693_v3 = vadd.f32 %v692_v17, %v654_v58 }
 0x160   :  { %918 = vmatmul.f32.gmra.mxu0 %v837_v18  ;;  %v838_v11 = vand.u32 4294901760, %v837_v18 }
 0x161   :  { %v575_v21 = vpop.f32.mrf.mxu0 }
 0x162   :  { %960 = vmatmul.f32.gmra.mxu1 %v838_v11  ;;  %v839_v12 = vsub.f32 %v837_v18, %v838_v11  ;;  %v622_v55 = vadd.f32 %v621_v22, %v575_v21 }
 0x163   :  { %v768_v10 = vpop.f32.mrf.mxu1 }
 0x164   :  { %v840_v13 = vand.u32 4294901760, %v839_v12  ;;  %v659_v16 = vadd.f32 %v658_v26, %v622_v55 }
 0x166   :  { %841 = vmatmul.f32.gmra.mxu2 %v840_v13  ;;  %1018 = vmatmul.f32.vlgmr.msra.gmra.mxu3 %v812_v36  ;;  %v699_v62 = vadd.f32 %v698_v23, %v659_v16 }
 0x169   :  { %v583_v24 = vpop.f32.mrf.mxu0 }
 0x16a   :  { %v626_v61 = vadd.f32 %v625_v9, %v583_v24 }
 0x16b   :  { %v772_v43 = vpop.f32.mrf.mxu1 }
 0x16e   :  { %984 = vmatmul.f32.vlgmr.msra.gmra.mxu2 %v812_v36  ;;  %1022 = vmatmul.f32.gmra.mxu3 %v820_v53 }
 0x171   :  { %v591_v29 = vpop.f32.mrf.mxu0 }
 0x172   :  { %v630_v13 = vadd.f32 %v629_v30, %v591_v29 }
 0x174   :  { %v669_v22 = vadd.f32 %v668_v25, %v630_v13 }
 0x176   :  { %988 = vmatmul.f32.gmra.mxu2 %v820_v53  ;;  %1026 = vmatmul.f32.gmra.mxu3 %v828_v1  ;;  %v776_v53 = vpop.f32.mrf.mxu1  ;;  %v711_v9 = vadd.f32 %v710_v34, %v669_v22  ;;  %v4443_v34 = vld [vmem:[%s5080_s3] sm:$0xff] }
 0x179   :  { %v734_v52 = vpop.f32.mrf.mxu0 }
 0x17a   :  { %v735_v11 = vadd.f32 %v734_v52, %v693_v3 }
 0x17c   :  { %v769_v21 = vadd.f32 %v768_v10, %v735_v11 }
 0x17e   :  { %992 = vmatmul.f32.gmra.mxu2 %v828_v1  ;;  %1030 = vmatmul.f32.gmra.mxu3 %v836_v4  ;;  %v780_v1 = vpop.f32.mrf.mxu1 }
 0x181   :  { %v738_v37 = vpop.f32.mrf.mxu0 }
 0x182   :  { %v739_v8 = vadd.f32 %v738_v37, %v699_v62 }
 0x184   :  { %v773_v6 = vadd.f32 %v772_v43, %v739_v8 }
 0x186   :  { %996 = vmatmul.f32.gmra.mxu2 %v836_v4  ;;  %v664_v4 = vadd.f32 %v663_v33, %v626_v61 }
 0x188   :  { %v705_v60 = vadd.f32 %v704_v28, %v664_v4 }
 0x189   :  { %v742_v51 = vpop.f32.mrf.mxu0 }
 0x18a   :  { %v743_v26 = vadd.f32 %v742_v51, %v705_v60 }
 0x18c   :  { %v777_v33 = vadd.f32 %v776_v53, %v743_v26 }
 0x191   :  { %v746_v57 = vpop.f32.mrf.mxu0 }
 0x192   :  { %v747_v16 = vadd.f32 %v746_v57, %v711_v9 }
 0x1b9   :  { %v904_v18 = vpop.f32.mrf.mxu0 }
 0x1bb   :  { %v943_v40 = vpop.f32.mrf.mxu1 }
 0x1bd   :  { %v868_v36 = vpop.f32.mrf.mxu3 }
 0x1c1   :  { %v909_v24 = vpop.f32.mrf.mxu0 }
 0x1c3   :  { %v949_v52 = vpop.f32.mrf.mxu1 }
 0x1c5   :  { %v818_v46 = vpop.f32.mrf.mxu2  ;;  %v872_v50 = vpop.f32.mrf.mxu3 }
 0x1c6   :  { %v819_v0 = vadd.f32 %v818_v46, %v769_v21 }
 0x1c8   :  { %v869_v17 = vadd.f32 %v868_v36, %v819_v0 }
 0x1ca   :  { %v905_v29 = vadd.f32 %v904_v18, %v869_v17 }
 0x1cc   :  { %v944_v25 = vadd.f32 %v943_v40, %v905_v29 }
 0x1cd   :  { %v826_v54 = vpop.f32.mrf.mxu2 }
 0x1ce   :  { %v827_v48 = vadd.f32 %v826_v54, %v773_v6  ;;  %v781_v54 = vadd.f32 %v780_v1, %v747_v16 }
 0x1d0   :  { %v873_v55 = vadd.f32 %v872_v50, %v827_v48 }
 0x1d2   :  { %v910_v56 = vadd.f32 %v909_v24, %v873_v55 }
 0x1d4   :  { %v950_v43 = vadd.f32 %v949_v52, %v910_v56 }
 0x1d5   :  { %v914_v10 = vpop.f32.mrf.mxu0 }
 0x1d7   :  { %v955_v58 = vpop.f32.mrf.mxu1 }
 0x1d9   :  { %v876_v2 = vpop.f32.mrf.mxu3 }
 0x1dd   :  { %v919_v3 = vpop.f32.mrf.mxu0 }
 0x1df   :  { %v961_v13 = vpop.f32.mrf.mxu1 }
 0x1e1   :  { %v834_v59 = vpop.f32.mrf.mxu2  ;;  %v880_v63 = vpop.f32.mrf.mxu3 }
 0x1e2   :  { %v835_v37 = vadd.f32 %v834_v59, %v777_v33 }
 0x1e4   :  { %v877_v30 = vadd.f32 %v876_v2, %v835_v37  ;;  %v1034_v2 = vperm.slane %v4443_v34, 0 }
 0x1e6   :  { %v915_v51 = vadd.f32 %v914_v10, %v877_v30 }
 0x1e8   :  { %v956_v59 = vadd.f32 %v955_v58, %v915_v51 }
 0x1e9   :  { %v842_v12 = vpop.f32.mrf.mxu2  ;;  %v1019_v15 = vpop.f32.mrf.mxu3 }
 0x1ea   :  { %v843_v60 = vadd.f32 %v842_v12, %v781_v54 }
 0x1ec   :  { %v881_v53 = vadd.f32 %v880_v63, %v843_v60 }
 0x1ee   :  { %v920_v18 = vadd.f32 %v919_v3, %v881_v53 }
 0x1f0   :  { %v962_v63 = vadd.f32 %v961_v13, %v920_v18 }
 0x1f1   :  { %v985_v23 = vpop.f32.mrf.mxu2  ;;  %v1023_v28 = vpop.f32.mrf.mxu3 }
 0x1f2   :  { %v986_v50 = vadd.f32 %v985_v23, %v944_v25 }
 0x1f4   :  { %v1020_v57 = vadd.f32 %v1019_v15, %v986_v50 }
 0x1f6   :  { %v1035_v4 = vadd.f32 %v1034_v2, %v1020_v57 }
 0x1f8   :  { %v4448_v21 = vmax.f32 %v1035_v4, 0.0 }
 0x1f9   :  { %v989_v6 = vpop.f32.mrf.mxu2  ;;  %v1027_v61 = vpop.f32.mrf.mxu3 }
 0x1fa   :  { %v990_v46 = vadd.f32 %v989_v6, %v950_v43  ;;  %v1058_v55 = vmul.f32 %v4448_v21, %v4448_v21  ;;  %v1044_v17 = vsel %vm1043_vm1, %v4448_v21, 0.0 }
 0x1fc   :  { %v1024_v36 = vadd.f32 %v1023_v28, %v990_v46  ;;  %v1062_v16 = vsel %vm1043_vm1, %v1058_v55, 0.0 }
 0x1fe   :  { %v1036_v1 = vadd.f32 %v1034_v2, %v1024_v36 }
 0x200   :  { %v4446_v11 = vmax.f32 %v1036_v1, 0.0 }
 0x201   :  { %v993_v62 = vpop.f32.mrf.mxu2  ;;  %v1031_v26 = vpop.f32.mrf.mxu3 }
 0x202   :  { %v994_v40 = vadd.f32 %v993_v62, %v956_v59  ;;  %v1059_v22 = vmul.f32 %v4446_v11, %v4446_v11  ;;  %v1045_v24 = vsel %vm1043_vm1, %v4446_v11, 0.0 }
 0x203   :  { %v1046_v52 = vadd.f32 %v1045_v24, %v1044_v17  ;;  %v1098_v24 = vperm.slane %v4443_v34, 1 }
 0x204   :  { %v1028_v8 = vadd.f32 %v1027_v61, %v994_v40  ;;  %v1063_v33 = vsel %vm1043_vm1, %v1059_v22, 0.0 }
 0x205   :  { %v1064_v30 = vadd.f32 %v1063_v33, %v1062_v16 }
 0x206   :  { %v1037_v12 = vadd.f32 %v1034_v2, %v1028_v8 }
 0x208   :  { %v4450_v48 = vmax.f32 %v1037_v12, 0.0 }
 0x209   :  { %v997_v15 = vpop.f32.mrf.mxu2 }
 0x20a   :  { %v998_v0 = vadd.f32 %v997_v15, %v962_v63  ;;  %v1060_v23 = vmul.f32 %v4450_v48, %v4450_v48  ;;  %v1047_v37 = vsel %vm1043_vm1, %v4450_v48, 0.0 }
 0x20b   :  { %v1048_v43 = vadd.f32 %v1047_v37, %v1046_v52 }
 0x20c   :  { %v1032_v9 = vadd.f32 %v1031_v26, %v998_v0  ;;  %v1065_v29 = vsel %vm1043_vm1, %v1060_v23, 0.0 }
 0x20d   :  { %v1066_v54 = vadd.f32 %v1065_v29, %v1064_v30 }
 0x20e   :  { %v1038_v56 = vadd.f32 %v1034_v2, %v1032_v9 }
 0x210   :  { %v1042_v28 = vmax.f32 %v1038_v56, 0.0  ;;  %v1103_v56 = vperm.slane %v4443_v34, 2 }
 0x212   :  { %v1049_v10 = vsel %vm1043_vm1, %v1042_v28, 0.0  ;;  %v1061_v6 = vmul.f32 %v1042_v28, %v1042_v28 }
 0x213   :  { %v1050_v25 = vadd.f32 %v1049_v10, %v1048_v43 }
 0x214   :  { %v1067_v46 = vsel %vm1043_vm1, %v1061_v6, 0.0 }
 0x215   :  { %v1051_v60 = vrot.slane %v1050_v25, 4  ;;  %v1068_v50 = vadd.f32 %v1067_v46, %v1066_v54 }
 0x217   :  { %v1052_v51 = vadd.f32 %v1051_v60, %v1050_v25  ;;  %v1069_v58 = vrot.slane %v1068_v50, 4 }
 0x219   :  { %v1053_v36 = vrot.slane %v1052_v51, 2  ;;  %v1070_v53 = vadd.f32 %v1069_v58, %v1068_v50 }
 0x21b   :  { %v1054_v57 = vadd.f32 %v1053_v36, %v1052_v51  ;;  %v1071_v2 = vrot.slane %v1070_v53, 2 }
 0x21d   :  { %v1055_v59 = vrot.slane %v1054_v57, 1  ;;  %v1072_v61 = vadd.f32 %v1071_v2, %v1070_v53 }
 0x21f   :  { %v1056_v62 = vadd.f32 %v1055_v59, %v1054_v57  ;;  %v1073_v1 = vrot.slane %v1072_v61, 1 }
 0x221   :  { %v1057_v40 = vmul.f32 0.03125, %v1056_v62  ;;  %v1074_v3 = vadd.f32 %v1073_v1, %v1072_v61 }
 0x223   :  { %v1075_v4 = vmul.f32 0.03125, %v1074_v3  ;;  %v1076_v8 = vmul.f32 %v1057_v40, %v1057_v40  ;;  %v1082_v23 = vsub.f32 %v1042_v28, %v1057_v40  ;;  %v1080_v9 = vsub.f32 %v4446_v11, %v1057_v40 }
 0x224   :  { %v1079_v17 = vsub.f32 %v4448_v21, %v1057_v40  ;;  %v1081_v33 = vsub.f32 %v4450_v48, %v1057_v40 }
 0x225   :  { %v1077_v18 = vsub.f32 %v1075_v4, %v1076_v8 }
 0x227   :  { %v1078_v12 = vmax.f32 %v1077_v18, 0.0 }
 0x229   :  { %v1083_v13 = vadd.f32 1e-05, %v1078_v12 }
 0x22b   :  { %4152 = vrsqrt.f32 %v1083_v13  ;;  %vm1090_vm5 = vweird.f32 %v1083_v13 }
 0x231   :  { %v4153_v63 = vpop.eup %4152 }
 0x232   :  { %v1085_v15 = vmul.f32 %v4153_v63, %v1083_v13  ;;  %vm1091_vm4 = vweird.f32 %v4153_v63  ;;  %v1503_v13 = vld [vmem:[#allocation2 + $0x48] sm:$0xff] }
 0x233   :  { %vm1092_vm6 = vmor %vm1090_vm5, %vm1091_vm4 }
 0x234   :  { %v1086_v22 = vmul.f32 %v4153_v63, %v1085_v15  ;;  %v1502_v15 = vld [vmem:[#allocation2 + $0x40] sm:$0xff] }
 0x236   :  { %v1087_v0 = vmul.f32 0.5, %v1086_v22  ;;  %v4500_v22 = vand.u32 4294901760, %v1502_v15 }
 0x238   :  { %v1088_v26 = vsub.f32 1.5, %v1087_v0 }
 0x23a   :  { %v1089_v55 = vmul.f32 %v4153_v63, %v1088_v26  ;;  %v1501_v26 = vld [vmem:[#allocation2 + $0x38] sm:$0xff] }
 0x23c   :  { %v1093_v37 = vsel %vm1092_vm6, %v4153_v63, %v1089_v55  ;;  %v4497_v63 = vand.u32 4294901760, %v1503_v13  ;;  %v1500_v55 = vld [vmem:[#allocation2 + $0x30] sm:$0xff] }
 0x23d   :  { %v1097_v52 = vmul.f32 %v1093_v37, %v1082_v23  ;;  %v1095_v16 = vmul.f32 %v1093_v37, %v1080_v9  ;;  %v1094_v29 = vmul.f32 %v1093_v37, %v1079_v17  ;;  %v1096_v30 = vmul.f32 %v1093_v37, %v1081_v33 }
 0x23e   :  { %v1582_v0 = vsub.f32 %v1503_v13, %v4497_v63  ;;  %v1588_v23 = vsub.f32 %v1502_v15, %v4500_v22  ;;  %v4506_v9 = vand.u32 4294901760, %v1500_v55  ;;  %v1499_v15 = vld [vmem:[#allocation2 + $0x28] sm:$0xff] }
 0x23f   :  { %v1100_v43 = vmul.f32 %v1098_v24, %v1095_v16  ;;  %v1099_v10 = vmul.f32 %v1098_v24, %v1094_v29  ;;  %v1102_v6 = vmul.f32 %v1098_v24, %v1097_v52  ;;  %v1101_v54 = vmul.f32 %v1098_v24, %v1096_v30 }
 0x240   :  { %v4503_v24 = vand.u32 4294901760, %v1501_v26  ;;  %v1583_v33 = vand.u32 4294901760, %v1582_v0  ;;  %v1589_v37 = vand.u32 4294901760, %v1588_v23 }
 0x241   :  { %v4474_v25 = vadd.f32 %v1103_v56, %v1100_v43  ;;  %v4476_v28 = vadd.f32 %v1103_v56, %v1099_v10  ;;  %v4478_v11 = vadd.f32 %v1103_v56, %v1102_v6  ;;  %v4480_v21 = vadd.f32 %v1103_v56, %v1101_v54 }
 0x242   :  { %v1594_v17 = vsub.f32 %v1501_v26, %v4503_v24  ;;  %v1600_v56 = vsub.f32 %v1500_v55, %v4506_v9  ;;  %v1584_v52 = vsub.f32 %v1582_v0, %v1583_v33  ;;  %v1590_v29 = vsub.f32 %v1588_v23, %v1589_v37 }
 0x243   :  { %v1126_v48 = vand.u32 4294901760, %v4474_v25  ;;  %v1128_v46 = vand.u32 4294901760, %v4476_v28  ;;  %v1316_v60 = vand.u32 4294901760, %v4478_v11  ;;  %v1318_v50 = vand.u32 4294901760, %v4480_v21 }
 0x244   :  { %v1595_v16 = vand.u32 4294901760, %v1594_v17  ;;  %v1601_v30 = vand.u32 4294901760, %v1600_v56  ;;  %v1585_v43 = vand.u32 4294901760, %v1584_v52  ;;  %v1591_v6 = vand.u32 4294901760, %v1590_v29 }
 0x245   :  { %1127 = vmatpush.msrb.mxu0 %v1126_v48  ;;  %1228 = vmatpush.msrb.mxu3 %v1126_v48  ;;  %v1162_v51 = vsub.f32 %v4474_v25, %v1126_v48  ;;  %v1168_v58 = vsub.f32 %v4476_v28, %v1128_v46  ;;  %v1352_v36 = vsub.f32 %v4478_v11, %v1316_v60 }
 0x246   :  { %v1358_v53 = vsub.f32 %v4480_v21, %v1318_v50  ;;  %v1596_v10 = vsub.f32 %v1594_v17, %v1595_v16  ;;  %v1602_v54 = vsub.f32 %v1600_v56, %v1601_v30 }
 0x247   :  { %1129 = vmatpush.msrb.mxu0 %v1128_v46  ;;  %1198 = vmatpush.msrb.mxu2 %v1162_v51  ;;  %v1163_v57 = vand.u32 4294901760, %v1162_v51  ;;  %v1169_v2 = vand.u32 4294901760, %v1168_v58  ;;  %v1353_v59 = vand.u32 4294901760, %v1352_v36 }
 0x248   :  { %1230 = vmatpush.msrb.mxu3 %v1128_v46  ;;  %1135 = vmatmul.f32.vlgmr.msrb.gmra.mxu0 %v4314_v32  ;;  %v1359_v61 = vand.u32 4294901760, %v1358_v53 }
 0x249   :  { %1234 = vmatmul.f32.vlgmr.msrb.gmra.mxu3 %v4296_v20  ;;  %1201 = vmatpush.msrb.mxu2 %v1168_v58  ;;  %v1164_v62 = vsub.f32 %v1162_v51, %v1163_v57  ;;  %v1354_v1 = vsub.f32 %v1352_v36, %v1353_v59  ;;  %v1170_v40 = vsub.f32 %v1168_v58, %v1169_v2  ;;  %v1508_v51 = vsel %vm1043_vm1, %v4474_v25, 0 }
 0x24a   :  { %1261 = vmatpush.msra.mxu0 %v1163_v57  ;;  %1204 = vmatmul.f32.vlgmr.msrb.gmra.mxu2 %v4287_v14  ;;  %v1360_v3 = vsub.f32 %v1358_v53, %v1359_v61  ;;  %v1511_v25 = vsel %vm1043_vm1, %v4480_v21, 0 }
 0x24b   :  { %1317 = vmatpush.msra.mxu2 %v1316_v60  ;;  %v1165_v4 = vand.u32 4294901760, %v1164_v62  ;;  %v1355_v8 = vand.u32 4294901760, %v1354_v1  ;;  %v1171_v18 = vand.u32 4294901760, %v1170_v40  ;;  %v1514_v1 = vsel %vm1043_vm1, %v4478_v11, 0 }
 0x24c   :  { %1265 = vmatpush.msra.mxu0 %v1169_v2  ;;  %v1361_v12 = vand.u32 4294901760, %v1360_v3 }
 0x24d   :  { %1319 = vmatpush.msra.mxu2 %v1318_v50  ;;  %1166 = vmatpush.msrb.mxu1 %v1165_v4  ;;  %v4593_v4 = vand.u32 4294901760, %v1514_v1 }
 0x24e   :  { %1388 = vmatpush.msrb.mxu0 %v1352_v36  ;;  %1356 = vmatpush.msra.mxu3 %v1355_v8  ;;  %v4551_v36 = vand.u32 4294901760, %v1508_v51 }
 0x24f   :  { %1451 = vmatpush.msrb.mxu2 %v1353_v59  ;;  %1172 = vmatpush.msrb.mxu1 %v1171_v18  ;;  %v4601_v18 = vsub.f32 %v1514_v1, %v4593_v4 }
 0x250   :  { %1391 = vmatpush.msrb.mxu0 %v1358_v53  ;;  %1362 = vmatpush.msra.mxu3 %v1361_v12  ;;  %v4560_v57 = vsub.f32 %v1508_v51, %v4551_v36 }
 0x251   :  { %1455 = vmatpush.msrb.mxu2 %v1359_v61  ;;  %1143 = vmatmul.f32.gmra.mxu0 %v4329_v38  ;;  %v4573_v61 = vand.u32 4294901760, %v1511_v25  ;;  %5130 = vst [vmem:[#allocation28_spill] sm:$0xff] %v4601_v18  ;;  %v4607_v12 = vand.u32 4294901760, %v4601_v18 }
 0x252   :  { %4104 = vmatmul.msk.f32.vlgmr.msrb.gmra.mxu1 %vm48_vm0, %v4263_v5  ;;  %1240 = vmatmul.f32.gmra.mxu3 %v4309_v27  ;;  %v4571_v59 = vand.u32 4294901760, %v4560_v57 }
 0x253   :  { %1290 = vmatpush.msra.mxu1 %v1126_v48  ;;  %1480 = vmatpush.msrb.mxu3 %v1316_v60  ;;  %v1505_v48 = vsel %vm1043_vm1, %v4476_v28, 0  ;;  %v4583_v62 = vsub.f32 %v1511_v25, %v4573_v61  ;;  %v1563_v13 = vsub.f32 %v4601_v18, %v4607_v12 }
 0x254   :  { %1209 = vmatmul.f32.gmra.mxu2 %v4293_v19  ;;  %v1547_v21 = vsub.f32 %v4560_v57, %v4571_v59 }
 0x255   :  { %1292 = vmatpush.msra.mxu1 %v1128_v46  ;;  %1482 = vmatpush.msrb.mxu3 %v1318_v50  ;;  %v1597_v46 = vand.u32 4294901760, %v1596_v10  ;;  %v4591_v3 = vand.u32 4294901760, %v4583_v62 }
 0x256   :  { %v4588_v40 = vand.u32 4294901760, %v1547_v21 }
 0x257   :  { %1418 = vmatpush.msrb.mxu1 %v1316_v60  ;;  %v4534_v60 = vand.u32 4294901760, %v1505_v48  ;;  %v1555_v8 = vsub.f32 %v4583_v62, %v4591_v3 }
 0x259   :  { %1420 = vmatpush.msrb.mxu1 %v1318_v50  ;;  %4106 = vmatmul.msk.f32.vlgmr.msra.gmra.mxu0 %vm48_vm0, %v4263_v5  ;;  %v1603_v50 = vand.u32 4294901760, %v1602_v54  ;;  %v4542_v28 = vsub.f32 %v1505_v48, %v4534_v60  ;;  %v4604_v11 = vand.u32 4294901760, %v1555_v8 }
 0x25a   :  { %4105 = vmatmul.msk.f32.gmra.mxu1 %vm48_vm0, %v4270_v7  ;;  %4110 = vmatmul.msk.f32.vlgmr.msra.gmra.mxu3 %vm48_vm0, %v4311_v31 }
 0x25b   :  { %1529 = vmatpush.msra.mxu0 %v4497_v63  ;;  %1680 = vmatpush.msra.mxu3 %v4497_v63  ;;  %v4549_v58 = vand.u32 4294901760, %v4542_v28 }
 0x25c   :  { %1325 = vmatmul.f32.vlgmr.msra.gmra.mxu2 %v4362_v47 }
 0x25d   :  { %1531 = vmatpush.msra.mxu0 %v4500_v22  ;;  %1636 = vmatpush.msra.mxu2 %v1582_v0  ;;  %v1539_v53 = vsub.f32 %v4542_v28, %v4549_v58  ;;  %v1498_v0 = vld [vmem:[#allocation2 + $0x20] sm:$0xff] }
 0x25e   :  { %1682 = vmatpush.msra.mxu3 %v4500_v22  ;;  %v1820_v55 = vand.u32 4294901760, %v1498_v0 }
 0x25f   :  { %1533 = vmatpush.msra.mxu0 %v4503_v24  ;;  %1639 = vmatpush.msra.mxu2 %v1588_v23  ;;  %v4568_v2 = vand.u32 4294901760, %v1539_v53 }
 0x260   :  { %1684 = vmatpush.msra.mxu3 %v4503_v24 }
 0x261   :  { %4107 = vmatmul.msk.f32.gmra.mxu0 %vm48_vm0, %v4270_v7  ;;  %1642 = vmatpush.msra.mxu2 %v1594_v17 }
 0x262   :  { %4108 = vmatmul.msk.f32.vlgmr.msra.gmra.mxu1 %vm48_vm0, %v4263_v5  ;;  %4111 = vmatmul.msk.f32.gmra.mxu3 %vm48_vm0, %v4333_v41 }
 0x263   :  { %1535 = vmatpush.msra.mxu0 %v4506_v9  ;;  %1686 = vmatpush.msra.mxu3 %v4506_v9 }
 0x264   :  { %1333 = vmatmul.f32.gmra.mxu2 %v4369_v49  ;;  %1586 = vmatpush.msra.mxu1 %v1585_v43 }
 0x265   :  { %1645 = vmatpush.msra.mxu2 %v1600_v56 }
 0x266   :  { %1592 = vmatpush.msra.mxu1 %v1591_v6 }
 0x268   :  { %1598 = vmatpush.msra.mxu1 %v1597_v46 }
 0x269   :  { %1394 = vmatmul.f32.vlgmr.msrb.gmra.mxu0 %v4331_v39 }
 0x26a   :  { %4109 = vmatmul.msk.f32.gmra.mxu1 %vm48_vm0, %v4270_v7  ;;  %4114 = vmatmul.msk.f32.vlgmr.msrb.gmra.mxu3 %vm48_vm0, %v4311_v31 }
 0x26b   :  { %1604 = vmatpush.msra.mxu1 %v1603_v50  ;;  %1727 = vmatpush.msrb.mxu0 %v1583_v33  ;;  %v1496_v33 = vld [vmem:[#allocation2 + $0x10] sm:$0xff] }
 0x26c   :  { %4112 = vmatmul.msk.f32.vlgmr.msrb.gmra.mxu2 %vm48_vm0, %v4311_v31 }
 0x26d   :  { %1731 = vmatpush.msrb.mxu0 %v1589_v37 }
 0x26f   :  { %1735 = vmatpush.msrb.mxu0 %v1595_v16  ;;  %v1824_v16 = vand.u32 4294901760, %v1496_v33 }
 0x271   :  { %1399 = vmatmul.f32.gmra.mxu0 %v4346_v44  ;;  %v1890_v10 = vsub.f32 %v1496_v33, %v1824_v16 }
 0x272   :  { %1424 = vmatmul.f32.vlgmr.msrb.gmra.mxu1 %v4339_v42  ;;  %4115 = vmatmul.msk.f32.gmra.mxu3 %vm48_vm0, %v4333_v41 }
 0x273   :  { %1739 = vmatpush.msrb.mxu0 %v1601_v30  ;;  %1770 = vmatpush.msrb.mxu1 %v4497_v63  ;;  %v4615_v63 = vand.u32 4294901760, %v1563_v13  ;;  %v1891_v48 = vand.u32 4294901760, %v1890_v10 }
 0x274   :  { %4113 = vmatmul.msk.f32.gmra.mxu2 %vm48_vm0, %v4333_v41 }
 0x275   :  { %1772 = vmatpush.msrb.mxu1 %v4500_v22  ;;  %v1818_v22 = vand.u32 4294901760, %v1499_v15  ;;  %v1892_v50 = vsub.f32 %v1890_v10, %v1891_v48 }
 0x277   :  { %1774 = vmatpush.msrb.mxu1 %v4503_v24  ;;  %v1872_v26 = vsub.f32 %v1499_v15, %v1818_v22  ;;  %1819 = vmatpush.msrb.mxu2 %v1818_v22  ;;  %v1497_v24 = vld [vmem:[#allocation2 + $0x18] sm:$0xff]  ;;  %v1893_v53 = vand.u32 4294901760, %v1892_v50 }
 0x278   :  { %v1822_v17 = vand.u32 4294901760, %v1497_v24 }
 0x279   :  { %1541 = vmatmul.f32.vlgmr.msra.gmra.mxu0 %v4568_v2  ;;  %1776 = vmatpush.msrb.mxu1 %v4506_v9  ;;  %v1873_v23 = vand.u32 4294901760, %v1872_v26  ;;  %v1878_v9 = vsub.f32 %v1498_v0, %v1820_v55 }
 0x27a   :  { %1430 = vmatmul.f32.gmra.mxu1 %v4351_v45  ;;  %1690 = vmatmul.f32.vlgmr.msra.gmra.mxu3 %v4549_v58  ;;  %v1884_v52 = vsub.f32 %v1497_v24, %v1822_v17 }
 0x27b   :  { %1926 = vmatpush.msra.mxu0 %v1872_v26  ;;  %1821 = vmatpush.msrb.mxu2 %v1820_v55  ;;  %v1874_v37 = vsub.f32 %v1872_v26, %v1873_v23  ;;  %v1879_v56 = vand.u32 4294901760, %v1878_v9 }
 0x27c   :  { %1648 = vmatmul.f32.vlgmr.msra.gmra.mxu2 %v4542_v28  ;;  %v1885_v43 = vand.u32 4294901760, %v1884_v52 }
 0x27d   :  { %1929 = vmatpush.msra.mxu0 %v1878_v9  ;;  %1823 = vmatpush.msrb.mxu2 %v1822_v17  ;;  %v1875_v29 = vand.u32 4294901760, %v1874_v37  ;;  %v1880_v30 = vsub.f32 %v1878_v9, %v1879_v56 }
 0x27e   :  { %v1886_v54 = vsub.f32 %v1884_v52, %v1885_v43 }
 0x27f   :  { %1932 = vmatpush.msra.mxu0 %v1884_v52  ;;  %1825 = vmatpush.msrb.mxu2 %v1824_v16  ;;  %v1881_v6 = vand.u32 4294901760, %v1880_v30 }
 0x280   :  { %1876 = vmatpush.msrb.mxu3 %v1875_v29  ;;  %v1887_v46 = vand.u32 4294901760, %v1886_v54 }
 0x281   :  { %1549 = vmatmul.f32.gmra.mxu0 %v4588_v40  ;;  %2017 = vmatpush.msra.mxu2 %v1873_v23 }
 0x282   :  { %1606 = vmatmul.f32.vlgmr.msra.gmra.mxu1 %v4534_v60  ;;  %1696 = vmatmul.f32.gmra.mxu3 %v4571_v59 }
 0x283   :  { %1970 = vmatpush.msra.mxu1 %v1818_v22  ;;  %1935 = vmatpush.msra.mxu0 %v1890_v10 }
 0x284   :  { %1653 = vmatmul.f32.gmra.mxu2 %v4560_v57  ;;  %1882 = vmatpush.msrb.mxu3 %v1881_v6 }
 0x285   :  { %1972 = vmatpush.msra.mxu1 %v1820_v55  ;;  %2021 = vmatpush.msra.mxu2 %v1879_v56 }
 0x286   :  { %1888 = vmatpush.msrb.mxu3 %v1887_v46 }
 0x287   :  { %1974 = vmatpush.msra.mxu1 %v1822_v17  ;;  %2025 = vmatpush.msra.mxu2 %v1885_v43 }
 0x288   :  { %1894 = vmatpush.msrb.mxu3 %v1893_v53 }
 0x289   :  { %1557 = vmatmul.f32.gmra.mxu0 %v4604_v11  ;;  %1976 = vmatpush.msra.mxu1 %v1824_v16 }
 0x28a   :  { %1610 = vmatmul.f32.gmra.mxu1 %v4551_v36  ;;  %1702 = vmatmul.f32.gmra.mxu3 %v4591_v3 }
 0x28b   :  { %2029 = vmatpush.msra.mxu2 %v1891_v48  ;;  %2060 = vmatpush.msra.mxu3 %v1818_v22 }
 0x28c   :  { %1658 = vmatmul.f32.gmra.mxu2 %v4583_v62 }
 0x28d   :  { %2062 = vmatpush.msra.mxu3 %v1820_v55 }
 0x28f   :  { %2064 = vmatpush.msra.mxu3 %v1822_v17 }
 0x291   :  { %1565 = vmatmul.f32.gmra.mxu0 %v4615_v63  ;;  %2066 = vmatpush.msra.mxu3 %v1824_v16 }
 0x292   :  { %1614 = vmatmul.f32.gmra.mxu1 %v4573_v61  ;;  %1708 = vmatmul.f32.gmra.mxu3 %v4607_v12 }
 0x294   :  { %1663 = vmatmul.f32.gmra.mxu2 %v4601_v18 }
 0x299   :  { %1741 = vmatmul.f32.vlgmr.msrb.gmra.mxu0 %v4534_v60 }
 0x29a   :  { %1618 = vmatmul.f32.gmra.mxu1 %v4593_v4 }
 0x2a1   :  { %1745 = vmatmul.f32.gmra.mxu0 %v4551_v36 }
 0x2a2   :  { %1778 = vmatmul.f32.vlgmr.msrb.gmra.mxu1 %v4534_v60 }
 0x2a9   :  { %1749 = vmatmul.f32.gmra.mxu0 %v4573_v61 }
 0x2aa   :  { %1782 = vmatmul.f32.gmra.mxu1 %v4551_v36 }
 0x2b1   :  { %1753 = vmatmul.f32.gmra.mxu0 %v4593_v4 }
 0x2b2   :  { %1786 = vmatmul.f32.gmra.mxu1 %v4573_v61 }
 0x2ba   :  { %1790 = vmatmul.f32.gmra.mxu1 %v4593_v4 }
 0x2c5   :  { %v1136_v51 = vpop.f32.mrf.mxu0 }
 0x2cc   :  { %v1235_v25 = vpop.f32.mrf.mxu3 }
 0x2cd   :  { %v1205_v21 = vpop.f32.mrf.mxu2 }
 0x2ce   :  { %v1144_v1 = vpop.f32.mrf.mxu0 }
 0x2cf   :  { %v1175_v8 = vpop.f32.mrf.mxu1 }
 0x2d0   :  { %v1176_v13 = vadd.f32 %v1175_v8, %v1136_v51 }
 0x2d2   :  { %v1206_v23 = vadd.f32 %v1205_v21, %v1176_v13  ;;  %v5131_v21 = vld [vmem:[#allocation25_spill] sm:$0xff] }
 0x2d4   :  { %v1236_v33 = vadd.f32 %v1235_v25, %v1206_v23 }
 0x2d5   :  { %v1241_v15 = vpop.f32.mrf.mxu3 }
 0x2d6   :  { %v1268_v0 = vpop.f32.mrf.mxu0 }
 0x2d7   :  { %v1179_v26 = vpop.f32.mrf.mxu1  ;;  %v1210_v24 = vpop.f32.mrf.mxu2  ;;  %v1269_v56 = vadd.f32 %v1268_v0, %v1236_v33 }
 0x2d8   :  { %v1180_v9 = vadd.f32 %v1179_v26, %v1144_v1 }
 0x2da   :  { %v1211_v55 = vadd.f32 %v1210_v24, %v1180_v9 }
 0x2dc   :  { %v1242_v43 = vadd.f32 %v1241_v15, %v1211_v55 }
 0x2dd   :  { %v1365_v37 = vpop.f32.mrf.mxu3 }
 0x2de   :  { %v1272_v52 = vpop.f32.mrf.mxu0 }
 0x2df   :  { %v1295_v29 = vpop.f32.mrf.mxu1  ;;  %v1326_v22 = vpop.f32.mrf.mxu2  ;;  %v1273_v6 = vadd.f32 %v1272_v52, %v1242_v43 }
 0x2e0   :  { %v1296_v30 = vadd.f32 %v1295_v29, %v1269_v56  ;;  %v1366_v13 = vadd.f32 %v1365_v37, %v1326_v22 }
 0x2e2   :  { %v1492_v17 = vmul.f32 %v1296_v30, %v4420_v35 }
 0x2e4   :  { %v1795_v16 = vsel %vm1043_vm1, %v1492_v17, 0 }
 0x2e5   :  { %v4632_v10 = vand.u32 4294901760, %v1795_v16  ;;  %v1369_v54 = vpop.f32.mrf.mxu3 }
 0x2e6   :  { %v1395_v25 = vpop.f32.mrf.mxu0 }
 0x2e7   :  { %v1827_v48 = vsub.f32 %v1795_v16, %v4632_v10  ;;  %v1299_v46 = vpop.f32.mrf.mxu1  ;;  %v1334_v50 = vpop.f32.mrf.mxu2  ;;  %1896 = vmatmul.f32.vlgmr.msrb.gmra.mxu3 %v4632_v10  ;;  %v1396_v24 = vadd.f32 %v1395_v25, %v1366_v13 }
 0x2e8   :  { %v1300_v51 = vadd.f32 %v1299_v46, %v1273_v6  ;;  %v1370_v43 = vadd.f32 %v1369_v54, %v1334_v50  ;;  %v5132_v6 = vld [vmem:[#allocation26_spill] sm:$0xff]  ;;  %v5133_v54 = vld [vmem:[#allocation27_spill] sm:$0xff] }
 0x2e9   :  { %v1828_v53 = vand.u32 4294901760, %v1827_v48  ;;  %1938 = vmatmul.f32.vlgmr.msra.gmra.mxu0 %v1827_v48 }
 0x2ea   :  { %v1493_v1 = vmul.f32 %v1300_v51, %v5131_v21 }
 0x2eb   :  { %v1829_v8 = vsub.f32 %v1827_v48, %v1828_v53  ;;  %1980 = vmatmul.f32.vlgmr.msra.gmra.mxu1 %v1828_v53 }
 0x2ec   :  { %v1798_v15 = vsel %vm1043_vm1, %v1493_v1, 0 }
 0x2ed   :  { %v1830_v0 = vand.u32 4294901760, %v1829_v8  ;;  %v1834_v26 = vand.u32 4294901760, %v1798_v15  ;;  %v1485_v52 = vpop.f32.mrf.mxu3 }
 0x2ee   :  { %v1400_v30 = vpop.f32.mrf.mxu0 }
 0x2ef   :  { %v1425_v23 = vpop.f32.mrf.mxu1  ;;  %v1458_v9 = vpop.f32.mrf.mxu2  ;;  %1831 = vmatmul.f32.vlgmr.msrb.gmra.mxu2 %v1830_v0  ;;  %1900 = vmatmul.f32.gmra.mxu3 %v1834_v26  ;;  %v1835_v33 = vsub.f32 %v1798_v15, %v1834_v26  ;;  %v1401_v16 = vadd.f32 %v1400_v30, %v1370_v43 }
 0x2f0   :  { %v1426_v56 = vadd.f32 %v1425_v23, %v1396_v24 }
 0x2f1   :  { %1943 = vmatmul.f32.gmra.mxu0 %v1835_v33  ;;  %v1836_v29 = vand.u32 4294901760, %v1835_v33 }
 0x2f2   :  { %v1459_v55 = vadd.f32 %v1458_v9, %v1426_v56 }
 0x2f3   :  { %1986 = vmatmul.f32.gmra.mxu1 %v1836_v29  ;;  %v1837_v17 = vsub.f32 %v1835_v33, %v1836_v29 }
 0x2f4   :  { %v1486_v37 = vadd.f32 %v1485_v52, %v1459_v55 }
 0x2f5   :  { %v1838_v22 = vand.u32 4294901760, %v1837_v17  ;;  %v1489_v13 = vpop.f32.mrf.mxu3 }
 0x2f6   :  { %v1494_v48 = vmul.f32 %v1486_v37, %v5132_v6  ;;  %v1542_v17 = vpop.f32.mrf.mxu0 }
 0x2f7   :  { %v1431_v46 = vpop.f32.mrf.mxu1  ;;  %1839 = vmatmul.f32.gmra.mxu2 %v1838_v22  ;;  %v1462_v25 = vpop.f32.mrf.mxu2 }
 0x2f8   :  { %v1801_v51 = vsel %vm1043_vm1, %v1494_v48, 0  ;;  %v1432_v53 = vadd.f32 %v1431_v46, %v1401_v16 }
 0x2f9   :  { %v1842_v1 = vand.u32 4294901760, %v1801_v51 }
 0x2fa   :  { %v1463_v8 = vadd.f32 %v1462_v25, %v1432_v53 }
 0x2fb   :  { %1904 = vmatmul.f32.gmra.mxu3 %v1842_v1  ;;  %v1843_v15 = vsub.f32 %v1801_v51, %v1842_v1 }
 0x2fc   :  { %v1490_v0 = vadd.f32 %v1489_v13, %v1463_v8 }
 0x2fd   :  { %1948 = vmatmul.f32.gmra.mxu0 %v1843_v15  ;;  %v1844_v24 = vand.u32 4294901760, %v1843_v15  ;;  %v1691_v37 = vpop.f32.mrf.mxu3 }
 0x2fe   :  { %v1495_v50 = vmul.f32 %v1490_v0, %v5133_v54  ;;  %v1550_v22 = vpop.f32.mrf.mxu0 }
 0x2ff   :  { %1992 = vmatmul.f32.gmra.mxu1 %v1844_v24  ;;  %v1845_v23 = vsub.f32 %v1843_v15, %v1844_v24  ;;  %v1607_v43 = vpop.f32.mrf.mxu1  ;;  %v1649_v48 = vpop.f32.mrf.mxu2 }
 0x300   :  { %v1804_v9 = vsel %vm1043_vm1, %v1495_v50, 0  ;;  %v1608_v21 = vadd.f32 %v1607_v43, %v1542_v17 }
 0x301   :  { %v1846_v33 = vand.u32 4294901760, %v1845_v23  ;;  %v1850_v56 = vand.u32 4294901760, %v1804_v9 }
 0x302   :  { %v1650_v42 = vadd.f32 %v1649_v48, %v1608_v21 }
 0x303   :  { %1847 = vmatmul.f32.gmra.mxu2 %v1846_v33  ;;  %1908 = vmatmul.f32.gmra.mxu3 %v1850_v56  ;;  %v1851_v52 = vsub.f32 %v1804_v9, %v1850_v56 }
 0x304   :  { %v1692_v47 = vadd.f32 %v1691_v37, %v1650_v42 }
 0x305   :  { %1953 = vmatmul.f32.gmra.mxu0 %v1851_v52  ;;  %v1852_v29 = vand.u32 4294901760, %v1851_v52  ;;  %v1697_v46 = vpop.f32.mrf.mxu3 }
 0x306   :  { %v1558_v51 = vpop.f32.mrf.mxu0 }
 0x307   :  { %1998 = vmatmul.f32.gmra.mxu1 %v1852_v29  ;;  %v1853_v55 = vsub.f32 %v1851_v52, %v1852_v29  ;;  %v1611_v16 = vpop.f32.mrf.mxu1  ;;  %v1654_v25 = vpop.f32.mrf.mxu2 }
 0x308   :  { %v1612_v54 = vadd.f32 %v1611_v16, %v1550_v22 }
 0x309   :  { %v1854_v30 = vand.u32 4294901760, %v1853_v55 }
 0x30a   :  { %v1655_v44 = vadd.f32 %v1654_v25, %v1612_v54 }
 0x30b   :  { %1855 = vmatmul.f32.gmra.mxu2 %v1854_v30  ;;  %2068 = vmatmul.f32.vlgmr.msra.gmra.mxu3 %v4632_v10 }
 0x30c   :  { %v1698_v49 = vadd.f32 %v1697_v46, %v1655_v44 }
 0x30d   :  { %v1703_v8 = vpop.f32.mrf.mxu3 }
 0x30e   :  { %v1566_v13 = vpop.f32.mrf.mxu0 }
 0x30f   :  { %v1615_v53 = vpop.f32.mrf.mxu1 }
 0x310   :  { %v1616_v41 = vadd.f32 %v1615_v53, %v1558_v51 }
 0x313   :  { %2031 = vmatmul.f32.vlgmr.msra.gmra.mxu2 %v4632_v10  ;;  %2072 = vmatmul.f32.gmra.mxu3 %v1834_v26  ;;  %v1659_v10 = vpop.f32.mrf.mxu2 }
 0x314   :  { %v1660_v19 = vadd.f32 %v1659_v10, %v1616_v41 }
 0x315   :  { %v1709_v0 = vpop.f32.mrf.mxu3 }
 0x316   :  { %v1704_v17 = vadd.f32 %v1703_v8, %v1660_v19 }
 0x317   :  { %v1619_v15 = vpop.f32.mrf.mxu1 }
 0x318   :  { %v1620_v16 = vadd.f32 %v1619_v15, %v1566_v13 }
 0x31b   :  { %2035 = vmatmul.f32.gmra.mxu2 %v1834_v26  ;;  %2076 = vmatmul.f32.gmra.mxu3 %v1842_v1  ;;  %v1742_v26 = vpop.f32.mrf.mxu0 }
 0x31c   :  { %v1743_v7 = vadd.f32 %v1742_v26, %v1692_v47 }
 0x31f   :  { %v1779_v24 = vpop.f32.mrf.mxu1 }
 0x320   :  { %v1780_v14 = vadd.f32 %v1779_v24, %v1743_v7 }
 0x323   :  { %2039 = vmatmul.f32.gmra.mxu2 %v1842_v1  ;;  %2080 = vmatmul.f32.gmra.mxu3 %v1850_v56  ;;  %v1664_v1 = vpop.f32.mrf.mxu2  ;;  %v1746_v23 = vpop.f32.mrf.mxu0 }
 0x324   :  { %v1747_v38 = vadd.f32 %v1746_v23, %v1698_v49  ;;  %v1665_v48 = vadd.f32 %v1664_v1, %v1620_v16 }
 0x326   :  { %v1710_v41 = vadd.f32 %v1709_v0, %v1665_v48 }
 0x327   :  { %v1783_v9 = vpop.f32.mrf.mxu1 }
 0x328   :  { %v1784_v32 = vadd.f32 %v1783_v9, %v1747_v38 }
 0x32b   :  { %2043 = vmatmul.f32.gmra.mxu2 %v1850_v56  ;;  %v1750_v52 = vpop.f32.mrf.mxu0 }
 0x32c   :  { %v1751_v54 = vadd.f32 %v1750_v52, %v1704_v17 }
 0x32f   :  { %v1787_v29 = vpop.f32.mrf.mxu1 }
 0x330   :  { %v1788_v44 = vadd.f32 %v1787_v29, %v1751_v54 }
 0x333   :  { %v1754_v6 = vpop.f32.mrf.mxu0 }
 0x334   :  { %v1755_v51 = vadd.f32 %v1754_v6, %v1710_v41 }
 0x337   :  { %v1791_v45 = vpop.f32.mrf.mxu1 }
 0x338   :  { %v1792_v19 = vadd.f32 %v1791_v45, %v1755_v51 }
 0x366   :  { %v1939_v31 = vpop.f32.mrf.mxu0 }
 0x368   :  { %v1981_v20 = vpop.f32.mrf.mxu1 }
 0x36a   :  { %v1897_v50 = vpop.f32.mrf.mxu3 }
 0x36e   :  { %v1944_v18 = vpop.f32.mrf.mxu0 }
 0x370   :  { %v1987_v37 = vpop.f32.mrf.mxu1 }
 0x372   :  { %v1832_v33 = vpop.f32.mrf.mxu2  ;;  %v1901_v56 = vpop.f32.mrf.mxu3 }
 0x373   :  { %v1833_v43 = vadd.f32 %v1832_v33, %v1780_v14 }
 0x375   :  { %v1898_v46 = vadd.f32 %v1897_v50, %v1833_v43 }
 0x377   :  { %v1940_v47 = vadd.f32 %v1939_v31, %v1898_v46 }
 0x379   :  { %v1982_v14 = vadd.f32 %v1981_v20, %v1940_v47 }
 0x37a   :  { %v1840_v55 = vpop.f32.mrf.mxu2  ;;  %v1949_v53 = vpop.f32.mrf.mxu0 }
 0x37b   :  { %v1841_v5 = vadd.f32 %v1840_v55, %v1784_v32 }
 0x37c   :  { %v1993_v26 = vpop.f32.mrf.mxu1 }
 0x37d   :  { %v1902_v25 = vadd.f32 %v1901_v56, %v1841_v5 }
 0x37e   :  { %v1905_v30 = vpop.f32.mrf.mxu3 }
 0x37f   :  { %v1945_v49 = vadd.f32 %v1944_v18, %v1902_v25  ;;  %v2084_v18 = vperm.slane %v4443_v34, 3 }
 0x381   :  { %v1988_v32 = vadd.f32 %v1987_v37, %v1945_v49 }
 0x382   :  { %v1954_v9 = vpop.f32.mrf.mxu0 }
 0x384   :  { %v1999_v52 = vpop.f32.mrf.mxu1 }
 0x386   :  { %v1848_v35 = vpop.f32.mrf.mxu2  ;;  %v1909_v39 = vpop.f32.mrf.mxu3 }
 0x387   :  { %v1849_v42 = vadd.f32 %v1848_v35, %v1788_v44 }
 0x389   :  { %v1906_v7 = vadd.f32 %v1905_v30, %v1849_v42 }
 0x38b   :  { %v1950_v10 = vadd.f32 %v1949_v53, %v1906_v7 }
 0x38d   :  { %v1994_v0 = vadd.f32 %v1993_v26, %v1950_v10  ;;  %v2159_v26 = vld [vmem:[#allocation2 + $0xc0] sm:$0xff] }
 0x38e   :  { %v1856_v27 = vpop.f32.mrf.mxu2  ;;  %v2069_v22 = vpop.f32.mrf.mxu3 }
 0x38f   :  { %v1857_v5 = vadd.f32 %v1856_v27, %v1792_v19 }
 0x391   :  { %v1910_v1 = vadd.f32 %v1909_v39, %v1857_v5 }
 0x393   :  { %v1955_v45 = vadd.f32 %v1954_v9, %v1910_v1 }
 0x395   :  { %v2000_v39 = vadd.f32 %v1999_v52, %v1955_v45 }
 0x396   :  { %v2032_v21 = vpop.f32.mrf.mxu2  ;;  %v2073_v38 = vpop.f32.mrf.mxu3 }
 0x397   :  { %v2033_v15 = vadd.f32 %v2032_v21, %v1982_v14 }
 0x399   :  { %v2070_v35 = vadd.f32 %v2069_v22, %v2033_v15 }
 0x39b   :  { %v2085_v33 = vadd.f32 %v2084_v18, %v2070_v35 }
 0x39d   :  { %v4647_v29 = vmax.f32 %v2085_v33, 0.0  ;;  %v2157_v33 = vld [vmem:[#allocation2 + $0xb0] sm:$0xff] }
 0x39e   :  { %v2036_v13 = vpop.f32.mrf.mxu2  ;;  %v2077_v31 = vpop.f32.mrf.mxu3 }
 0x39f   :  { %v2037_v8 = vadd.f32 %v2036_v13, %v1988_v32  ;;  %v2107_v17 = vmul.f32 %v4647_v29, %v4647_v29  ;;  %v2093_v21 = vsel %vm1043_vm1, %v4647_v29, 0.0 }
 0x3a1   :  { %v2074_v24 = vadd.f32 %v2073_v38, %v2037_v8  ;;  %v2111_v49 = vsel %vm1043_vm1, %v2107_v17, 0.0  ;;  %v2160_v8 = vld [vmem:[#allocation2 + $0xc8] sm:$0xff] }
 0x3a2   :  { %v2185_v10 = vand.u32 4294901760, %v2160_v8 }
 0x3a3   :  { %v2086_v6 = vadd.f32 %v2084_v18, %v2074_v24 }
 0x3a4   :  { %v2239_v35 = vsub.f32 %v2160_v8, %v2185_v10  ;;  %2337 = vmatpush.msrb.mxu3 %v2185_v10  ;;  %2186 = vmatpush.msrb.mxu0 %v2185_v10 }
 0x3a5   :  { %v4645_v20 = vmax.f32 %v2086_v6, 0.0 }
 0x3a6   :  { %v2040_v50 = vpop.f32.mrf.mxu2  ;;  %v2081_v16 = vpop.f32.mrf.mxu3  ;;  %v2240_v6 = vand.u32 4294901760, %v2239_v35  ;;  %2293 = vmatpush.msrb.mxu2 %v2239_v35 }
 0x3a7   :  { %v2041_v23 = vadd.f32 %v2040_v50, %v1994_v0  ;;  %v2108_v34 = vmul.f32 %v4645_v20, %v4645_v20  ;;  %v2094_v43 = vsel %vm1043_vm1, %v4645_v20, 0.0  ;;  %v2158_v0 = vld [vmem:[#allocation2 + $0xb8] sm:$0xff] }
 0x3a8   :  { %v2095_v42 = vadd.f32 %v2094_v43, %v2093_v21  ;;  %v2189_v9 = vand.u32 4294901760, %v2158_v0 }
 0x3a9   :  { %v2078_v56 = vadd.f32 %v2077_v31, %v2041_v23  ;;  %v2112_v48 = vsel %vm1043_vm1, %v2108_v34, 0.0 }
 0x3aa   :  { %v2113_v47 = vadd.f32 %v2112_v48, %v2111_v49 }
 0x3ab   :  { %v2087_v27 = vadd.f32 %v2084_v18, %v2078_v56 }
 0x3ad   :  { %v4649_v55 = vmax.f32 %v2087_v27, 0.0  ;;  %v2241_v27 = vsub.f32 %v2239_v35, %v2240_v6 }
 0x3ae   :  { %v2044_v30 = vpop.f32.mrf.mxu2 }
 0x3af   :  { %v2045_v22 = vadd.f32 %v2044_v30, %v2000_v39  ;;  %v2109_v54 = vmul.f32 %v4649_v55, %v4649_v55  ;;  %v2096_v44 = vsel %vm1043_vm1, %v4649_v55, 0.0  ;;  %v2251_v39 = vsub.f32 %v2158_v0, %v2189_v9 }
 0x3b0   :  { %v2097_v38 = vadd.f32 %v2096_v44, %v2095_v42  ;;  %v2191_v30 = vand.u32 4294901760, %v2157_v33 }
 0x3b1   :  { %v2082_v25 = vadd.f32 %v2081_v16, %v2045_v22  ;;  %v2114_v37 = vsel %vm1043_vm1, %v2109_v54, 0.0  ;;  %v2242_v16 = vand.u32 4294901760, %v2241_v27  ;;  %v2252_v43 = vand.u32 4294901760, %v2251_v39 }
 0x3b2   :  { %v2115_v32 = vadd.f32 %v2114_v37, %v2113_v47  ;;  %v2257_v54 = vsub.f32 %v2157_v33, %v2191_v30 }
 0x3b3   :  { %v2088_v46 = vadd.f32 %v2084_v18, %v2082_v25  ;;  %v2187_v18 = vand.u32 4294901760, %v2159_v26  ;;  %2243 = vmatpush.msrb.mxu1 %v2242_v16  ;;  %v2253_v44 = vsub.f32 %v2251_v39, %v2252_v43 }
 0x3b5   :  { %v4666_v41 = vmax.f32 %v2088_v46, 0.0  ;;  %v2245_v23 = vsub.f32 %v2159_v26, %v2187_v18  ;;  %2339 = vmatpush.msrb.mxu3 %v2187_v18  ;;  %2188 = vmatpush.msrb.mxu0 %v2187_v18  ;;  %v2258_v46 = vand.u32 4294901760, %v2257_v54  ;;  %v2254_v37 = vand.u32 4294901760, %v2253_v44 }
 0x3b7   :  { %v2098_v51 = vsel %vm1043_vm1, %v4666_v41, 0.0  ;;  %v2110_v7 = vmul.f32 %v4666_v41, %v4666_v41  ;;  %2296 = vmatpush.msrb.mxu2 %v2245_v23  ;;  %v2246_v52 = vand.u32 4294901760, %v2245_v23  ;;  %2341 = vmatpush.msrb.mxu3 %v2189_v9  ;;  %v2259_v47 = vsub.f32 %v2257_v54, %v2258_v46 }
 0x3b8   :  { %v2099_v53 = vadd.f32 %v2098_v51, %v2097_v38  ;;  %2190 = vmatpush.msrb.mxu0 %v2189_v9 }
 0x3b9   :  { %v2116_v13 = vsel %vm1043_vm1, %v2110_v7, 0.0  ;;  %v2247_v17 = vsub.f32 %v2245_v23, %v2246_v52  ;;  %2299 = vmatpush.msrb.mxu2 %v2251_v39  ;;  %2343 = vmatpush.msrb.mxu3 %v2191_v30  ;;  %v2260_v51 = vand.u32 4294901760, %v2259_v47 }
 0x3ba   :  { %v2100_v19 = vrot.slane %v2099_v53, 4  ;;  %v2117_v14 = vadd.f32 %v2116_v13, %v2115_v32  ;;  %2192 = vmatpush.msrb.mxu0 %v2191_v30 }
 0x3bb   :  { %v2248_v48 = vand.u32 4294901760, %v2247_v17  ;;  %2302 = vmatpush.msrb.mxu2 %v2257_v54 }
 0x3bc   :  { %v2101_v5 = vadd.f32 %v2100_v19, %v2099_v53  ;;  %v2118_v15 = vrot.slane %v2117_v14, 4  ;;  %2384 = vmatpush.msra.mxu0 %v2240_v6  ;;  %v1111_v19 = vld [vmem:[#allocation2 + $0xa8] sm:$0xff]  ;;  %v1108_v6 = vld [vmem:[#allocation2 + $0x90] sm:$0xff] }
 0x3bd   :  { %2249 = vmatpush.msrb.mxu1 %v2248_v48  ;;  %v4677_v8 = vand.u32 4294901760, %v1111_v19 }
 0x3be   :  { %v2102_v24 = vrot.slane %v2101_v5, 2  ;;  %v2119_v1 = vadd.f32 %v2118_v15, %v2117_v14  ;;  %2388 = vmatpush.msra.mxu0 %v2246_v52 }
 0x3bf   :  { %2255 = vmatpush.msrb.mxu1 %v2254_v37  ;;  %2464 = vmatpush.msra.mxu2 %v4677_v8  ;;  %v4681_v26 = vsub.f32 %v1111_v19, %v4677_v8 }
 0x3c0   :  { %v2103_v31 = vadd.f32 %v2102_v24, %v2101_v5  ;;  %v2120_v50 = vrot.slane %v2119_v1, 2  ;;  %2392 = vmatpush.msra.mxu0 %v2252_v43  ;;  %v1110_v5 = vld [vmem:[#allocation2 + $0xa0] sm:$0xff] }
 0x3c1   :  { %2261 = vmatpush.msrb.mxu1 %v2260_v51  ;;  %v4683_v24 = vand.u32 4294901760, %v1110_v5  ;;  %v2518_v35 = vand.u32 4294901760, %v4681_v26 }
 0x3c2   :  { %v2104_v56 = vrot.slane %v2103_v31, 1  ;;  %v2121_v45 = vadd.f32 %v2120_v50, %v2119_v1  ;;  %2396 = vmatpush.msra.mxu0 %v2258_v46 }
 0x3c3   :  { %2427 = vmatpush.msra.mxu1 %v2185_v10  ;;  %v1109_v10 = vld [vmem:[#allocation2 + $0x98] sm:$0xff]  ;;  %2466 = vmatpush.msra.mxu2 %v4683_v24  ;;  %v4690_v0 = vsub.f32 %v1110_v5, %v4683_v24 }
 0x3c4   :  { %v2105_v34 = vadd.f32 %v2104_v56, %v2103_v31  ;;  %v2122_v22 = vrot.slane %v2121_v45, 1  ;;  %v4158_v31 = vld [vmem:[%s5080_s3] sm:$0xff]  ;;  %v4698_v56 = vand.u32 4294901760, %v1108_v6 }
 0x3c5   :  { %2429 = vmatpush.msra.mxu1 %v2187_v18  ;;  %v4687_v18 = vand.u32 4294901760, %v1109_v10  ;;  %v2147_v50 = vperm.slane %v4158_v31, 4  ;;  %v2524_v33 = vand.u32 4294901760, %v4690_v0  ;;  %v2152_v43 = vperm.slane %v4158_v31, 5 }
 0x3c6   :  { %v4673_v25 = vmul.f32 0.03125, %v2105_v34  ;;  %v2123_v21 = vadd.f32 %v2122_v22, %v2121_v45  ;;  %v4713_v16 = vsub.f32 %v1108_v6, %v4698_v56 }
 0x3c7   :  { %2431 = vmatpush.msra.mxu1 %v2189_v9  ;;  %v2519_v9 = vsub.f32 %v4681_v26, %v2518_v35  ;;  %2468 = vmatpush.msra.mxu2 %v4687_v18  ;;  %v4708_v39 = vsub.f32 %v1109_v10, %v4687_v18  ;;  %v2525_v22 = vsub.f32 %v4690_v0, %v2524_v33 }
 0x3c8   :  { %v2124_v42 = vmul.f32 0.03125, %v2123_v21  ;;  %v2125_v49 = vmul.f32 %v4673_v25, %v4673_v25  ;;  %v2128_v45 = vsub.f32 %v4647_v29, %v4673_v25  ;;  %v2129_v27 = vsub.f32 %v4645_v20, %v4673_v25 }
 0x3c9   :  { %2433 = vmatpush.msra.mxu1 %v2191_v30  ;;  %v2130_v52 = vsub.f32 %v4649_v55, %v4673_v25  ;;  %v2520_v34 = vand.u32 4294901760, %v2519_v9  ;;  %2470 = vmatpush.msra.mxu2 %v4698_v56  ;;  %v2526_v55 = vand.u32 4294901760, %v2525_v22  ;;  %v2530_v54 = vand.u32 4294901760, %v4708_v39 }
 0x3ca   :  { %v2126_v38 = vsub.f32 %v2124_v42, %v2125_v49  ;;  %v2536_v21 = vand.u32 4294901760, %v4713_v16  ;;  %v2131_v51 = vsub.f32 %v4666_v41, %v4673_v25 }
 0x3cb   :  { %2521 = vmatpush.msra.mxu3 %v2520_v34  ;;  %v2531_v46 = vsub.f32 %v4708_v39, %v2530_v54 }
 0x3cc   :  { %v2127_v7 = vmax.f32 %v2126_v38, 0.0  ;;  %v2537_v42 = vsub.f32 %v4713_v16, %v2536_v21 }
 0x3cd   :  { %2527 = vmatpush.msra.mxu3 %v2526_v55  ;;  %v2532_v38 = vand.u32 4294901760, %v2531_v46 }
 0x3ce   :  { %v2132_v32 = vadd.f32 1e-05, %v2127_v7 }
 0x3cf   :  { %2533 = vmatpush.msra.mxu3 %v2532_v38  ;;  %v5138_v38 = vld [vmem:[#allocation15_spill] sm:$0xff] }
 0x3d0   :  { %4154 = vrsqrt.f32 %v2132_v32  ;;  %vm2139_vm8 = vweird.f32 %v2132_v32 }
 0x3d6   :  { %v4155_v53 = vpop.eup %4154 }
 0x3d7   :  { %v2134_v13 = vmul.f32 %v4155_v53, %v2132_v32  ;;  %vm2140_vm7 = vweird.f32 %v4155_v53 }
 0x3d8   :  { %vm2141_vm9 = vmor %vm2139_vm8, %vm2140_vm7 }
 0x3d9   :  { %v2135_v14 = vmul.f32 %v4155_v53, %v2134_v13 }
 0x3db   :  { %v2136_v15 = vmul.f32 0.5, %v2135_v14 }
 0x3dd   :  { %v2137_v1 = vsub.f32 1.5, %v2136_v15 }
 0x3df   :  { %v2138_v23 = vmul.f32 %v4155_v53, %v2137_v1 }
 0x3e1   :  { %v2142_v30 = vsel %vm2141_vm9, %v4155_v53, %v2138_v23  ;;  %v2538_v53 = vand.u32 4294901760, %v2537_v42 }
 0x3e2   :  { %v2143_v29 = vmul.f32 %v2142_v30, %v2128_v45  ;;  %v2144_v17 = vmul.f32 %v2142_v30, %v2129_v27  ;;  %v2145_v20 = vmul.f32 %v2142_v30, %v2130_v52  ;;  %v2146_v14 = vmul.f32 %v2142_v30, %v2131_v51  ;;  %v5139_v51 = vld [vmem:[#allocation9_spill] sm:$0xff] }
 0x3e3   :  { %2539 = vmatpush.msra.mxu3 %v2538_v53 }
 0x3e4   :  { %v2148_v48 = vmul.f32 %v2147_v50, %v2143_v29  ;;  %v2149_v44 = vmul.f32 %v2147_v50, %v2144_v17  ;;  %v2150_v49 = vmul.f32 %v2147_v50, %v2145_v20  ;;  %v2151_v10 = vmul.f32 %v2147_v50, %v2146_v14 }
 0x3e6   :  { %v2153_v37 = vadd.f32 %v2152_v43, %v2148_v48  ;;  %v2154_v47 = vadd.f32 %v2152_v43, %v2149_v44  ;;  %v4727_v5 = vadd.f32 %v2152_v43, %v2150_v49  ;;  %v4756_v9 = vadd.f32 %v2152_v43, %v2151_v10  ;;  %v5140_v10 = vld [vmem:[#allocation11_spill] sm:$0xff] }
 0x3e8   :  { %v2162_v7 = vsel %vm1043_vm1, %v2153_v37, 0  ;;  %v2165_v32 = vsel %vm1043_vm1, %v2154_v47, 0  ;;  %v2168_v1 = vsel %vm1043_vm1, %v4727_v5, 0  ;;  %v2743_v27 = vand.u32 4294901760, %v2154_v47 }
 0x3e9   :  { %v4723_v13 = vand.u32 4294901760, %v2162_v7  ;;  %v4725_v19 = vand.u32 4294901760, %v2165_v32  ;;  %v4753_v50 = vand.u32 4294901760, %v2168_v1 }
 0x3ea   :  { %v4792_v52 = vsub.f32 %v2154_v47, %v2743_v27 }
 0x3eb   :  { %2263 = vmatmul.f32.vlgmr.msrb.gmra.mxu1 %v4723_v13  ;;  %v4731_v15 = vsub.f32 %v2162_v7, %v4723_v13  ;;  %v4739_v25 = vsub.f32 %v2165_v32, %v4725_v19  ;;  %v3117_v7 = vld [vmem:[#allocation2 + $0x70] sm:$0xff] }
 0x3ec   :  { %2615 = vmatpush.msrb.mxu1 %v4677_v8  ;;  %v2780_v22 = vand.u32 4294901760, %v4792_v52 }
 0x3ed   :  { %2305 = vmatmul.f32.vlgmr.msrb.gmra.mxu2 %v4731_v15  ;;  %v4736_v41 = vand.u32 4294901760, %v4731_v15  ;;  %v4751_v23 = vand.u32 4294901760, %v4739_v25 }
 0x3ee   :  { %2617 = vmatpush.msrb.mxu1 %v4683_v24  ;;  %2662 = vmatpush.msrb.mxu2 %v2518_v35  ;;  %v2781_v17 = vsub.f32 %v4792_v52, %v2780_v22 }
 0x3ef   :  { %2347 = vmatmul.f32.vlgmr.msrb.gmra.mxu3 %v4736_v41  ;;  %v2196_v31 = vsub.f32 %v4731_v15, %v4736_v41  ;;  %v2204_v35 = vsub.f32 %v4739_v25, %v4751_v23 }
 0x3f0   :  { %2619 = vmatpush.msrb.mxu1 %v4687_v18  ;;  %2666 = vmatpush.msrb.mxu2 %v2524_v33  ;;  %v2171_v33 = vsel %vm1043_vm1, %v4756_v9, 0  ;;  %v2782_v55 = vand.u32 4294901760, %v2781_v17  ;;  %v5144_v17 = vld [vmem:[#allocation14_spill] sm:$0xff] }
 0x3f1   :  { %v4748_v6 = vand.u32 4294901760, %v2196_v31  ;;  %2705 = vmatpush.msrb.mxu3 %v4677_v8  ;;  %v4767_v8 = vsub.f32 %v2168_v1, %v4753_v50 }
 0x3f2   :  { %2621 = vmatpush.msrb.mxu1 %v4698_v56  ;;  %2670 = vmatpush.msrb.mxu2 %v2530_v54 }
 0x3f3   :  { %2198 = vmatmul.f32.vlgmr.msrb.gmra.mxu0 %v4748_v6  ;;  %2267 = vmatmul.f32.gmra.mxu1 %v4725_v19  ;;  %v4780_v45 = vand.u32 4294901760, %v4767_v8 }
 0x3f4   :  { %2707 = vmatpush.msrb.mxu3 %v4683_v24  ;;  %2571 = vmatpush.msrb.mxu0 %v4681_v26  ;;  %v4775_v26 = vand.u32 4294901760, %v2171_v33  ;;  %v4777_v24 = vand.u32 4294901760, %v2204_v35  ;;  %v5141_v35 = vld [vmem:[#allocation13_spill] sm:$0xff] }
 0x3f5   :  { %2310 = vmatmul.f32.gmra.mxu2 %v4739_v25 }
 0x3f6   :  { %2674 = vmatpush.msrb.mxu2 %v2536_v21  ;;  %2709 = vmatpush.msrb.mxu3 %v4687_v18  ;;  %v2745_v18 = vand.u32 4294901760, %v2153_v37  ;;  %v2935_v21 = vand.u32 4294901760, %v4727_v5 }
 0x3f7   :  { %2353 = vmatmul.f32.gmra.mxu3 %v4751_v23  ;;  %2574 = vmatpush.msrb.mxu0 %v4690_v0  ;;  %v2212_v0 = vsub.f32 %v4767_v8, %v4780_v45 }
 0x3f8   :  { %2711 = vmatpush.msrb.mxu3 %v4698_v56  ;;  %v4790_v56 = vsub.f32 %v2171_v33, %v4775_v26 }
 0x3f9   :  { %2577 = vmatpush.msrb.mxu0 %v4708_v39  ;;  %v4795_v39 = vsub.f32 %v2153_v37, %v2745_v18  ;;  %v4797_v30 = vand.u32 4294901760, %v2212_v0 }
 0x3fa   :  { %v4800_v34 = vand.u32 4294901760, %v4790_v56 }
 0x3fb   :  { %2206 = vmatmul.f32.gmra.mxu0 %v4777_v24  ;;  %2271 = vmatmul.f32.gmra.mxu1 %v4753_v50 }
 0x3fc   :  { %2580 = vmatpush.msrb.mxu0 %v4713_v16  ;;  %v2786_v16 = vand.u32 4294901760, %v4795_v39  ;;  %v2220_v29 = vsub.f32 %v4790_v56, %v4800_v34 }
 0x3fd   :  { %2315 = vmatmul.f32.gmra.mxu2 %v4767_v8 }
 0x3fe   :  { %v2787_v20 = vsub.f32 %v4795_v39, %v2786_v16  ;;  %v4812_v43 = vand.u32 4294901760, %v2220_v29 }
 0x3ff   :  { %2359 = vmatmul.f32.gmra.mxu3 %v4780_v45 }
 0x400   :  { %v2788_v54 = vand.u32 4294901760, %v2787_v20  ;;  %v5145_v20 = vld [vmem:[#allocation23_spill] sm:$0xff] }
 0x403   :  { %2214 = vmatmul.f32.gmra.mxu0 %v4797_v30  ;;  %2275 = vmatmul.f32.gmra.mxu1 %v4775_v26 }
 0x405   :  { %2320 = vmatmul.f32.gmra.mxu2 %v4790_v56 }
 0x407   :  { %2365 = vmatmul.f32.gmra.mxu3 %v4800_v34 }
 0x40b   :  { %2222 = vmatmul.f32.gmra.mxu0 %v4812_v43  ;;  %2435 = vmatmul.f32.vlgmr.msra.gmra.mxu1 %v4723_v13 }
 0x40c   :  { %2783 = vmatpush.msra.mxu1 %v2782_v55  ;;  %v5146_v55 = vld [vmem:[#allocation18_spill] sm:$0xff] }
 0x40d   :  { %2476 = vmatmul.f32.vlgmr.msra.gmra.mxu2 %v4568_v2  ;;  %v2933_v2 = vand.u32 4294901760, %v4756_v9 }
 0x40e   :  { %2789 = vmatpush.msra.mxu1 %v2788_v54  ;;  %2815 = vmatpush.msra.mxu2 %v4792_v52 }
 0x40f   :  { %2541 = vmatmul.f32.vlgmr.msra.gmra.mxu3 %v4534_v60  ;;  %v2969_v48 = vsub.f32 %v4756_v9, %v2933_v2 }
 0x410   :  { %2818 = vmatpush.msra.mxu2 %v4795_v39  ;;  %2845 = vmatpush.msra.mxu3 %v2743_v27  ;;  %v5142_v39 = vld [vmem:[#allocation16_spill] sm:$0xff] }
 0x411   :  { %v2970_v44 = vand.u32 4294901760, %v2969_v48 }
 0x412   :  { %2847 = vmatpush.msra.mxu3 %v2745_v18 }
 0x413   :  { %2398 = vmatmul.f32.vlgmr.msra.gmra.mxu0 %v4723_v13  ;;  %2439 = vmatmul.f32.gmra.mxu1 %v4725_v19  ;;  %v2971_v46 = vsub.f32 %v2969_v48, %v2970_v44 }
 0x414   :  { %2744 = vmatpush.msra.mxu0 %v2743_v27 }
 0x415   :  { %2484 = vmatmul.f32.gmra.mxu2 %v4588_v40  ;;  %v2975_v40 = vsub.f32 %v4727_v5, %v2935_v21  ;;  %v2972_v49 = vand.u32 4294901760, %v2971_v46  ;;  %v3139_v5 = vand.u32 4294901760, %v3117_v7  ;;  %v5149_v46 = vld [vmem:[#allocation21_spill] sm:$0xff] }
 0x416   :  { %2746 = vmatpush.msra.mxu0 %v2745_v18 }
 0x417   :  { %2545 = vmatmul.f32.gmra.mxu3 %v4551_v36  ;;  %v3205_v9 = vsub.f32 %v3117_v7, %v3139_v5 }
 0x41b   :  { %2402 = vmatmul.f32.gmra.mxu0 %v4725_v19  ;;  %2443 = vmatmul.f32.gmra.mxu1 %v4753_v50 }
 0x41d   :  { %2492 = vmatmul.f32.gmra.mxu2 %v4604_v11  ;;  %v2976_v11 = vand.u32 4294901760, %v2975_v40 }
 0x41f   :  { %2549 = vmatmul.f32.gmra.mxu3 %v4573_v61  ;;  %v2977_v42 = vsub.f32 %v2975_v40, %v2976_v11 }
 0x423   :  { %2406 = vmatmul.f32.gmra.mxu0 %v4753_v50  ;;  %2447 = vmatmul.f32.gmra.mxu1 %v4775_v26 }
 0x425   :  { %2500 = vmatmul.f32.gmra.mxu2 %v4615_v63  ;;  %v2978_v63 = vand.u32 4294901760, %v2977_v42 }
 0x427   :  { %2553 = vmatmul.f32.gmra.mxu3 %v4593_v4 }
 0x42b   :  { %2410 = vmatmul.f32.gmra.mxu0 %v4775_v26  ;;  %2625 = vmatmul.f32.vlgmr.msrb.gmra.mxu1 %v4549_v58  ;;  %v5136_v58 = vld [vmem:[#allocation10_spill] sm:$0xff] }
 0x42c   :  { %2907 = vmatpush.msrb.mxu1 %v2743_v27 }
 0x42d   :  { %2676 = vmatmul.f32.vlgmr.msrb.gmra.mxu2 %v4534_v60 }
 0x42e   :  { %2909 = vmatpush.msrb.mxu1 %v2745_v18  ;;  %2934 = vmatpush.msrb.mxu2 %v2933_v2  ;;  %v3206_v18 = vand.u32 4294901760, %v3205_v9 }
 0x42f   :  { %2713 = vmatmul.f32.vlgmr.msrb.gmra.mxu3 %v4534_v60  ;;  %v5134_v60 = vld [vmem:[#allocation28_spill] sm:$0xff] }
 0x430   :  { %2936 = vmatpush.msrb.mxu2 %v2935_v21  ;;  %2973 = vmatpush.msrb.mxu3 %v2972_v49  ;;  %v3207_v52 = vsub.f32 %v3205_v9, %v3206_v18 }
 0x432   :  { %2979 = vmatpush.msrb.mxu3 %v2978_v63  ;;  %v3208_v29 = vand.u32 4294901760, %v3207_v52 }
 0x433   :  { %2583 = vmatmul.f32.vlgmr.msrb.gmra.mxu0 %v4542_v28  ;;  %2631 = vmatmul.f32.gmra.mxu1 %v4571_v59  ;;  %v5135_v28 = vld [vmem:[#allocation8_spill] sm:$0xff] }
 0x434   :  { %2878 = vmatpush.msrb.mxu0 %v2780_v22  ;;  %v5137_v59 = vld [vmem:[#allocation12_spill] sm:$0xff] }
 0x435   :  { %2680 = vmatmul.f32.gmra.mxu2 %v4551_v36 }
 0x436   :  { %2882 = vmatpush.msrb.mxu0 %v2786_v16  ;;  %v5143_v16 = vld [vmem:[#allocation22_spill] sm:$0xff] }
 0x437   :  { %2717 = vmatmul.f32.gmra.mxu3 %v4551_v36  ;;  %v3120_v36 = vld [vmem:[#allocation2 + $0x88] sm:$0xff] }
 0x43b   :  { %2588 = vmatmul.f32.gmra.mxu0 %v4560_v57  ;;  %2637 = vmatmul.f32.gmra.mxu1 %v4591_v3  ;;  %v3133_v57 = vand.u32 4294901760, %v3120_v36 }
 0x43d   :  { %2684 = vmatmul.f32.gmra.mxu2 %v4573_v61 }
 0x43f   :  { %2721 = vmatmul.f32.gmra.mxu3 %v4573_v61  ;;  %v3119_v61 = vld [vmem:[#allocation2 + $0x80] sm:$0xff] }
 0x440   :  { %v3135_v3 = vand.u32 4294901760, %v3119_v61 }
 0x442   :  { %v4860_v37 = vsub.f32 %v3119_v61, %v3135_v3 }
 0x443   :  { %2593 = vmatmul.f32.gmra.mxu0 %v4583_v62  ;;  %2643 = vmatmul.f32.gmra.mxu1 %v4607_v12  ;;  %v4857_v62 = vsub.f32 %v3120_v36, %v3133_v57 }
 0x444   :  { %v3194_v53 = vand.u32 4294901760, %v4860_v37 }
 0x445   :  { %2688 = vmatmul.f32.gmra.mxu2 %v4593_v4  ;;  %v3188_v12 = vand.u32 4294901760, %v4857_v62 }
 0x446   :  { %v3195_v1 = vsub.f32 %v4860_v37, %v3194_v53 }
 0x447   :  { %2725 = vmatmul.f32.gmra.mxu3 %v4593_v4  ;;  %v3118_v4 = vld [vmem:[#allocation2 + $0x78] sm:$0xff]  ;;  %v3189_v32 = vsub.f32 %v4857_v62, %v3188_v12 }
 0x448   :  { %v3137_v47 = vand.u32 4294901760, %v3118_v4  ;;  %v3196_v0 = vand.u32 4294901760, %v3195_v1 }
 0x449   :  { %v3190_v33 = vand.u32 4294901760, %v3189_v32 }
 0x44a   :  { %v3199_v14 = vsub.f32 %v3118_v4, %v3137_v47 }
 0x44b   :  { %2598 = vmatmul.f32.gmra.mxu0 %v5134_v60  ;;  %4116 = vmatmul.msk.f32.vlgmr.msra.gmra.mxu1 %vm48_vm0, %v5135_v28 }
 0x44c   :  { %3035 = vmatpush.msra.mxu1 %v2933_v2  ;;  %v3200_v31 = vand.u32 4294901760, %v3199_v14 }
 0x44d   :  { %2821 = vmatmul.f32.vlgmr.msra.gmra.mxu2 %v5136_v58 }
 0x44e   :  { %3037 = vmatpush.msra.mxu1 %v2935_v21  ;;  %3068 = vmatpush.msra.mxu2 %v2970_v44  ;;  %v3201_v27 = vsub.f32 %v3199_v14, %v3200_v31 }
 0x44f   :  { %2851 = vmatmul.f32.vlgmr.msra.gmra.mxu3 %v5137_v59 }
 0x450   :  { %3072 = vmatpush.msra.mxu2 %v2976_v11  ;;  %3097 = vmatpush.msra.mxu3 %v2933_v2  ;;  %v3202_v22 = vand.u32 4294901760, %v3201_v27  ;;  %v5147_v2 = vld [vmem:[#allocation19_spill] sm:$0xff]  ;;  %v5148_v11 = vld [vmem:[#allocation17_spill] sm:$0xff] }
 0x452   :  { %3099 = vmatpush.msra.mxu3 %v2935_v21 }
 0x453   :  { %2752 = vmatmul.f32.vlgmr.msra.gmra.mxu0 %v5138_v38  ;;  %4117 = vmatmul.msk.f32.gmra.mxu1 %vm48_vm0, %v5139_v51 }
 0x454   :  { %3005 = vmatpush.msra.mxu0 %v2969_v48 }
 0x455   :  { %2826 = vmatmul.f32.gmra.mxu2 %v5140_v10 }
 0x456   :  { %3008 = vmatpush.msra.mxu0 %v2975_v40 }
 0x457   :  { %2857 = vmatmul.f32.gmra.mxu3 %v5141_v35 }
 0x45b   :  { %2760 = vmatmul.f32.gmra.mxu0 %v5142_v39  ;;  %4120 = vmatmul.msk.f32.vlgmr.msrb.gmra.mxu1 %vm48_vm0, %v5135_v28  ;;  %v3116_v39 = vld [vmem:[#allocation2 + $0x68] sm:$0xff] }
 0x45c   :  { %3191 = vmatpush.msrb.mxu1 %v3190_v33 }
 0x45d   :  { %2942 = vmatmul.f32.vlgmr.msrb.gmra.mxu2 %v5143_v16  ;;  %v3115_v16 = vld [vmem:[#allocation2 + $0x60] sm:$0xff] }
 0x45e   :  { %3197 = vmatpush.msrb.mxu1 %v3196_v0  ;;  %3241 = vmatpush.msrb.mxu2 %v4857_v62 }
 0x45f   :  { %4122 = vmatmul.msk.f32.vlgmr.msrb.gmra.mxu3 %vm48_vm0, %v5144_v17 }
 0x460   :  { %3203 = vmatpush.msrb.mxu1 %v3202_v22  ;;  %3244 = vmatpush.msrb.mxu2 %v4860_v37  ;;  %v4971_v22 = vand.u32 4294901760, %v3116_v39 }
 0x461   :  { %3285 = vmatpush.msrb.mxu3 %v3133_v57 }
 0x462   :  { %3209 = vmatpush.msrb.mxu1 %v3208_v29  ;;  %3247 = vmatpush.msrb.mxu2 %v3199_v14 }
 0x463   :  { %4118 = vmatmul.msk.f32.vlgmr.msrb.gmra.mxu0 %vm48_vm0, %v5135_v28  ;;  %4121 = vmatmul.msk.f32.gmra.mxu1 %vm48_vm0, %v5139_v51  ;;  %v5150_v28 = vld [vmem:[#allocation20_spill] sm:$0xff] }
 0x464   :  { %3287 = vmatpush.msrb.mxu3 %v3135_v3  ;;  %3134 = vmatpush.msrb.mxu0 %v3133_v57 }
 0x465   :  { %2950 = vmatmul.f32.gmra.mxu2 %v5145_v20  ;;  %v3425_v20 = vand.u32 4294901760, %v3115_v16 }
 0x466   :  { %3250 = vmatpush.msrb.mxu2 %v3205_v9  ;;  %3289 = vmatpush.msrb.mxu3 %v3137_v47 }
 0x467   :  { %4123 = vmatmul.msk.f32.gmra.mxu3 %vm48_vm0, %v5146_v55  ;;  %3136 = vmatpush.msrb.mxu0 %v3135_v3 }
 0x468   :  { %v4885_v54 = vpop.f32.mrf.mxu1  ;;  %3291 = vmatpush.msrb.mxu3 %v3139_v5 }
 0x469   :  { %3138 = vmatpush.msrb.mxu0 %v3137_v47 }
 0x46b   :  { %4119 = vmatmul.msk.f32.gmra.mxu0 %vm48_vm0, %v5139_v51  ;;  %3041 = vmatmul.f32.vlgmr.msra.gmra.mxu1 %v5147_v2 }
 0x46c   :  { %3140 = vmatpush.msrb.mxu0 %v3139_v5  ;;  %3375 = vmatpush.msra.mxu1 %v3133_v57 }
 0x46d   :  { %4124 = vmatmul.msk.f32.vlgmr.msra.gmra.mxu2 %vm48_vm0, %v5144_v17 }
 0x46e   :  { %3377 = vmatpush.msra.mxu1 %v3135_v3  ;;  %3424 = vmatpush.msra.mxu2 %v4971_v22 }
 0x46f   :  { %4126 = vmatmul.msk.f32.vlgmr.msra.gmra.mxu3 %vm48_vm0, %v5144_v17  ;;  %v3477_v17 = vsub.f32 %v3116_v39, %v4971_v22 }
 0x470   :  { %v4894_v21 = vpop.f32.mrf.mxu0  ;;  %v4896_v48 = vpop.f32.mrf.mxu1  ;;  %3379 = vmatpush.msra.mxu1 %v3137_v47  ;;  %3426 = vmatpush.msra.mxu2 %v3425_v20 }
 0x471   :  { %v4898_v40 = vpop.f32.mrf.mxu2 }
 0x472   :  { %v4900_v44 = vpop.f32.mrf.mxu3  ;;  %3381 = vmatpush.msra.mxu1 %v3139_v5 }
 0x473   :  { %3011 = vmatmul.f32.vlgmr.msra.gmra.mxu0 %v5148_v11  ;;  %3047 = vmatmul.f32.gmra.mxu1 %v5149_v46  ;;  %v3114_v11 = vld [vmem:[#allocation2 + $0x58] sm:$0xff] }
 0x474   :  { %3332 = vmatpush.msra.mxu0 %v3188_v12 }
 0x475   :  { %4125 = vmatmul.msk.f32.gmra.mxu2 %vm48_vm0, %v5146_v55 }
 0x476   :  { %3336 = vmatpush.msra.mxu0 %v3194_v53 }
 0x477   :  { %4127 = vmatmul.msk.f32.gmra.mxu3 %vm48_vm0, %v5146_v55 }
 0x478   :  { %v4908_v42 = vpop.f32.mrf.mxu0  ;;  %v2272_v49 = vpop.f32.mrf.mxu1  ;;  %3340 = vmatpush.msra.mxu0 %v3200_v31 }
 0x479   :  { %v4910_v63 = vpop.f32.mrf.mxu2 }
 0x47a   :  { %v4912_v60 = vpop.f32.mrf.mxu3  ;;  %3344 = vmatpush.msra.mxu0 %v3206_v18 }
 0x47b   :  { %3016 = vmatmul.f32.gmra.mxu0 %v5150_v28  ;;  %3211 = vmatmul.f32.vlgmr.msrb.gmra.mxu1 %v4723_v13  ;;  %v3478_v28 = vand.u32 4294901760, %v3477_v17 }
 0x47c   :  { %3575 = vmatpush.msrb.mxu1 %v4971_v22 }
 0x47d   :  { %3253 = vmatmul.f32.vlgmr.msrb.gmra.mxu2 %v4731_v15 }
 0x47e   :  { %3577 = vmatpush.msrb.mxu1 %v3425_v20 }
 0x47f   :  { %3295 = vmatmul.f32.vlgmr.msrb.gmra.mxu3 %v4736_v41 }
 0x480   :  { %v2215_v58 = vpop.f32.mrf.mxu0  ;;  %v2276_v36 = vpop.f32.mrf.mxu1 }
 0x481   :  { %v2316_v57 = vpop.f32.mrf.mxu2  ;;  %v2273_v38 = vadd.f32 %v2272_v49, %v2215_v58  ;;  %v3427_v58 = vand.u32 4294901760, %v3114_v11 }
 0x482   :  { %v2360_v59 = vpop.f32.mrf.mxu3 }
 0x483   :  { %3146 = vmatmul.f32.vlgmr.msrb.gmra.mxu0 %v4748_v6  ;;  %3215 = vmatmul.f32.gmra.mxu1 %v4725_v19 }
 0x484   :  { %3531 = vmatpush.msrb.mxu0 %v3477_v17  ;;  %3579 = vmatpush.msrb.mxu1 %v3427_v58 }
 0x485   :  { %3258 = vmatmul.f32.gmra.mxu2 %v4739_v25 }
 0x486   :  { %3428 = vmatpush.msra.mxu2 %v3427_v58 }
 0x487   :  { %3301 = vmatmul.f32.gmra.mxu3 %v4751_v23 }
 0x488   :  { %v2223_v61 = vpop.f32.mrf.mxu0  ;;  %v4922_v62 = vpop.f32.mrf.mxu1 }
 0x489   :  { %v2321_v3 = vpop.f32.mrf.mxu2  ;;  %v2277_v32 = vadd.f32 %v2276_v36, %v2223_v61 }
 0x48a   :  { %v2366_v4 = vpop.f32.mrf.mxu3 }
 0x48b   :  { %3154 = vmatmul.f32.gmra.mxu0 %v4777_v24  ;;  %3219 = vmatmul.f32.gmra.mxu1 %v4753_v50  ;;  %v2322_v31 = vadd.f32 %v2321_v3, %v2277_v32  ;;  %v3479_v3 = vsub.f32 %v3477_v17, %v3478_v28 }
 0x48d   :  { %3263 = vmatmul.f32.gmra.mxu2 %v4767_v8  ;;  %v2367_v9 = vadd.f32 %v2366_v4, %v2322_v31 }
 0x48f   :  { %3307 = vmatmul.f32.gmra.mxu3 %v4780_v45 }
 0x490   :  { %v4928_v15 = vpop.f32.mrf.mxu0  ;;  %v4930_v41 = vpop.f32.mrf.mxu1 }
 0x491   :  { %v4932_v25 = vpop.f32.mrf.mxu2 }
 0x492   :  { %v4934_v6 = vpop.f32.mrf.mxu3 }
 0x493   :  { %3162 = vmatmul.f32.gmra.mxu0 %v4797_v30  ;;  %3223 = vmatmul.f32.gmra.mxu1 %v4775_v26 }
 0x495   :  { %3268 = vmatmul.f32.gmra.mxu2 %v4790_v56 }
 0x497   :  { %3313 = vmatmul.f32.gmra.mxu3 %v4800_v34 }
 0x498   :  { %v4940_v23 = vpop.f32.mrf.mxu0  ;;  %v2444_v8 = vpop.f32.mrf.mxu1 }
 0x499   :  { %v4942_v24 = vpop.f32.mrf.mxu2 }
 0x49a   :  { %v4944_v45 = vpop.f32.mrf.mxu3 }
 0x49b   :  { %3170 = vmatmul.f32.gmra.mxu0 %v4812_v43  ;;  %3383 = vmatmul.f32.vlgmr.msra.gmra.mxu1 %v4723_v13  ;;  %v2317_v43 = vadd.f32 %v2316_v57, %v2273_v38 }
 0x49d   :  { %v2361_v5 = vadd.f32 %v2360_v59, %v2317_v43  ;;  %v3113_v59 = vld [vmem:[#allocation2 + $0x50] sm:$0xff] }
 0x4a0   :  { %v2407_v12 = vpop.f32.mrf.mxu0  ;;  %v2448_v37 = vpop.f32.mrf.mxu1 }
 0x4a1   :  { %v2493_v30 = vpop.f32.mrf.mxu2  ;;  %v2408_v1 = vadd.f32 %v2407_v12, %v2361_v5  ;;  %v3429_v12 = vand.u32 4294901760, %v3113_v59 }
 0x4a2   :  { %v2550_v47 = vpop.f32.mrf.mxu3 }
 0x4a3   :  { %3346 = vmatmul.f32.vlgmr.msra.gmra.mxu0 %v4723_v13  ;;  %3387 = vmatmul.f32.gmra.mxu1 %v4725_v19  ;;  %v3495_v38 = vsub.f32 %v3113_v59, %v3429_v12 }
 0x4a4   :  { %3581 = vmatpush.msrb.mxu1 %v3429_v12  ;;  %3430 = vmatpush.msra.mxu2 %v3429_v12 }
 0x4a6   :  { %3622 = vmatpush.msrb.mxu2 %v3478_v28 }
 0x4a8   :  { %v2411_v56 = vpop.f32.mrf.mxu0  ;;  %v4950_v34 = vpop.f32.mrf.mxu1 }
 0x4a9   :  { %v2501_v51 = vpop.f32.mrf.mxu2  ;;  %v2412_v18 = vadd.f32 %v2411_v56, %v2367_v9 }
 0x4aa   :  { %v2554_v7 = vpop.f32.mrf.mxu3 }
 0x4ab   :  { %3350 = vmatmul.f32.gmra.mxu0 %v4725_v19  ;;  %3391 = vmatmul.f32.gmra.mxu1 %v4753_v50  ;;  %v2445_v19 = vadd.f32 %v2444_v8, %v2408_v1  ;;  %v3489_v8 = vsub.f32 %v3114_v11, %v3427_v58 }
 0x4ad   :  { %v2494_v52 = vadd.f32 %v2493_v30, %v2445_v19  ;;  %v3480_v30 = vand.u32 4294901760, %v3479_v3  ;;  %v3490_v56 = vand.u32 4294901760, %v3489_v8  ;;  %v3496_v19 = vand.u32 4294901760, %v3495_v38 }
 0x4af   :  { %v2551_v29 = vadd.f32 %v2550_v47, %v2494_v52  ;;  %3481 = vmatpush.msra.mxu3 %v3480_v30  ;;  %v3491_v5 = vsub.f32 %v3489_v8, %v3490_v56  ;;  %v3497_v39 = vsub.f32 %v3495_v38, %v3496_v19 }
 0x4b0   :  { %v4954_v53 = vpop.f32.mrf.mxu0  ;;  %v4956_v14 = vpop.f32.mrf.mxu1 }
 0x4b1   :  { %5151 = vst [vmem:[#allocation28_spill] sm:$0xff] %v4956_v14  ;;  %v4958_v13 = vpop.f32.mrf.mxu2 }
 0x4b2   :  { %5152 = vst [vmem:[#allocation8_spill] sm:$0xff] %v4958_v13  ;;  %v4960_v10 = vpop.f32.mrf.mxu3 }
 0x4b3   :  { %5153 = vst [vmem:[#allocation10_spill] sm:$0xff] %v4960_v10  ;;  %3354 = vmatmul.f32.gmra.mxu0 %v4753_v50  ;;  %3395 = vmatmul.f32.gmra.mxu1 %v4775_v26  ;;  %v2449_v50 = vadd.f32 %v2448_v37, %v2412_v18  ;;  %v3492_v18 = vand.u32 4294901760, %v3491_v5 }
 0x4b5   :  { %v2502_v36 = vadd.f32 %v2501_v51, %v2449_v50 }
 0x4b7   :  { %v2555_v51 = vadd.f32 %v2554_v7, %v2502_v36  ;;  %v3498_v7 = vand.u32 4294901760, %v3497_v39 }
 0x4b8   :  { %v4964_v35 = vpop.f32.mrf.mxu0  ;;  %v2638_v33 = vpop.f32.mrf.mxu1 }
 0x4b9   :  { %5154 = vst [vmem:[#allocation12_spill] sm:$0xff] %v4964_v35  ;;  %v4966_v27 = vpop.f32.mrf.mxu2 }
 0x4ba   :  { %5155 = vst [vmem:[#allocation15_spill] sm:$0xff] %v4966_v27  ;;  %v4968_v0 = vpop.f32.mrf.mxu3 }
 0x4bb   :  { %5156 = vst [vmem:[#allocation9_spill] sm:$0xff] %v4968_v0  ;;  %3358 = vmatmul.f32.gmra.mxu0 %v4775_v26  ;;  %v3483_v26 = vsub.f32 %v3115_v16, %v3425_v20 }
 0x4bd   :  { %v3484_v4 = vand.u32 4294901760, %v3483_v26  ;;  %3534 = vmatpush.msrb.mxu0 %v3483_v26 }
 0x4bf   :  { %v3485_v47 = vsub.f32 %v3483_v26, %v3484_v4  ;;  %3537 = vmatpush.msrb.mxu0 %v3489_v8  ;;  %3626 = vmatpush.msrb.mxu2 %v3484_v4 }
 0x4c0   :  { %v2594_v55 = vpop.f32.mrf.mxu0  ;;  %v2644_v2 = vpop.f32.mrf.mxu1 }
 0x4c1   :  { %v2595_v46 = vadd.f32 %v2594_v55, %v2551_v29  ;;  %v2685_v49 = vpop.f32.mrf.mxu2  ;;  %v3486_v32 = vand.u32 4294901760, %v3485_v47  ;;  %3540 = vmatpush.msrb.mxu0 %v3495_v38  ;;  %3630 = vmatpush.msrb.mxu2 %v3490_v56  ;;  %v5159_v56 = vld [vmem:[#allocation24_spill] sm:$0xff] }
 0x4c2   :  { %v2722_v57 = vpop.f32.mrf.mxu3 }
 0x4c3   :  { %v2639_v61 = vadd.f32 %v2638_v33, %v2595_v46  ;;  %3487 = vmatpush.msra.mxu3 %v3486_v32  ;;  %3634 = vmatpush.msrb.mxu2 %v3496_v19 }
 0x4c5   :  { %v2686_v37 = vadd.f32 %v2685_v49, %v2639_v61  ;;  %3493 = vmatpush.msra.mxu3 %v3492_v18  ;;  %v5160_v18 = vld [vmem:[#allocation25_spill] sm:$0xff] }
 0x4c7   :  { %v4976_v43 = vadd.f32 %v2722_v57, %v2686_v37  ;;  %3499 = vmatpush.msra.mxu3 %v3498_v7 }
 0x4c8   :  { %v2599_v1 = vpop.f32.mrf.mxu0  ;;  %v2792_v31 = vpop.f32.mrf.mxu1 }
 0x4c9   :  { %5157 = vst [vmem:[#allocation11_spill] sm:$0xff] %v4976_v43  ;;  %v2600_v9 = vadd.f32 %v2599_v1, %v2555_v51  ;;  %v2689_v33 = vpop.f32.mrf.mxu2  ;;  %3665 = vmatpush.msrb.mxu3 %v4971_v22 }
 0x4ca   :  { %v2726_v52 = vpop.f32.mrf.mxu3 }
 0x4cb   :  { %v2645_v50 = vadd.f32 %v2644_v2, %v2600_v9  ;;  %3667 = vmatpush.msrb.mxu3 %v3425_v20 }
 0x4cd   :  { %v2690_v16 = vadd.f32 %v2689_v33, %v2645_v50  ;;  %3669 = vmatpush.msrb.mxu3 %v3427_v58 }
 0x4cf   :  { %v4978_v29 = vadd.f32 %v2726_v52, %v2690_v16  ;;  %3671 = vmatpush.msrb.mxu3 %v3429_v12 }
 0x4d0   :  { %v2753_v17 = vpop.f32.mrf.mxu0  ;;  %v2796_v55 = vpop.f32.mrf.mxu1 }
 0x4d1   :  { %5158 = vst [vmem:[#allocation13_spill] sm:$0xff] %v4978_v29  ;;  %v2822_v11 = vpop.f32.mrf.mxu2  ;;  %v2793_v49 = vadd.f32 %v2792_v31, %v2753_v17 }
 0x4d2   :  { %v2852_v46 = vpop.f32.mrf.mxu3 }
 0x4d3   :  { %v2823_v57 = vadd.f32 %v2822_v11, %v2793_v49 }
 0x4d5   :  { %v2853_v59 = vadd.f32 %v2852_v46, %v2823_v57 }
 0x4d8   :  { %v2761_v28 = vpop.f32.mrf.mxu0  ;;  %v2912_v2 = vpop.f32.mrf.mxu1 }
 0x4d9   :  { %v2827_v26 = vpop.f32.mrf.mxu2  ;;  %v2797_v61 = vadd.f32 %v2796_v55, %v2761_v28 }
 0x4da   :  { %v2858_v36 = vpop.f32.mrf.mxu3 }
 0x4db   :  { %v2828_v30 = vadd.f32 %v2827_v26, %v2797_v61 }
 0x4dd   :  { %v2859_v38 = vadd.f32 %v2858_v36, %v2828_v30 }
 0x4e0   :  { %v2885_v3 = vpop.f32.mrf.mxu0  ;;  %v2916_v37 = vpop.f32.mrf.mxu1 }
 0x4e1   :  { %v2886_v4 = vadd.f32 %v2885_v3, %v2853_v59  ;;  %v2943_v8 = vpop.f32.mrf.mxu2 }
 0x4e2   :  { %v2982_v22 = vpop.f32.mrf.mxu3 }
 0x4e3   :  { %v2913_v47 = vadd.f32 %v2912_v2, %v2886_v4  ;;  %v2983_v50 = vadd.f32 %v2982_v22, %v2943_v8 }
 0x4e5   :  { %v3109_v20 = vmul.f32 %v2913_v47, %v5159_v56 }
 0x4e7   :  { %v3400_v58 = vsel %vm1043_vm1, %v3109_v20, 0 }
 0x4e8   :  { %v4983_v12 = vand.u32 4294901760, %v3400_v58  ;;  %v2889_v51 = vpop.f32.mrf.mxu0  ;;  %v3042_v33 = vpop.f32.mrf.mxu1 }
 0x4e9   :  { %v2890_v32 = vadd.f32 %v2889_v51, %v2859_v38  ;;  %v2951_v5 = vpop.f32.mrf.mxu2 }
 0x4ea   :  { %v3432_v1 = vsub.f32 %v3400_v58, %v4983_v12  ;;  %v2986_v31 = vpop.f32.mrf.mxu3  ;;  %3501 = vmatmul.f32.vlgmr.msra.gmra.mxu3 %v4983_v12 }
 0x4eb   :  { %v2917_v19 = vadd.f32 %v2916_v37, %v2890_v32  ;;  %v2987_v61 = vadd.f32 %v2986_v31, %v2951_v5  ;;  %v5161_v37 = vld [vmem:[#allocation26_spill] sm:$0xff]  ;;  %v5162_v31 = vld [vmem:[#allocation27_spill] sm:$0xff] }
 0x4ec   :  { %v3433_v9 = vand.u32 4294901760, %v3432_v1  ;;  %3543 = vmatmul.f32.vlgmr.msrb.gmra.mxu0 %v3432_v1 }
 0x4ed   :  { %v3110_v52 = vmul.f32 %v2917_v19, %v5160_v18 }
 0x4ee   :  { %v3434_v39 = vsub.f32 %v3432_v1, %v3433_v9  ;;  %3585 = vmatmul.f32.vlgmr.msrb.gmra.mxu1 %v3433_v9 }
 0x4ef   :  { %v3403_v7 = vsel %vm1043_vm1, %v3110_v52, 0 }
 0x4f0   :  { %v3012_v16 = vpop.f32.mrf.mxu0  ;;  %v3435_v17 = vand.u32 4294901760, %v3434_v39  ;;  %v3439_v55 = vand.u32 4294901760, %v3403_v7  ;;  %v3048_v57 = vpop.f32.mrf.mxu1 }
 0x4f1   :  { %v3013_v11 = vadd.f32 %v3012_v16, %v2983_v50  ;;  %v3075_v46 = vpop.f32.mrf.mxu2 }
 0x4f2   :  { %v3102_v49 = vpop.f32.mrf.mxu3  ;;  %3436 = vmatmul.f32.vlgmr.msra.gmra.mxu2 %v3435_v17  ;;  %3505 = vmatmul.f32.gmra.mxu3 %v3439_v55  ;;  %v3440_v28 = vsub.f32 %v3403_v7, %v3439_v55 }
 0x4f3   :  { %v3043_v2 = vadd.f32 %v3042_v33, %v3013_v11 }
 0x4f4   :  { %3548 = vmatmul.f32.gmra.mxu0 %v3440_v28  ;;  %v3441_v26 = vand.u32 4294901760, %v3440_v28 }
 0x4f5   :  { %v3076_v36 = vadd.f32 %v3075_v46, %v3043_v2 }
 0x4f6   :  { %3591 = vmatmul.f32.gmra.mxu1 %v3441_v26  ;;  %v3442_v59 = vsub.f32 %v3440_v28, %v3441_v26 }
 0x4f7   :  { %v3103_v3 = vadd.f32 %v3102_v49, %v3076_v36 }
 0x4f8   :  { %v3017_v4 = vpop.f32.mrf.mxu0  ;;  %v3443_v8 = vand.u32 4294901760, %v3442_v59  ;;  %v3212_v19 = vpop.f32.mrf.mxu1 }
 0x4f9   :  { %v3111_v22 = vmul.f32 %v3103_v3, %v5161_v37  ;;  %v3018_v30 = vadd.f32 %v3017_v4, %v2987_v61  ;;  %v3079_v47 = vpop.f32.mrf.mxu2 }
 0x4fa   :  { %v3106_v56 = vpop.f32.mrf.mxu3  ;;  %3444 = vmatmul.f32.gmra.mxu2 %v3443_v8 }
 0x4fb   :  { %v3406_v20 = vsel %vm1043_vm1, %v3111_v22, 0  ;;  %v3049_v38 = vadd.f32 %v3048_v57, %v3018_v30 }
 0x4fc   :  { %v3447_v58 = vand.u32 4294901760, %v3406_v20 }
 0x4fd   :  { %v3080_v51 = vadd.f32 %v3079_v47, %v3049_v38 }
 0x4fe   :  { %3509 = vmatmul.f32.gmra.mxu3 %v3447_v58  ;;  %v3448_v32 = vsub.f32 %v3406_v20, %v3447_v58 }
 0x4ff   :  { %v3107_v1 = vadd.f32 %v3106_v56, %v3080_v51 }
 0x500   :  { %v3147_v9 = vpop.f32.mrf.mxu0  ;;  %3553 = vmatmul.f32.gmra.mxu0 %v3448_v32  ;;  %v3449_v5 = vand.u32 4294901760, %v3448_v32  ;;  %v3216_v57 = vpop.f32.mrf.mxu1 }
 0x501   :  { %v3112_v33 = vmul.f32 %v3107_v1, %v5162_v31  ;;  %v3213_v18 = vadd.f32 %v3212_v19, %v3147_v9  ;;  %v3254_v52 = vpop.f32.mrf.mxu2 }
 0x502   :  { %3597 = vmatmul.f32.gmra.mxu1 %v3449_v5  ;;  %v3450_v39 = vsub.f32 %v3448_v32, %v3449_v5  ;;  %v3296_v17 = vpop.f32.mrf.mxu3 }
 0x503   :  { %v3409_v50 = vsel %vm1043_vm1, %v3112_v33, 0  ;;  %v3255_v7 = vadd.f32 %v3254_v52, %v3213_v18 }
 0x504   :  { %v3455_v16 = vand.u32 4294901760, %v3409_v50  ;;  %v3451_v11 = vand.u32 4294901760, %v3450_v39 }
 0x505   :  { %v3297_v46 = vadd.f32 %v3296_v17, %v3255_v7 }
 0x506   :  { %3452 = vmatmul.f32.gmra.mxu2 %v3451_v11  ;;  %3513 = vmatmul.f32.gmra.mxu3 %v3455_v16  ;;  %v3456_v49 = vsub.f32 %v3409_v50, %v3455_v16 }
 0x508   :  { %3558 = vmatmul.f32.gmra.mxu0 %v3456_v49  ;;  %v3457_v28 = vand.u32 4294901760, %v3456_v49  ;;  %v3155_v36 = vpop.f32.mrf.mxu0  ;;  %v3220_v3 = vpop.f32.mrf.mxu1 }
 0x509   :  { %v3259_v4 = vpop.f32.mrf.mxu2  ;;  %v3217_v31 = vadd.f32 %v3216_v57, %v3155_v36 }
 0x50a   :  { %3603 = vmatmul.f32.gmra.mxu1 %v3457_v28  ;;  %v3458_v2 = vsub.f32 %v3456_v49, %v3457_v28  ;;  %v3302_v59 = vpop.f32.mrf.mxu3 }
 0x50b   :  { %v3260_v18 = vadd.f32 %v3259_v4, %v3217_v31 }
 0x50c   :  { %v3459_v26 = vand.u32 4294901760, %v3458_v2 }
 0x50d   :  { %v3303_v7 = vadd.f32 %v3302_v59, %v3260_v18 }
 0x50e   :  { %3460 = vmatmul.f32.gmra.mxu2 %v3459_v26  ;;  %3673 = vmatmul.f32.vlgmr.msrb.gmra.mxu3 %v4983_v12 }
 0x510   :  { %v3163_v61 = vpop.f32.mrf.mxu0  ;;  %v3224_v22 = vpop.f32.mrf.mxu1 }
 0x511   :  { %v3264_v30 = vpop.f32.mrf.mxu2 }
 0x512   :  { %v3308_v8 = vpop.f32.mrf.mxu3 }
 0x516   :  { %3636 = vmatmul.f32.vlgmr.msrb.gmra.mxu2 %v4983_v12  ;;  %3677 = vmatmul.f32.gmra.mxu3 %v3439_v55 }
 0x518   :  { %v3171_v37 = vpop.f32.mrf.mxu0  ;;  %v3384_v20 = vpop.f32.mrf.mxu1 }
 0x519   :  { %v3269_v12 = vpop.f32.mrf.mxu2  ;;  %v3225_v0 = vadd.f32 %v3224_v22, %v3171_v37 }
 0x51a   :  { %v3314_v47 = vpop.f32.mrf.mxu3 }
 0x51b   :  { %v3270_v4 = vadd.f32 %v3269_v12, %v3225_v0 }
 0x51e   :  { %3640 = vmatmul.f32.gmra.mxu2 %v3439_v55  ;;  %3681 = vmatmul.f32.gmra.mxu3 %v3447_v58 }
 0x520   :  { %v3347_v56 = vpop.f32.mrf.mxu0  ;;  %v3388_v51 = vpop.f32.mrf.mxu1 }
 0x521   :  { %v3348_v28 = vadd.f32 %v3347_v56, %v3297_v46 }
 0x523   :  { %v3385_v27 = vadd.f32 %v3384_v20, %v3348_v28 }
 0x526   :  { %3644 = vmatmul.f32.gmra.mxu2 %v3447_v58  ;;  %3685 = vmatmul.f32.gmra.mxu3 %v3455_v16 }
 0x528   :  { %v3351_v55 = vpop.f32.mrf.mxu0  ;;  %v3392_v19 = vpop.f32.mrf.mxu1 }
 0x529   :  { %v3352_v17 = vadd.f32 %v3351_v55, %v3303_v7 }
 0x52b   :  { %v3389_v26 = vadd.f32 %v3388_v51, %v3352_v17 }
 0x52e   :  { %3648 = vmatmul.f32.gmra.mxu2 %v3455_v16  ;;  %v3221_v16 = vadd.f32 %v3220_v3, %v3163_v61  ;;  %v3315_v3 = vadd.f32 %v3314_v47, %v3270_v4 }
 0x530   :  { %v3355_v1 = vpop.f32.mrf.mxu0  ;;  %v3396_v39 = vpop.f32.mrf.mxu1  ;;  %v3265_v49 = vadd.f32 %v3264_v30, %v3221_v16 }
 0x532   :  { %v3309_v43 = vadd.f32 %v3308_v8, %v3265_v49 }
 0x534   :  { %v3356_v36 = vadd.f32 %v3355_v1, %v3309_v43 }
 0x536   :  { %v3393_v61 = vadd.f32 %v3392_v19, %v3356_v36 }
 0x538   :  { %v3359_v33 = vpop.f32.mrf.mxu0 }
 0x539   :  { %v3360_v56 = vadd.f32 %v3359_v33, %v3315_v3 }
 0x569   :  { %v3544_v11 = vpop.f32.mrf.mxu0 }
 0x56b   :  { %v3586_v29 = vpop.f32.mrf.mxu1 }
 0x56d   :  { %v3502_v38 = vpop.f32.mrf.mxu3 }
 0x571   :  { %v3549_v35 = vpop.f32.mrf.mxu0 }
 0x573   :  { %v3592_v46 = vpop.f32.mrf.mxu1 }
 0x575   :  { %v3437_v58 = vpop.f32.mrf.mxu2  ;;  %v3506_v32 = vpop.f32.mrf.mxu3 }
 0x576   :  { %v3438_v57 = vadd.f32 %v3437_v58, %v3385_v27 }
 0x578   :  { %v3503_v59 = vadd.f32 %v3502_v38, %v3438_v57 }
 0x57a   :  { %v3545_v51 = vadd.f32 %v3544_v11, %v3503_v59 }
 0x57c   :  { %v3587_v43 = vadd.f32 %v3586_v29, %v3545_v51 }
 0x57d   :  { %v3445_v9 = vpop.f32.mrf.mxu2  ;;  %v3554_v22 = vpop.f32.mrf.mxu0 }
 0x57e   :  { %v3446_v14 = vadd.f32 %v3445_v9, %v3389_v26  ;;  %v3397_v9 = vadd.f32 %v3396_v39, %v3360_v56 }
 0x57f   :  { %v3598_v58 = vpop.f32.mrf.mxu1 }
 0x580   :  { %v3507_v31 = vadd.f32 %v3506_v32, %v3446_v14 }
 0x581   :  { %v3510_v5 = vpop.f32.mrf.mxu3 }
 0x582   :  { %v3550_v30 = vadd.f32 %v3549_v35, %v3507_v31  ;;  %v4998_v35 = vld [vmem:[%s5080_s3] sm:$0xff] }
 0x583   :  { %v3689_v1 = vperm.slane %v4998_v35, 6 }
 0x584   :  { %v3593_v37 = vadd.f32 %v3592_v46, %v3550_v30 }
 0x585   :  { %v3559_v39 = vpop.f32.mrf.mxu0 }
 0x589   :  { %v3453_v52 = vpop.f32.mrf.mxu2  ;;  %v3514_v50 = vpop.f32.mrf.mxu3 }
 0x58a   :  { %v3454_v55 = vadd.f32 %v3453_v52, %v3393_v61 }
 0x58c   :  { %v3511_v8 = vadd.f32 %v3510_v5, %v3454_v55 }
 0x58e   :  { %v3555_v12 = vadd.f32 %v3554_v22, %v3511_v8 }
 0x590   :  { %v3599_v19 = vadd.f32 %v3598_v58, %v3555_v12 }
 0x591   :  { %v3461_v2 = vpop.f32.mrf.mxu2  ;;  %v3674_v10 = vpop.f32.mrf.mxu3 }
 0x592   :  { %v3462_v0 = vadd.f32 %v3461_v2, %v3397_v9 }
 0x594   :  { %v3515_v32 = vadd.f32 %v3514_v50, %v3462_v0 }
 0x596   :  { %v3560_v16 = vadd.f32 %v3559_v39, %v3515_v32  ;;  %v3765_v32 = vld [vmem:[#allocation2 + $0xe8] sm:$0xff] }
 0x599   :  { %v3637_v13 = vpop.f32.mrf.mxu2  ;;  %v3678_v18 = vpop.f32.mrf.mxu3 }
 0x59a   :  { %v3638_v14 = vadd.f32 %v3637_v13, %v3587_v43 }
 0x59c   :  { %v3675_v47 = vadd.f32 %v3674_v10, %v3638_v14  ;;  %v3604_v10 = vpop.f32.mrf.mxu1 }
 0x59d   :  { %v3605_v28 = vadd.f32 %v3604_v10, %v3560_v16 }
 0x59e   :  { %v3690_v7 = vadd.f32 %v3689_v1, %v3675_v47 }
 0x5a0   :  { %v5003_v11 = vmax.f32 %v3690_v7, 0.0  ;;  %v3763_v7 = vld [vmem:[#allocation2 + $0xd8] sm:$0xff] }
 0x5a1   :  { %v3641_v20 = vpop.f32.mrf.mxu2  ;;  %v3682_v5 = vpop.f32.mrf.mxu3 }
 0x5a2   :  { %v3642_v27 = vadd.f32 %v3641_v20, %v3593_v37  ;;  %v3712_v4 = vmul.f32 %v5003_v11, %v5003_v11  ;;  %v3698_v3 = vsel %vm1043_vm1, %v5003_v11, 0.0 }
 0x5a4   :  { %v3679_v38 = vadd.f32 %v3678_v18, %v3642_v27  ;;  %v3716_v51 = vsel %vm1043_vm1, %v3712_v4, 0.0 }
 0x5a6   :  { %v3691_v52 = vadd.f32 %v3689_v1, %v3679_v38 }
 0x5a8   :  { %v5001_v17 = vmax.f32 %v3691_v52, 0.0 }
 0x5a9   :  { %v3645_v33 = vpop.f32.mrf.mxu2  ;;  %v3686_v57 = vpop.f32.mrf.mxu3 }
 0x5aa   :  { %v3646_v29 = vadd.f32 %v3645_v33, %v3599_v19  ;;  %v3713_v26 = vmul.f32 %v5001_v17, %v5001_v17  ;;  %v3699_v31 = vsel %vm1043_vm1, %v5001_v17, 0.0  ;;  %v3790_v19 = vand.u32 4294901760, %v3765_v32 }
 0x5ab   :  { %v3700_v56 = vadd.f32 %v3699_v31, %v3698_v3 }
 0x5ac   :  { %v3683_v13 = vadd.f32 %v3682_v5, %v3646_v29  ;;  %v3717_v55 = vsel %vm1043_vm1, %v3713_v26, 0.0  ;;  %v3764_v5 = vld [vmem:[#allocation2 + $0xe0] sm:$0xff]  ;;  %v3844_v29 = vsub.f32 %v3765_v32, %v3790_v19  ;;  %3942 = vmatpush.msra.mxu3 %v3790_v19  ;;  %3791 = vmatpush.msra.mxu0 %v3790_v19 }
 0x5ad   :  { %v3718_v37 = vadd.f32 %v3717_v55, %v3716_v51  ;;  %v3792_v39 = vand.u32 4294901760, %v3764_v5 }
 0x5ae   :  { %v3692_v50 = vadd.f32 %v3689_v1, %v3683_v13  ;;  %3898 = vmatpush.msra.mxu2 %v3844_v29 }
 0x5af   :  { %v3850_v10 = vsub.f32 %v3764_v5, %v3792_v39  ;;  %3944 = vmatpush.msra.mxu3 %v3792_v39  ;;  %3793 = vmatpush.msra.mxu0 %v3792_v39  ;;  %v5033_v5 = vld [vmem:[%s5080_s3 + $0x8] sm:$0x3]  ;;  %s4216_s3 = smov [#allocation5]  }
 0x5b0   :  { %v5005_v49 = vmax.f32 %v3692_v50, 0.0  ;;  %v3845_v50 = vand.u32 4294901760, %v3844_v29  ;;  %s4077_s13 = sshll.u32 %s4216_s3, 4  ;;  %s4078_s13 = int_to_ptr.vmem [resolvable:$true] %s4077_s13 }
 0x5b1   :  { %v3649_v2 = vpop.f32.mrf.mxu2  ;;  %v3851_v31 = vand.u32 4294901760, %v3850_v10  ;;  %3901 = vmatpush.msra.mxu2 %v3850_v10 }
 0x5b2   :  { %v3650_v36 = vadd.f32 %v3649_v2, %v3605_v28  ;;  %v3714_v59 = vmul.f32 %v5005_v49, %v5005_v49  ;;  %v3701_v30 = vsel %vm1043_vm1, %v5005_v49, 0.0  ;;  %v3762_v28 = vld [vmem:[#allocation2 + $0xd0] sm:$0xff]  ;;  %v3794_v2 = vand.u32 4294901760, %v3763_v7 }
 0x5b3   :  { %v3702_v22 = vadd.f32 %v3701_v30, %v3700_v56  ;;  %v3796_v26 = vand.u32 4294901760, %v3762_v28  ;;  %v3846_v4 = vsub.f32 %v3844_v29, %v3845_v50 }
 0x5b4   :  { %v3687_v61 = vadd.f32 %v3686_v57, %v3650_v36  ;;  %v3719_v18 = vsel %vm1043_vm1, %v3714_v59, 0.0  ;;  %v3856_v59 = vsub.f32 %v3763_v7, %v3794_v2  ;;  %3946 = vmatpush.msra.mxu3 %v3794_v2  ;;  %3795 = vmatpush.msra.mxu0 %v3794_v2 }
 0x5b5   :  { %v3720_v43 = vadd.f32 %v3719_v18, %v3718_v37  ;;  %v3847_v30 = vand.u32 4294901760, %v3846_v4 }
 0x5b6   :  { %v3693_v46 = vadd.f32 %v3689_v1, %v3687_v61  ;;  %v3862_v61 = vsub.f32 %v3762_v28, %v3796_v26  ;;  %v3857_v56 = vand.u32 4294901760, %v3856_v59  ;;  %3904 = vmatpush.msra.mxu2 %v3856_v59  ;;  %3948 = vmatpush.msra.mxu3 %v3796_v26 }
 0x5b7   :  { %3848 = vmatpush.msra.mxu1 %v3847_v30  ;;  %3797 = vmatpush.msra.mxu0 %v3796_v26 }
 0x5b8   :  { %v5022_v8 = vmax.f32 %v3693_v46, 0.0  ;;  %v3852_v46 = vsub.f32 %v3850_v10, %v3851_v31  ;;  %v3863_v51 = vand.u32 4294901760, %v3862_v61  ;;  %3907 = vmatpush.msra.mxu2 %v3862_v61 }
 0x5b9   :  { %3989 = vmatpush.msrb.mxu0 %v3845_v50 }
 0x5ba   :  { %v3703_v20 = vsel %vm1043_vm1, %v5022_v8, 0.0  ;;  %v3715_v9 = vmul.f32 %v5022_v8, %v5022_v8 }
 0x5bb   :  { %v3704_v27 = vadd.f32 %v3703_v20, %v3702_v22  ;;  %v3853_v20 = vand.u32 4294901760, %v3852_v46  ;;  %3993 = vmatpush.msrb.mxu0 %v3851_v31 }
 0x5bc   :  { %v3721_v0 = vsel %vm1043_vm1, %v3715_v9, 0.0  ;;  %v3858_v9 = vsub.f32 %v3856_v59, %v3857_v56 }
 0x5bd   :  { %v3705_v14 = vrot.slane %v3704_v27, 4  ;;  %v3722_v12 = vadd.f32 %v3721_v0, %v3720_v43  ;;  %v3864_v43 = vsub.f32 %v3862_v61, %v3863_v51  ;;  %3854 = vmatpush.msra.mxu1 %v3853_v20  ;;  %3997 = vmatpush.msrb.mxu0 %v3857_v56 }
 0x5be   :  { %v3859_v0 = vand.u32 4294901760, %v3858_v9 }
 0x5bf   :  { %v3706_v58 = vadd.f32 %v3705_v14, %v3704_v27  ;;  %v3723_v38 = vrot.slane %v3722_v12, 4  ;;  %v3865_v14 = vand.u32 4294901760, %v3864_v43  ;;  %4001 = vmatpush.msrb.mxu0 %v3863_v51 }
 0x5c0   :  { %3860 = vmatpush.msra.mxu1 %v3859_v0 }
 0x5c1   :  { %v3707_v47 = vrot.slane %v3706_v58, 2  ;;  %v3724_v1 = vadd.f32 %v3723_v38, %v3722_v12 }
 0x5c2   :  { %3866 = vmatpush.msra.mxu1 %v3865_v14 }
 0x5c3   :  { %v3708_v33 = vadd.f32 %v3707_v47, %v3706_v58  ;;  %v3725_v52 = vrot.slane %v3724_v1, 2 }
 0x5c4   :  { %4032 = vmatpush.msrb.mxu1 %v3790_v19 }
 0x5c5   :  { %v3709_v13 = vrot.slane %v3708_v33, 1  ;;  %v3726_v16 = vadd.f32 %v3725_v52, %v3724_v1  ;;  %v3752_v52 = vperm.slane %v4998_v35, 7 }
 0x5c6   :  { %4034 = vmatpush.msrb.mxu1 %v3792_v39 }
 0x5c7   :  { %v3710_v36 = vadd.f32 %v3709_v13, %v3708_v33  ;;  %v3727_v57 = vrot.slane %v3726_v16, 1  ;;  %v3757_v13 = vperm.slane %v5033_v5, 0 }
 0x5c8   :  { %4036 = vmatpush.msrb.mxu1 %v3794_v2 }
 0x5c9   :  { %v3711_v3 = vmul.f32 0.03125, %v3710_v36  ;;  %v3728_v55 = vadd.f32 %v3727_v57, %v3726_v16 }
 0x5ca   :  { %4038 = vmatpush.msrb.mxu1 %v3796_v26 }
 0x5cb   :  { %v3729_v18 = vmul.f32 0.03125, %v3728_v55  ;;  %v3730_v37 = vmul.f32 %v3711_v3, %v3711_v3  ;;  %v3736_v22 = vsub.f32 %v5022_v8, %v3711_v3  ;;  %v3733_v19 = vsub.f32 %v5003_v11, %v3711_v3 }
 0x5cc   :  { %v3734_v29 = vsub.f32 %v5001_v17, %v3711_v3  ;;  %v3735_v39 = vsub.f32 %v5005_v49, %v3711_v3 }
 0x5cd   :  { %v3731_v27 = vsub.f32 %v3729_v18, %v3730_v37 }
 0x5cf   :  { %v3732_v12 = vmax.f32 %v3731_v27, 0.0 }
 0x5d1   :  { %v3737_v58 = vadd.f32 1e-05, %v3732_v12 }
 0x5d3   :  { %4156 = vrsqrt.f32 %v3737_v58  ;;  %vm3744_vm10 = vweird.f32 %v3737_v58 }
 0x5d9   :  { %v4157_v8 = vpop.eup %4156 }
 0x5da   :  { %v3739_v38 = vmul.f32 %v4157_v8, %v3737_v58  ;;  %vm3745_vm0 = vweird.f32 %v4157_v8 }
 0x5db   :  { %vm3746_vm11 = vmor %vm3744_vm10, %vm3745_vm0 }
 0x5dc   :  { %v3740_v32 = vmul.f32 %v4157_v8, %v3739_v38 }
 0x5de   :  { %v3741_v47 = vmul.f32 0.5, %v3740_v32 }
 0x5e0   :  { %v3742_v1 = vsub.f32 1.5, %v3741_v47 }
 0x5e2   :  { %v3743_v33 = vmul.f32 %v4157_v8, %v3742_v1  ;;  %v2265_v1 = vadd.f32 %v4885_v54, %v4894_v21 }
 0x5e4   :  { %v3747_v7 = vsel %vm3746_vm11, %v4157_v8, %v3743_v33 }
 0x5e5   :  { %v3751_v16 = vmul.f32 %v3747_v7, %v3736_v22  ;;  %v3748_v50 = vmul.f32 %v3747_v7, %v3733_v19  ;;  %v3749_v10 = vmul.f32 %v3747_v7, %v3734_v29  ;;  %v3750_v28 = vmul.f32 %v3747_v7, %v3735_v39 }
 0x5e6   :  { %v2269_v39 = vadd.f32 %v4896_v48, %v4908_v42 }
 0x5e7   :  { %v3753_v2 = vmul.f32 %v3752_v52, %v3748_v50  ;;  %v3754_v26 = vmul.f32 %v3752_v52, %v3749_v10  ;;  %v3755_v4 = vmul.f32 %v3752_v52, %v3750_v28  ;;  %v3756_v30 = vmul.f32 %v3752_v52, %v3751_v16 }
 0x5e8   :  { %v2307_v52 = vadd.f32 %v4898_v40, %v2265_v1  ;;  %v2312_v50 = vadd.f32 %v4910_v63, %v2269_v39 }
 0x5e9   :  { %v3758_v36 = vadd.f32 %v3757_v13, %v3753_v2  ;;  %v3759_v57 = vadd.f32 %v3757_v13, %v3754_v26  ;;  %v3760_v59 = vadd.f32 %v3757_v13, %v3755_v4  ;;  %v3761_v37 = vadd.f32 %v3757_v13, %v3756_v30 }
 0x5ea   :  { %v2349_v29 = vadd.f32 %v4900_v44, %v2307_v52  ;;  %v2355_v28 = vadd.f32 %v4912_v60, %v2312_v50 }
 0x5eb   :  { %v3767_v11 = vsel %vm1043_vm1, %v3758_v36, 0  ;;  %v3770_v35 = vsel %vm1043_vm1, %v3759_v57, 0  ;;  %v3773_v55 = vsel %vm1043_vm1, %v3760_v59, 0  ;;  %v3776_v9 = vsel %vm1043_vm1, %v3761_v37, 0 }
 0x5ec   :  { %v3798_v31 = vand.u32 4294901760, %v3767_v11  ;;  %v3806_v17 = vand.u32 4294901760, %v3770_v35  ;;  %v3814_v18 = vand.u32 4294901760, %v3773_v55  ;;  %v3822_v0 = vand.u32 4294901760, %v3776_v9 }
 0x5ed   :  { %v2400_v7 = vadd.f32 %v4928_v15, %v2349_v29  ;;  %v2404_v40 = vadd.f32 %v4940_v23, %v2355_v28  ;;  %v5163_v23 = vld [vmem:[#allocation8_spill] sm:$0xff] }
 0x5ee   :  { %3868 = vmatmul.f32.vlgmr.msra.gmra.mxu1 %v3798_v31  ;;  %v3799_v49 = vsub.f32 %v3767_v11, %v3798_v31  ;;  %v3807_v3 = vsub.f32 %v3770_v35, %v3806_v17  ;;  %v3815_v20 = vsub.f32 %v3773_v55, %v3814_v18  ;;  %v3823_v12 = vsub.f32 %v3776_v9, %v3822_v0  ;;  %v5166_v55 = vld [vmem:[#allocation28_spill] sm:$0xff] }
 0x5ef   :  { %v2437_v10 = vadd.f32 %v4922_v62, %v2400_v7  ;;  %v2441_v48 = vadd.f32 %v4930_v41, %v2404_v40 }
 0x5f0   :  { %3910 = vmatmul.f32.vlgmr.msra.gmra.mxu2 %v3799_v49  ;;  %v3800_v61 = vand.u32 4294901760, %v3799_v49  ;;  %v3808_v51 = vand.u32 4294901760, %v3807_v3  ;;  %v3816_v27 = vand.u32 4294901760, %v3815_v20  ;;  %v3824_v8 = vand.u32 4294901760, %v3823_v12 }
 0x5f1   :  { %v2478_v54 = vadd.f32 %v4932_v25, %v2437_v10  ;;  %v2486_v62 = vadd.f32 %v4942_v24, %v2441_v48  ;;  %v5170_v48 = vld [vmem:[#allocation13_spill] sm:$0xff] }
 0x5f2   :  { %3952 = vmatmul.f32.vlgmr.msra.gmra.mxu3 %v3800_v61  ;;  %v3801_v46 = vsub.f32 %v3799_v49, %v3800_v61  ;;  %v3809_v22 = vsub.f32 %v3807_v3, %v3808_v51  ;;  %v3817_v14 = vsub.f32 %v3815_v20, %v3816_v27  ;;  %v3825_v38 = vsub.f32 %v3823_v12, %v3824_v8  ;;  %v5165_v49 = vld [vmem:[#allocation10_spill] sm:$0xff] }
 0x5f3   :  { %v2543_v44 = vadd.f32 %v4934_v6, %v2478_v54  ;;  %v2547_v4 = vadd.f32 %v4944_v45, %v2486_v62  ;;  %v5164_v6 = vld [vmem:[#allocation12_spill] sm:$0xff] }
 0x5f4   :  { %v3802_v56 = vand.u32 4294901760, %v3801_v46  ;;  %v3810_v43 = vand.u32 4294901760, %v3809_v22  ;;  %v3818_v58 = vand.u32 4294901760, %v3817_v14  ;;  %v3826_v32 = vand.u32 4294901760, %v3825_v38  ;;  %v5168_v14 = vld [vmem:[#allocation9_spill] sm:$0xff] }
 0x5f5   :  { %v2585_v42 = vadd.f32 %v4954_v53, %v2543_v44  ;;  %v4060_v46 = vperm.slane %v5033_v5, 1 }
 0x5f6   :  { %3803 = vmatmul.f32.vlgmr.msra.gmra.mxu0 %v3802_v56  ;;  %3872 = vmatmul.f32.gmra.mxu1 %v3806_v17 }
 0x5f7   :  { %v2627_v60 = vadd.f32 %v4950_v34, %v2585_v42 }
 0x5f8   :  { %3915 = vmatmul.f32.gmra.mxu2 %v3807_v3 }
 0x5f9   :  { %v2678_v11 = vadd.f32 %v5163_v23, %v2627_v60 }
 0x5fa   :  { %3958 = vmatmul.f32.gmra.mxu3 %v3808_v51  ;;  %v5167_v51 = vld [vmem:[#allocation15_spill] sm:$0xff] }
 0x5fb   :  { %v2715_v61 = vadd.f32 %v5165_v49, %v2678_v11 }
 0x5fe   :  { %3811 = vmatmul.f32.gmra.mxu0 %v3810_v43  ;;  %3876 = vmatmul.f32.gmra.mxu1 %v3814_v18 }
 0x600   :  { %3920 = vmatmul.f32.gmra.mxu2 %v3815_v20 }
 0x602   :  { %3964 = vmatmul.f32.gmra.mxu3 %v3816_v27 }
 0x606   :  { %3819 = vmatmul.f32.gmra.mxu0 %v3818_v58  ;;  %3880 = vmatmul.f32.gmra.mxu1 %v3822_v0 }
 0x608   :  { %3925 = vmatmul.f32.gmra.mxu2 %v3823_v12 }
 0x60a   :  { %3970 = vmatmul.f32.gmra.mxu3 %v3824_v8 }
 0x60e   :  { %3827 = vmatmul.f32.gmra.mxu0 %v3826_v32  ;;  %4040 = vmatmul.f32.vlgmr.msrb.gmra.mxu1 %v3798_v31 }
 0x616   :  { %4003 = vmatmul.f32.vlgmr.msrb.gmra.mxu0 %v3798_v31  ;;  %4044 = vmatmul.f32.gmra.mxu1 %v3806_v17  ;;  %v2590_v31 = vadd.f32 %v5164_v6, %v2547_v4 }
 0x618   :  { %v2633_v24 = vadd.f32 %v5166_v55, %v2590_v31 }
 0x61e   :  { %4007 = vmatmul.f32.gmra.mxu0 %v3806_v17  ;;  %4048 = vmatmul.f32.gmra.mxu1 %v3814_v18 }
 0x626   :  { %4011 = vmatmul.f32.gmra.mxu0 %v3814_v18  ;;  %4052 = vmatmul.f32.gmra.mxu1 %v3822_v0  ;;  %v2682_v18 = vadd.f32 %v5167_v51, %v2633_v24 }
 0x628   :  { %v2719_v12 = vadd.f32 %v5168_v14, %v2682_v18 }
 0x62e   :  { %4015 = vmatmul.f32.gmra.mxu0 %v3822_v0 }
 0x66b   :  { %v3869_v47 = vpop.f32.mrf.mxu1 }
 0x673   :  { %v3804_v33 = vpop.f32.mrf.mxu0  ;;  %v3873_v19 = vpop.f32.mrf.mxu1 }
 0x674   :  { %v3911_v26 = vpop.f32.mrf.mxu2  ;;  %v3870_v15 = vadd.f32 %v3869_v47, %v3804_v33 }
 0x675   :  { %v3953_v36 = vpop.f32.mrf.mxu3 }
 0x676   :  { %v3912_v57 = vadd.f32 %v3911_v26, %v3870_v15 }
 0x678   :  { %v3954_v17 = vadd.f32 %v3953_v36, %v3912_v57 }
 0x67b   :  { %v3812_v13 = vpop.f32.mrf.mxu0  ;;  %v3877_v16 = vpop.f32.mrf.mxu1 }
 0x67c   :  { %v3916_v35 = vpop.f32.mrf.mxu2  ;;  %v3874_v41 = vadd.f32 %v3873_v19, %v3812_v13 }
 0x67d   :  { %v3959_v3 = vpop.f32.mrf.mxu3 }
 0x67e   :  { %v3917_v30 = vadd.f32 %v3916_v35, %v3874_v41 }
 0x680   :  { %v3960_v37 = vadd.f32 %v3959_v3, %v3917_v30 }
 0x683   :  { %v3820_v21 = vpop.f32.mrf.mxu0  ;;  %v3881_v2 = vpop.f32.mrf.mxu1 }
 0x684   :  { %v3878_v22 = vadd.f32 %v3877_v16, %v3820_v21  ;;  %v3921_v9 = vpop.f32.mrf.mxu2  ;;  %v5169_v16 = vld [vmem:[#allocation11_spill] sm:$0xff] }
 0x685   :  { %v3965_v38 = vpop.f32.mrf.mxu3 }
 0x686   :  { %v3922_v58 = vadd.f32 %v3921_v9, %v3878_v22 }
 0x688   :  { %v3966_v47 = vadd.f32 %v3965_v38, %v3922_v58 }
 0x68b   :  { %v3828_v63 = vpop.f32.mrf.mxu0  ;;  %v4041_v25 = vpop.f32.mrf.mxu1 }
 0x68c   :  { %v3882_v5 = vadd.f32 %v3881_v2, %v3828_v63  ;;  %v3926_v39 = vpop.f32.mrf.mxu2 }
 0x68d   :  { %v3971_v10 = vpop.f32.mrf.mxu3 }
 0x68e   :  { %v3927_v7 = vadd.f32 %v3926_v39, %v3882_v5 }
 0x690   :  { %v3972_v28 = vadd.f32 %v3971_v10, %v3927_v7 }
 0x693   :  { %v4004_v59 = vpop.f32.mrf.mxu0  ;;  %v4045_v45 = vpop.f32.mrf.mxu1 }
 0x694   :  { %v4005_v53 = vadd.f32 %v4004_v59, %v3954_v17 }
 0x696   :  { %v4042_v34 = vadd.f32 %v4041_v25, %v4005_v53 }
 0x698   :  { %v4056_v56 = vadd.f32 %v4042_v34, %v2715_v61 }
 0x69a   :  { %v4061_v20 = vadd.f32 %v4060_v46, %v4056_v56 }
 0x69b   :  { %v4008_v43 = vpop.f32.mrf.mxu0  ;;  %v4049_v33 = vpop.f32.mrf.mxu1 }
 0x69c   :  { %v4065_v27 = vmax.f32 %v4061_v20, 0.0  ;;  %v4009_v0 = vadd.f32 %v4008_v43, %v3960_v37 }
 0x69e   :  { %4069 = vst [vmem:[#allocation5] sm:$0xff] %v4065_v27  ;;  %v4046_v8 = vadd.f32 %v4045_v45, %v4009_v0 }
 0x6a0   :  { %v4057_v32 = vadd.f32 %v4046_v8, %v2719_v12 }
 0x6a2   :  { %v4062_v1 = vadd.f32 %v4060_v46, %v4057_v32 }
 0x6a3   :  { %v4012_v19 = vpop.f32.mrf.mxu0  ;;  %v4053_v26 = vpop.f32.mrf.mxu1 }
 0x6a4   :  { %v4066_v52 = vmax.f32 %v4062_v1, 0.0  ;;  %v4013_v29 = vadd.f32 %v4012_v19, %v3966_v47 }
 0x6a6   :  { %4070 = vst [vmem:[#allocation5 + $0x8] sm:$0xff] %v4066_v52  ;;  %v4050_v13 = vadd.f32 %v4049_v33, %v4013_v29 }
 0x6a8   :  { %v4058_v50 = vadd.f32 %v4050_v13, %v5169_v16 }
 0x6aa   :  { %v4063_v54 = vadd.f32 %v4060_v46, %v4058_v50 }
 0x6ab   :  { %v4016_v21 = vpop.f32.mrf.mxu0 }
 0x6ac   :  { %v4067_v40 = vmax.f32 %v4063_v54, 0.0  ;;  %v4017_v44 = vadd.f32 %v4016_v21, %v3972_v28 }
 0x6ae   :  { %4071 = vst [vmem:[#allocation5 + $0x10] sm:$0xff] %v4067_v40  ;;  %v4054_v2 = vadd.f32 %v4053_v26, %v4017_v44 }
 0x6b0   :  { %v4059_v42 = vadd.f32 %v4054_v2, %v5170_v48 }
 0x6b2   :  { %v4064_v15 = vadd.f32 %v4060_v46, %v4059_v42 }
 0x6b4   :  { %v4068_v36 = vmax.f32 %v4064_v15, 0.0 }
 0x6b6   :  { %4072 = vst [vmem:[#allocation5 + $0x18] sm:$0xff] %v4068_v36 }
 0x6b7   :  { %4085 = dma.vmem_to_hbm [thread:$0]  %s4078_s13, 512, %s4080_s16, [#allocation4], %s4213_s20, %s4213_s20, %s4214_s21  }
 0x6b8   :  { %4210 = dma.done.wait [#allocation4], 512  }
 0x6b9   :  { %4211 = vsyncadd [#allocation4], 4294966784 }
 0x6ba   :  { %4090 = vsyncpa [#allocation3], 1 }
 0x6bb   :  { %4091 = vsyncpa [#allocation4], 1 }

</bundles_post_ra>
